<compile_context>
chip_gen: v7x
topology: tpu7x:2x2x1
jax: 0.10.0
libtpu: 0.0.40
codegen_flags: <defaults>
</compile_context>

<pallas_src>
import functools

import jax
import jax.numpy as jnp
from jax.experimental import pallas as pl
from jax.experimental.pallas import tpu as pltpu


# ----------------------------------------------------------------------------
# Kernel
# ----------------------------------------------------------------------------
def conv2d_lrelu_kernel(x_ref, w_ref, b_ref, o_ref, xf_ref, *,
                        K, p, H, W, nb, alpha):
    """nb images per grid step: reflect pad + KxK conv + bias + LeakyReLU.

    x_ref:  (nb, Cin, H*W)                VMEM, flat per-channel input rows
    w_ref:  (Cin*K*K, Cout, 1)            VMEM, per-tap weight columns (co on sublanes)
    b_ref:  (Cout, 1)                     VMEM bias column
    o_ref:  (nb, Cout, H*(W+2p))          VMEM, flat stride-(W+2p) output rows
    xf_ref: (Cin, (H+2p)*(W+2p) + 2p)     VMEM scratch, reflect-padded flat image
    """
    Cin = x_ref.shape[1]
    Cout = b_ref.shape[0]
    Wp = W + 2 * p          # padded row width == flat row stride
    FLAT = H * Wp           # flat length of one output channel

    # The last 2p lanes of the scratch are only ever read into junk (discarded)
    # output columns of the very last row; zero them once so nothing is
    # uninitialized (deterministic, NaN-free even in the discarded columns).
    if p > 0:
        xf_ref[:, (H + 2 * p) * Wp:] = jnp.zeros((Cin, 2 * p), xf_ref.dtype)

    for n in range(nb):
        # ---- reflect-padding prologue: one wide, value-sourced store per row ----
        for h in range(H):
            row = x_ref[n, :, h * W:(h + 1) * W]                        # (Cin, W)
            pieces = ([row[:, i:i + 1] for i in range(p, 0, -1)]        # left reflect
                      + [row]
                      + [row[:, W - 1 - i:W - i] for i in range(1, p + 1)])  # right reflect
            prow = jnp.concatenate(pieces, axis=-1)                     # (Cin, Wp)

            targets = [h + p]                                           # interior row
            if 1 <= h <= p:
                targets.append(p - h)                                   # top reflect row
            if H - 1 - p <= h <= H - 2:
                targets.append(p + 2 * H - 2 - h)                       # bottom reflect row
            for r in targets:
                xf_ref[:, r * Wp:(r + 1) * Wp] = prow

        # ---- conv: (ci, kh, kw) outer loop, one lane-dense (Cout, FLAT) accumulator ----
        # acc[co, h*Wp + w] = sum_{ci,kh,kw} w[co,ci,kh,kw] * xf[ci, (h+kh)*Wp + (w+kw)]
        # i.e. every tap is a single contiguous lane slice of xf at offset kh*Wp+kw.
        acc = jnp.broadcast_to(b_ref[...], (Cout, FLAT)).astype(jnp.float32)
        for ci in range(Cin):
            for kh in range(K):
                for kw in range(K):
                    t = (ci * K + kh) * K + kw
                    off = kh * Wp + kw
                    patch = xf_ref[ci:ci + 1, off:off + FLAT]           # (1, FLAT)
                    # (Cout,1) * (1,FLAT) -> (Cout,FLAT): VALU work on full vregs,
                    # no SMEM scalar loads, no scalar->vector splats.
                    acc = acc + w_ref[t] * patch.astype(jnp.float32)

        y = jnp.maximum(acc, alpha * acc)                               # LeakyReLU(0.2)
        o_ref[n] = y.astype(o_ref.dtype)


# ----------------------------------------------------------------------------
# Wrapper
# ----------------------------------------------------------------------------
def conv2d_module_forward(x_nchw, w_oihw, bias, kernel_size, *, alpha=0.2):
    """Forward of Conv2dModule (default config), NCHW in / NCHW out."""
    N, Cin, H, W = x_nchw.shape
    Cout = w_oihw.shape[0]
    K = kernel_size
    p = K // 2
    Wp = W + 2 * p
    FLAT = H * Wp
    CKK = Cin * K * K
    assert K % 2 == 1, "only odd kernel_size gives a 'same'-sized output"
    assert p < H and p < W, "reflect padding requires pad < spatial size"

    # weight_norm (w = g * v / ||v||) is a pure reparameterization -> folded on
    # the host.  Lay the weights out as (Cin*K*K, Cout, 1) so each tap is a
    # (Cout, 1) VMEM column.
    w_taps = jnp.transpose(w_oihw.astype(jnp.float32), (1, 2, 3, 0)).reshape(CKK, Cout, 1)
    b_col = bias.astype(jnp.float32).reshape(Cout, 1)

    # Free row-major reshape: flat per-channel input rows (lane-dense loads).
    x_flat = x_nchw.reshape(N, Cin, H * W)

    # Images per grid step: amortize the ~0.35us per-step overhead.  For the
    # micro case (N=2) the whole batch is one step; larger N still gets multiple
    # "parallel" steps for v7x megacore.
    nb = min(N, 8)
    while N % nb:
        nb -= 1
    grid = (N // nb,)

    itemsize = x_nchw.dtype.itemsize
    xf_len = (H + 2 * p) * Wp + 2 * p

    # ---- derived VMEM budget: double-buffered in/out blocks + constants + scratch,
    #      2x headroom for (8,128) tile padding; clamped to v7x's 64 MiB physical.
    in_block = nb * Cin * H * W * itemsize
    out_block = nb * Cout * FLAT * itemsize
    const_bytes = (CKK * Cout + Cout) * 4
    scratch_bytes = Cin * xf_len * itemsize
    vmem_bytes = 2 * (2 * (in_block + out_block) + 2 * const_bytes + scratch_bytes)
    vmem_bytes = int(min(max(vmem_bytes, 1 << 20), 64 << 20))

    flops = 2 * N * Cout * Cin * K * K * H * Wp
    bytes_accessed = itemsize * (N * Cin * H * W + N * Cout * FLAT) + 4 * (CKK * Cout + Cout)

    kernel = functools.partial(conv2d_lrelu_kernel,
                               K=K, p=p, H=H, W=W, nb=nb, alpha=alpha)

    out_flat = pl.pallas_call(
        kernel,
        out_shape=jax.ShapeDtypeStruct((N, Cout, FLAT), x_nchw.dtype),
        grid=grid,
        in_specs=[
            pl.BlockSpec((nb, Cin, H * W), lambda b: (b, 0, 0)),
            pl.BlockSpec((CKK, Cout, 1), lambda b: (0, 0, 0)),
            pl.BlockSpec((Cout, 1), lambda b: (0, 0)),
        ],
        out_specs=pl.BlockSpec((nb, Cout, FLAT), lambda b: (b, 0, 0)),
        scratch_shapes=[pltpu.VMEM((Cin, xf_len), x_nchw.dtype)],
        compiler_params=pltpu.CompilerParams(
            dimension_semantics=("parallel",),
            vmem_limit_bytes=vmem_bytes,
        ),
        cost_estimate=pl.CostEstimate(
            flops=flops, transcendentals=0, bytes_accessed=bytes_accessed),
    )(x_flat, w_taps, b_col)

    # Strip the 2p junk columns of the stride-Wp flat layout -> NCHW output.
    return out_flat.reshape(N, Cout, H, Wp)[:, :, :, :W]


# ----------------------------------------------------------------------------
# Parameter construction (weight_norm reparameterization folded on host)
# ----------------------------------------------------------------------------
def make_weightnorm_conv_params(key, in_channels, out_channels, kernel_size):
    kv, kg, kb = jax.random.split(key, 3)
    v = jax.random.normal(kv, (out_channels, in_channels, kernel_size, kernel_size),
                          jnp.float32) * 0.2
    g = 1.0 + 0.1 * jax.random.normal(kg, (out_channels,), jnp.float32)
    b = 0.1 * jax.random.normal(kb, (out_channels,), jnp.float32)
    norm = jnp.sqrt(jnp.sum(v * v, axis=(1, 2, 3), keepdims=True))
    w_oihw = (g.reshape(-1, 1, 1, 1) / norm) * v
    return w_oihw, b


# ----------------------------------------------------------------------------
# Pure-JAX reference (correctness check)
# ----------------------------------------------------------------------------
def ref_forward(x, w_oihw, bias, kernel_size, alpha=0.2):
    p = kernel_size // 2
    xp = jnp.pad(x, ((0, 0), (0, 0), (p, p), (p, p)), mode="reflect")
    y = jax.lax.conv_general_dilated(
        xp, w_oihw, window_strides=(1, 1), padding="VALID",
        dimension_numbers=("NCHW", "OIHW", "NCHW"))
    y = y + bias.reshape(1, -1, 1, 1)
    return jnp.maximum(y, alpha * y)


# ----------------------------------------------------------------------------
if __name__ == "__main__":
    N, C, H, W = 2, 4, 16, 16
    kernel_size = 3

    key = jax.random.PRNGKey(0)
    kx, kparam = jax.random.split(key)
    x = jax.random.normal(kx, (N, C, H, W), jnp.float32)
    w, b = make_weightnorm_conv_params(kparam, C, C, kernel_size)

    out = jax.block_until_ready(conv2d_module_forward(x, w, b, kernel_size))
    ref = jax.block_until_ready(ref_forward(x, w, b, kernel_size))

    assert out.shape == (N, C, H, W)
    max_diff = float(jnp.max(jnp.abs(out - ref)))
    assert jnp.allclose(out, ref, atol=1e-4, rtol=1e-4), f"max abs diff {max_diff}"
    print("KERNEL_OK")
</pallas_src>

<mosaic_0001>
module attributes {stable_mosaic.version = 11 : i64} {
  func.func @conv2d_lrelu_kernel(%arg0: i32, %arg1: memref<2x4x256xf32, #tpu.memory_space<vmem>>, %arg2: memref<36x4x1xf32, #tpu.memory_space<vmem>>, %arg3: memref<4x1xf32, #tpu.memory_space<vmem>>, %arg4: memref<2x4x288xf32, #tpu.memory_space<vmem>>, %arg5: memref<4x326xf32, #tpu.memory_space<vmem>>) attributes {dimension_semantics = [#tpu.dimension_semantics<parallel>], iteration_bounds = array<i64: 1>, scalar_prefetch = 0 : i64, scratch_operands = 1 : i64, tpu.core_type = #tpu.core_type<tc>, window_params = [{transform_indices = @transform_0, window_bounds = array<i64: 2, 4, 256>}, {pipeline_mode = #tpu.pipeline_mode<synchronous>, transform_indices = @transform_1, window_bounds = array<i64: 36, 4, 1>}, {pipeline_mode = #tpu.pipeline_mode<synchronous>, transform_indices = @transform_2, window_bounds = array<i64: 4, 1>}, {transform_indices = @transform_3, window_bounds = array<i64: 2, 4, 288>}]} {
    %cst = arith.constant 0.000000e+00 : f32
    %0 = vector.broadcast %cst : f32 to vector<4x2xf32>
    %c0 = arith.constant 0 : index
    %c324 = arith.constant 324 : index
    %1 = vector.load %arg5[%c0, %c324] : memref<4x326xf32, #tpu.memory_space<vmem>>, vector<4x2xf32>
    tpu.vector_store %arg5[%c0, %c324], %0 {strides = array<i32>} : memref<4x326xf32, #tpu.memory_space<vmem>>, vector<4x2xf32>,
    %c0_0 = arith.constant 0 : index
    %c0_1 = arith.constant 0 : index
    %c0_2 = arith.constant 0 : index
    %2 = vector.load %arg1[%c0_0, %c0_1, %c0_2] : memref<2x4x256xf32, #tpu.memory_space<vmem>>, vector<1x4x16xf32>
    %3 = vector.shape_cast %2 : vector<1x4x16xf32> to vector<4x16xf32>
    %4 = vector.extract_strided_slice %3 {offsets = [0, 1], sizes = [4, 1], strides = [1, 1]} : vector<4x16xf32> to vector<4x1xf32>
    %5 = vector.extract_strided_slice %3 {offsets = [0, 14], sizes = [4, 1], strides = [1, 1]} : vector<4x16xf32> to vector<4x1xf32>
    %6 = tpu.concatenate %4, %3, %5 in 1 : vector<4x1xf32>, vector<4x16xf32>, vector<4x1xf32> -> vector<4x18xf32>
    %c0_3 = arith.constant 0 : index
    %c18 = arith.constant 18 : index
    %7 = vector.load %arg5[%c0_3, %c18] : memref<4x326xf32, #tpu.memory_space<vmem>>, vector<4x18xf32>
    tpu.vector_store %arg5[%c0_3, %c18], %6 {strides = array<i32>} : memref<4x326xf32, #tpu.memory_space<vmem>>, vector<4x18xf32>,
    %c0_4 = arith.constant 0 : index
    %c0_5 = arith.constant 0 : index
    %c16 = arith.constant 16 : index
    %8 = vector.load %arg1[%c0_4, %c0_5, %c16] : memref<2x4x256xf32, #tpu.memory_space<vmem>>, vector<1x4x16xf32>
    %9 = vector.shape_cast %8 : vector<1x4x16xf32> to vector<4x16xf32>
    %10 = vector.extract_strided_slice %9 {offsets = [0, 1], sizes = [4, 1], strides = [1, 1]} : vector<4x16xf32> to vector<4x1xf32>
    %11 = vector.extract_strided_slice %9 {offsets = [0, 14], sizes = [4, 1], strides = [1, 1]} : vector<4x16xf32> to vector<4x1xf32>
    %12 = tpu.concatenate %10, %9, %11 in 1 : vector<4x1xf32>, vector<4x16xf32>, vector<4x1xf32> -> vector<4x18xf32>
    %c0_6 = arith.constant 0 : index
    %c36 = arith.constant 36 : index
    %13 = vector.load %arg5[%c0_6, %c36] : memref<4x326xf32, #tpu.memory_space<vmem>>, vector<4x18xf32>
    tpu.vector_store %arg5[%c0_6, %c36], %12 {strides = array<i32>} : memref<4x326xf32, #tpu.memory_space<vmem>>, vector<4x18xf32>,
    %c0_7 = arith.constant 0 : index
    %c0_8 = arith.constant 0 : index
    %14 = vector.load %arg5[%c0_7, %c0_8] : memref<4x326xf32, #tpu.memory_space<vmem>>, vector<4x18xf32>
    tpu.vector_store %arg5[%c0_7, %c0_8], %12 {strides = array<i32>} : memref<4x326xf32, #tpu.memory_space<vmem>>, vector<4x18xf32>,
    %c0_9 = arith.constant 0 : index
    %c0_10 = arith.constant 0 : index
    %c32 = arith.constant 32 : index
    %15 = vector.load %arg1[%c0_9, %c0_10, %c32] : memref<2x4x256xf32, #tpu.memory_space<vmem>>, vector<1x4x16xf32>
    %16 = vector.shape_cast %15 : vector<1x4x16xf32> to vector<4x16xf32>
    %17 = vector.extract_strided_slice %16 {offsets = [0, 1], sizes = [4, 1], strides = [1, 1]} : vector<4x16xf32> to vector<4x1xf32>
    %18 = vector.extract_strided_slice %16 {offsets = [0, 14], sizes = [4, 1], strides = [1, 1]} : vector<4x16xf32> to vector<4x1xf32>
    %19 = tpu.concatenate %17, %16, %18 in 1 : vector<4x1xf32>, vector<4x16xf32>, vector<4x1xf32> -> vector<4x18xf32>
    %c0_11 = arith.constant 0 : index
    %c54 = arith.constant 54 : index
    %20 = vector.load %arg5[%c0_11, %c54] : memref<4x326xf32, #tpu.memory_space<vmem>>, vector<4x18xf32>
    tpu.vector_store %arg5[%c0_11, %c54], %19 {strides = array<i32>} : memref<4x326xf32, #tpu.memory_space<vmem>>, vector<4x18xf32>,
    %c0_12 = arith.constant 0 : index
    %c0_13 = arith.constant 0 : index
    %c48 = arith.constant 48 : index
    %21 = vector.load %arg1[%c0_12, %c0_13, %c48] : memref<2x4x256xf32, #tpu.memory_space<vmem>>, vector<1x4x16xf32>
    %22 = vector.shape_cast %21 : vector<1x4x16xf32> to vector<4x16xf32>
    %23 = vector.extract_strided_slice %22 {offsets = [0, 1], sizes = [4, 1], strides = [1, 1]} : vector<4x16xf32> to vector<4x1xf32>
    %24 = vector.extract_strided_slice %22 {offsets = [0, 14], sizes = [4, 1], strides = [1, 1]} : vector<4x16xf32> to vector<4x1xf32>
    %25 = tpu.concatenate %23, %22, %24 in 1 : vector<4x1xf32>, vector<4x16xf32>, vector<4x1xf32> -> vector<4x18xf32>
    %c0_14 = arith.constant 0 : index
    %c72 = arith.constant 72 : index
    %26 = vector.load %arg5[%c0_14, %c72] : memref<4x326xf32, #tpu.memory_space<vmem>>, vector<4x18xf32>
    tpu.vector_store %arg5[%c0_14, %c72], %25 {strides = array<i32>} : memref<4x326xf32, #tpu.memory_space<vmem>>, vector<4x18xf32>,
    %c0_15 = arith.constant 0 : index
    %c0_16 = arith.constant 0 : index
    %c64 = arith.constant 64 : index
    %27 = vector.load %arg1[%c0_15, %c0_16, %c64] : memref<2x4x256xf32, #tpu.memory_space<vmem>>, vector<1x4x16xf32>
    %28 = vector.shape_cast %27 : vector<1x4x16xf32> to vector<4x16xf32>
    %29 = vector.extract_strided_slice %28 {offsets = [0, 1], sizes = [4, 1], strides = [1, 1]} : vector<4x16xf32> to vector<4x1xf32>
    %30 = vector.extract_strided_slice %28 {offsets = [0, 14], sizes = [4, 1], strides = [1, 1]} : vector<4x16xf32> to vector<4x1xf32>
    %31 = tpu.concatenate %29, %28, %30 in 1 : vector<4x1xf32>, vector<4x16xf32>, vector<4x1xf32> -> vector<4x18xf32>
    %c0_17 = arith.constant 0 : index
    %c90 = arith.constant 90 : index
    %32 = vector.load %arg5[%c0_17, %c90] : memref<4x326xf32, #tpu.memory_space<vmem>>, vector<4x18xf32>
    tpu.vector_store %arg5[%c0_17, %c90], %31 {strides = array<i32>} : memref<4x326xf32, #tpu.memory_space<vmem>>, vector<4x18xf32>,
    %c0_18 = arith.constant 0 : index
    %c0_19 = arith.constant 0 : index
    %c80 = arith.constant 80 : index
    %33 = vector.load %arg1[%c0_18, %c0_19, %c80] : memref<2x4x256xf32, #tpu.memory_space<vmem>>, vector<1x4x16xf32>
    %34 = vector.shape_cast %33 : vector<1x4x16xf32> to vector<4x16xf32>
    %35 = vector.extract_strided_slice %34 {offsets = [0, 1], sizes = [4, 1], strides = [1, 1]} : vector<4x16xf32> to vector<4x1xf32>
    %36 = vector.extract_strided_slice %34 {offsets = [0, 14], sizes = [4, 1], strides = [1, 1]} : vector<4x16xf32> to vector<4x1xf32>
    %37 = tpu.concatenate %35, %34, %36 in 1 : vector<4x1xf32>, vector<4x16xf32>, vector<4x1xf32> -> vector<4x18xf32>
    %c0_20 = arith.constant 0 : index
    %c108 = arith.constant 108 : index
    %38 = vector.load %arg5[%c0_20, %c108] : memref<4x326xf32, #tpu.memory_space<vmem>>, vector<4x18xf32>
    tpu.vector_store %arg5[%c0_20, %c108], %37 {strides = array<i32>} : memref<4x326xf32, #tpu.memory_space<vmem>>, vector<4x18xf32>,
    %c0_21 = arith.constant 0 : index
    %c0_22 = arith.constant 0 : index
    %c96 = arith.constant 96 : index
    %39 = vector.load %arg1[%c0_21, %c0_22, %c96] : memref<2x4x256xf32, #tpu.memory_space<vmem>>, vector<1x4x16xf32>
    %40 = vector.shape_cast %39 : vector<1x4x16xf32> to vector<4x16xf32>
    %41 = vector.extract_strided_slice %40 {offsets = [0, 1], sizes = [4, 1], strides = [1, 1]} : vector<4x16xf32> to vector<4x1xf32>
    %42 = vector.extract_strided_slice %40 {offsets = [0, 14], sizes = [4, 1], strides = [1, 1]} : vector<4x16xf32> to vector<4x1xf32>
    %43 = tpu.concatenate %41, %40, %42 in 1 : vector<4x1xf32>, vector<4x16xf32>, vector<4x1xf32> -> vector<4x18xf32>
    %c0_23 = arith.constant 0 : index
    %c126 = arith.constant 126 : index
    %44 = vector.load %arg5[%c0_23, %c126] : memref<4x326xf32, #tpu.memory_space<vmem>>, vector<4x18xf32>
    tpu.vector_store %arg5[%c0_23, %c126], %43 {strides = array<i32>} : memref<4x326xf32, #tpu.memory_space<vmem>>, vector<4x18xf32>,
    %c0_24 = arith.constant 0 : index
    %c0_25 = arith.constant 0 : index
    %c112 = arith.constant 112 : index
    %45 = vector.load %arg1[%c0_24, %c0_25, %c112] : memref<2x4x256xf32, #tpu.memory_space<vmem>>, vector<1x4x16xf32>
    %46 = vector.shape_cast %45 : vector<1x4x16xf32> to vector<4x16xf32>
    %47 = vector.extract_strided_slice %46 {offsets = [0, 1], sizes = [4, 1], strides = [1, 1]} : vector<4x16xf32> to vector<4x1xf32>
    %48 = vector.extract_strided_slice %46 {offsets = [0, 14], sizes = [4, 1], strides = [1, 1]} : vector<4x16xf32> to vector<4x1xf32>
    %49 = tpu.concatenate %47, %46, %48 in 1 : vector<4x1xf32>, vector<4x16xf32>, vector<4x1xf32> -> vector<4x18xf32>
    %c0_26 = arith.constant 0 : index
    %c144 = arith.constant 144 : index
    %50 = vector.load %arg5[%c0_26, %c144] : memref<4x326xf32, #tpu.memory_space<vmem>>, vector<4x18xf32>
    tpu.vector_store %arg5[%c0_26, %c144], %49 {strides = array<i32>} : memref<4x326xf32, #tpu.memory_space<vmem>>, vector<4x18xf32>,
    %c0_27 = arith.constant 0 : index
    %c0_28 = arith.constant 0 : index
    %c128 = arith.constant 128 : index
    %51 = vector.load %arg1[%c0_27, %c0_28, %c128] : memref<2x4x256xf32, #tpu.memory_space<vmem>>, vector<1x4x16xf32>
    %52 = vector.shape_cast %51 : vector<1x4x16xf32> to vector<4x16xf32>
    %53 = vector.extract_strided_slice %52 {offsets = [0, 1], sizes = [4, 1], strides = [1, 1]} : vector<4x16xf32> to vector<4x1xf32>
    %54 = vector.extract_strided_slice %52 {offsets = [0, 14], sizes = [4, 1], strides = [1, 1]} : vector<4x16xf32> to vector<4x1xf32>
    %55 = tpu.concatenate %53, %52, %54 in 1 : vector<4x1xf32>, vector<4x16xf32>, vector<4x1xf32> -> vector<4x18xf32>
    %c0_29 = arith.constant 0 : index
    %c162 = arith.constant 162 : index
    %56 = vector.load %arg5[%c0_29, %c162] : memref<4x326xf32, #tpu.memory_space<vmem>>, vector<4x18xf32>
    tpu.vector_store %arg5[%c0_29, %c162], %55 {strides = array<i32>} : memref<4x326xf32, #tpu.memory_space<vmem>>, vector<4x18xf32>,
    %c0_30 = arith.constant 0 : index
    %c0_31 = arith.constant 0 : index
    %c144_32 = arith.constant 144 : index
    %57 = vector.load %arg1[%c0_30, %c0_31, %c144_32] : memref<2x4x256xf32, #tpu.memory_space<vmem>>, vector<1x4x16xf32>
    %58 = vector.shape_cast %57 : vector<1x4x16xf32> to vector<4x16xf32>
    %59 = vector.extract_strided_slice %58 {offsets = [0, 1], sizes = [4, 1], strides = [1, 1]} : vector<4x16xf32> to vector<4x1xf32>
    %60 = vector.extract_strided_slice %58 {offsets = [0, 14], sizes = [4, 1], strides = [1, 1]} : vector<4x16xf32> to vector<4x1xf32>
    %61 = tpu.concatenate %59, %58, %60 in 1 : vector<4x1xf32>, vector<4x16xf32>, vector<4x1xf32> -> vector<4x18xf32>
    %c0_33 = arith.constant 0 : index
    %c180 = arith.constant 180 : index
    %62 = vector.load %arg5[%c0_33, %c180] : memref<4x326xf32, #tpu.memory_space<vmem>>, vector<4x18xf32>
    tpu.vector_store %arg5[%c0_33, %c180], %61 {strides = array<i32>} : memref<4x326xf32, #tpu.memory_space<vmem>>, vector<4x18xf32>,
    %c0_34 = arith.constant 0 : index
    %c0_35 = arith.constant 0 : index
    %c160 = arith.constant 160 : index
    %63 = vector.load %arg1[%c0_34, %c0_35, %c160] : memref<2x4x256xf32, #tpu.memory_space<vmem>>, vector<1x4x16xf32>
    %64 = vector.shape_cast %63 : vector<1x4x16xf32> to vector<4x16xf32>
    %65 = vector.extract_strided_slice %64 {offsets = [0, 1], sizes = [4, 1], strides = [1, 1]} : vector<4x16xf32> to vector<4x1xf32>
    %66 = vector.extract_strided_slice %64 {offsets = [0, 14], sizes = [4, 1], strides = [1, 1]} : vector<4x16xf32> to vector<4x1xf32>
    %67 = tpu.concatenate %65, %64, %66 in 1 : vector<4x1xf32>, vector<4x16xf32>, vector<4x1xf32> -> vector<4x18xf32>
    %c0_36 = arith.constant 0 : index
    %c198 = arith.constant 198 : index
    %68 = vector.load %arg5[%c0_36, %c198] : memref<4x326xf32, #tpu.memory_space<vmem>>, vector<4x18xf32>
    tpu.vector_store %arg5[%c0_36, %c198], %67 {strides = array<i32>} : memref<4x326xf32, #tpu.memory_space<vmem>>, vector<4x18xf32>,
    %c0_37 = arith.constant 0 : index
    %c0_38 = arith.constant 0 : index
    %c176 = arith.constant 176 : index
    %69 = vector.load %arg1[%c0_37, %c0_38, %c176] : memref<2x4x256xf32, #tpu.memory_space<vmem>>, vector<1x4x16xf32>
    %70 = vector.shape_cast %69 : vector<1x4x16xf32> to vector<4x16xf32>
    %71 = vector.extract_strided_slice %70 {offsets = [0, 1], sizes = [4, 1], strides = [1, 1]} : vector<4x16xf32> to vector<4x1xf32>
    %72 = vector.extract_strided_slice %70 {offsets = [0, 14], sizes = [4, 1], strides = [1, 1]} : vector<4x16xf32> to vector<4x1xf32>
    %73 = tpu.concatenate %71, %70, %72 in 1 : vector<4x1xf32>, vector<4x16xf32>, vector<4x1xf32> -> vector<4x18xf32>
    %c0_39 = arith.constant 0 : index
    %c216 = arith.constant 216 : index
    %74 = vector.load %arg5[%c0_39, %c216] : memref<4x326xf32, #tpu.memory_space<vmem>>, vector<4x18xf32>
    tpu.vector_store %arg5[%c0_39, %c216], %73 {strides = array<i32>} : memref<4x326xf32, #tpu.memory_space<vmem>>, vector<4x18xf32>,
    %c0_40 = arith.constant 0 : index
    %c0_41 = arith.constant 0 : index
    %c192 = arith.constant 192 : index
    %75 = vector.load %arg1[%c0_40, %c0_41, %c192] : memref<2x4x256xf32, #tpu.memory_space<vmem>>, vector<1x4x16xf32>
    %76 = vector.shape_cast %75 : vector<1x4x16xf32> to vector<4x16xf32>
    %77 = vector.extract_strided_slice %76 {offsets = [0, 1], sizes = [4, 1], strides = [1, 1]} : vector<4x16xf32> to vector<4x1xf32>
    %78 = vector.extract_strided_slice %76 {offsets = [0, 14], sizes = [4, 1], strides = [1, 1]} : vector<4x16xf32> to vector<4x1xf32>
    %79 = tpu.concatenate %77, %76, %78 in 1 : vector<4x1xf32>, vector<4x16xf32>, vector<4x1xf32> -> vector<4x18xf32>
    %c0_42 = arith.constant 0 : index
    %c234 = arith.constant 234 : index
    %80 = vector.load %arg5[%c0_42, %c234] : memref<4x326xf32, #tpu.memory_space<vmem>>, vector<4x18xf32>
    tpu.vector_store %arg5[%c0_42, %c234], %79 {strides = array<i32>} : memref<4x326xf32, #tpu.memory_space<vmem>>, vector<4x18xf32>,
    %c0_43 = arith.constant 0 : index
    %c0_44 = arith.constant 0 : index
    %c208 = arith.constant 208 : index
    %81 = vector.load %arg1[%c0_43, %c0_44, %c208] : memref<2x4x256xf32, #tpu.memory_space<vmem>>, vector<1x4x16xf32>
    %82 = vector.shape_cast %81 : vector<1x4x16xf32> to vector<4x16xf32>
    %83 = vector.extract_strided_slice %82 {offsets = [0, 1], sizes = [4, 1], strides = [1, 1]} : vector<4x16xf32> to vector<4x1xf32>
    %84 = vector.extract_strided_slice %82 {offsets = [0, 14], sizes = [4, 1], strides = [1, 1]} : vector<4x16xf32> to vector<4x1xf32>
    %85 = tpu.concatenate %83, %82, %84 in 1 : vector<4x1xf32>, vector<4x16xf32>, vector<4x1xf32> -> vector<4x18xf32>
    %c0_45 = arith.constant 0 : index
    %c252 = arith.constant 252 : index
    %86 = vector.load %arg5[%c0_45, %c252] : memref<4x326xf32, #tpu.memory_space<vmem>>, vector<4x18xf32>
    tpu.vector_store %arg5[%c0_45, %c252], %85 {strides = array<i32>} : memref<4x326xf32, #tpu.memory_space<vmem>>, vector<4x18xf32>,
    %c0_46 = arith.constant 0 : index
    %c0_47 = arith.constant 0 : index
    %c224 = arith.constant 224 : index
    %87 = vector.load %arg1[%c0_46, %c0_47, %c224] : memref<2x4x256xf32, #tpu.memory_space<vmem>>, vector<1x4x16xf32>
    %88 = vector.shape_cast %87 : vector<1x4x16xf32> to vector<4x16xf32>
    %89 = vector.extract_strided_slice %88 {offsets = [0, 1], sizes = [4, 1], strides = [1, 1]} : vector<4x16xf32> to vector<4x1xf32>
    %90 = vector.extract_strided_slice %88 {offsets = [0, 14], sizes = [4, 1], strides = [1, 1]} : vector<4x16xf32> to vector<4x1xf32>
    %91 = tpu.concatenate %89, %88, %90 in 1 : vector<4x1xf32>, vector<4x16xf32>, vector<4x1xf32> -> vector<4x18xf32>
    %c0_48 = arith.constant 0 : index
    %c270 = arith.constant 270 : index
    %92 = vector.load %arg5[%c0_48, %c270] : memref<4x326xf32, #tpu.memory_space<vmem>>, vector<4x18xf32>
    tpu.vector_store %arg5[%c0_48, %c270], %91 {strides = array<i32>} : memref<4x326xf32, #tpu.memory_space<vmem>>, vector<4x18xf32>,
    %c0_49 = arith.constant 0 : index
    %c306 = arith.constant 306 : index
    %93 = vector.load %arg5[%c0_49, %c306] : memref<4x326xf32, #tpu.memory_space<vmem>>, vector<4x18xf32>
    tpu.vector_store %arg5[%c0_49, %c306], %91 {strides = array<i32>} : memref<4x326xf32, #tpu.memory_space<vmem>>, vector<4x18xf32>,
    %c0_50 = arith.constant 0 : index
    %c0_51 = arith.constant 0 : index
    %c240 = arith.constant 240 : index
    %94 = vector.load %arg1[%c0_50, %c0_51, %c240] : memref<2x4x256xf32, #tpu.memory_space<vmem>>, vector<1x4x16xf32>
    %95 = vector.shape_cast %94 : vector<1x4x16xf32> to vector<4x16xf32>
    %96 = vector.extract_strided_slice %95 {offsets = [0, 1], sizes = [4, 1], strides = [1, 1]} : vector<4x16xf32> to vector<4x1xf32>
    %97 = vector.extract_strided_slice %95 {offsets = [0, 14], sizes = [4, 1], strides = [1, 1]} : vector<4x16xf32> to vector<4x1xf32>
    %98 = tpu.concatenate %96, %95, %97 in 1 : vector<4x1xf32>, vector<4x16xf32>, vector<4x1xf32> -> vector<4x18xf32>
    %c0_52 = arith.constant 0 : index
    %c288 = arith.constant 288 : index
    %99 = vector.load %arg5[%c0_52, %c288] : memref<4x326xf32, #tpu.memory_space<vmem>>, vector<4x18xf32>
    tpu.vector_store %arg5[%c0_52, %c288], %98 {strides = array<i32>} : memref<4x326xf32, #tpu.memory_space<vmem>>, vector<4x18xf32>,
    %c0_53 = arith.constant 0 : index
    %c0_54 = arith.constant 0 : index
    %100 = vector.load %arg3[%c0_53, %c0_54] : memref<4x1xf32, #tpu.memory_space<vmem>>, vector<4x1xf32>
    %101 = vector.shape_cast %100 : vector<4x1xf32> to vector<4x1xf32>
    %102 = vector.broadcast %101 : vector<4x1xf32> to vector<4x288xf32>
    %c0_55 = arith.constant 0 : index
    %c0_56 = arith.constant 0 : index
    %103 = vector.load %arg5[%c0_55, %c0_56] : memref<4x326xf32, #tpu.memory_space<vmem>>, vector<1x288xf32>
    %c0_57 = arith.constant 0 : index
    %c0_58 = arith.constant 0 : index
    %c0_59 = arith.constant 0 : index
    %104 = vector.load %arg2[%c0_57, %c0_58, %c0_59] : memref<36x4x1xf32, #tpu.memory_space<vmem>>, vector<1x4x1xf32>
    %105 = vector.shape_cast %104 : vector<1x4x1xf32> to vector<4x1xf32>
    %106 = vector.broadcast %105 : vector<4x1xf32> to vector<4x288xf32>
    %107 = vector.broadcast %103 : vector<1x288xf32> to vector<4x288xf32>
    %108 = arith.mulf %106, %107 : vector<4x288xf32>
    %109 = arith.addf %102, %108 : vector<4x288xf32>
    %c0_60 = arith.constant 0 : index
    %c1 = arith.constant 1 : index
    %110 = vector.load %arg5[%c0_60, %c1] : memref<4x326xf32, #tpu.memory_space<vmem>>, vector<1x288xf32>
    %c1_61 = arith.constant 1 : index
    %c0_62 = arith.constant 0 : index
    %c0_63 = arith.constant 0 : index
    %111 = vector.load %arg2[%c1_61, %c0_62, %c0_63] : memref<36x4x1xf32, #tpu.memory_space<vmem>>, vector<1x4x1xf32>
    %112 = vector.shape_cast %111 : vector<1x4x1xf32> to vector<4x1xf32>
    %113 = vector.broadcast %112 : vector<4x1xf32> to vector<4x288xf32>
    %114 = vector.broadcast %110 : vector<1x288xf32> to vector<4x288xf32>
    %115 = arith.mulf %113, %114 : vector<4x288xf32>
    %116 = arith.addf %109, %115 : vector<4x288xf32>
    %c0_64 = arith.constant 0 : index
    %c2 = arith.constant 2 : index
    %117 = vector.load %arg5[%c0_64, %c2] : memref<4x326xf32, #tpu.memory_space<vmem>>, vector<1x288xf32>
    %c2_65 = arith.constant 2 : index
    %c0_66 = arith.constant 0 : index
    %c0_67 = arith.constant 0 : index
    %118 = vector.load %arg2[%c2_65, %c0_66, %c0_67] : memref<36x4x1xf32, #tpu.memory_space<vmem>>, vector<1x4x1xf32>
    %119 = vector.shape_cast %118 : vector<1x4x1xf32> to vector<4x1xf32>
    %120 = vector.broadcast %119 : vector<4x1xf32> to vector<4x288xf32>
    %121 = vector.broadcast %117 : vector<1x288xf32> to vector<4x288xf32>
    %122 = arith.mulf %120, %121 : vector<4x288xf32>
    %123 = arith.addf %116, %122 : vector<4x288xf32>
    %c0_68 = arith.constant 0 : index
    %c18_69 = arith.constant 18 : index
    %124 = vector.load %arg5[%c0_68, %c18_69] : memref<4x326xf32, #tpu.memory_space<vmem>>, vector<1x288xf32>
    %c3 = arith.constant 3 : index
    %c0_70 = arith.constant 0 : index
    %c0_71 = arith.constant 0 : index
    %125 = vector.load %arg2[%c3, %c0_70, %c0_71] : memref<36x4x1xf32, #tpu.memory_space<vmem>>, vector<1x4x1xf32>
    %126 = vector.shape_cast %125 : vector<1x4x1xf32> to vector<4x1xf32>
    %127 = vector.broadcast %126 : vector<4x1xf32> to vector<4x288xf32>
    %128 = vector.broadcast %124 : vector<1x288xf32> to vector<4x288xf32>
    %129 = arith.mulf %127, %128 : vector<4x288xf32>
    %130 = arith.addf %123, %129 : vector<4x288xf32>
    %c0_72 = arith.constant 0 : index
    %c19 = arith.constant 19 : index
    %131 = vector.load %arg5[%c0_72, %c19] : memref<4x326xf32, #tpu.memory_space<vmem>>, vector<1x288xf32>
    %c4 = arith.constant 4 : index
    %c0_73 = arith.constant 0 : index
    %c0_74 = arith.constant 0 : index
    %132 = vector.load %arg2[%c4, %c0_73, %c0_74] : memref<36x4x1xf32, #tpu.memory_space<vmem>>, vector<1x4x1xf32>
    %133 = vector.shape_cast %132 : vector<1x4x1xf32> to vector<4x1xf32>
    %134 = vector.broadcast %133 : vector<4x1xf32> to vector<4x288xf32>
    %135 = vector.broadcast %131 : vector<1x288xf32> to vector<4x288xf32>
    %136 = arith.mulf %134, %135 : vector<4x288xf32>
    %137 = arith.addf %130, %136 : vector<4x288xf32>
    %c0_75 = arith.constant 0 : index
    %c20 = arith.constant 20 : index
    %138 = vector.load %arg5[%c0_75, %c20] : memref<4x326xf32, #tpu.memory_space<vmem>>, vector<1x288xf32>
    %c5 = arith.constant 5 : index
    %c0_76 = arith.constant 0 : index
    %c0_77 = arith.constant 0 : index
    %139 = vector.load %arg2[%c5, %c0_76, %c0_77] : memref<36x4x1xf32, #tpu.memory_space<vmem>>, vector<1x4x1xf32>
    %140 = vector.shape_cast %139 : vector<1x4x1xf32> to vector<4x1xf32>
    %141 = vector.broadcast %140 : vector<4x1xf32> to vector<4x288xf32>
    %142 = vector.broadcast %138 : vector<1x288xf32> to vector<4x288xf32>
    %143 = arith.mulf %141, %142 : vector<4x288xf32>
    %144 = arith.addf %137, %143 : vector<4x288xf32>
    %c0_78 = arith.constant 0 : index
    %c36_79 = arith.constant 36 : index
    %145 = vector.load %arg5[%c0_78, %c36_79] : memref<4x326xf32, #tpu.memory_space<vmem>>, vector<1x288xf32>
    %c6 = arith.constant 6 : index
    %c0_80 = arith.constant 0 : index
    %c0_81 = arith.constant 0 : index
    %146 = vector.load %arg2[%c6, %c0_80, %c0_81] : memref<36x4x1xf32, #tpu.memory_space<vmem>>, vector<1x4x1xf32>
    %147 = vector.shape_cast %146 : vector<1x4x1xf32> to vector<4x1xf32>
    %148 = vector.broadcast %147 : vector<4x1xf32> to vector<4x288xf32>
    %149 = vector.broadcast %145 : vector<1x288xf32> to vector<4x288xf32>
    %150 = arith.mulf %148, %149 : vector<4x288xf32>
    %151 = arith.addf %144, %150 : vector<4x288xf32>
    %c0_82 = arith.constant 0 : index
    %c37 = arith.constant 37 : index
    %152 = vector.load %arg5[%c0_82, %c37] : memref<4x326xf32, #tpu.memory_space<vmem>>, vector<1x288xf32>
    %c7 = arith.constant 7 : index
    %c0_83 = arith.constant 0 : index
    %c0_84 = arith.constant 0 : index
    %153 = vector.load %arg2[%c7, %c0_83, %c0_84] : memref<36x4x1xf32, #tpu.memory_space<vmem>>, vector<1x4x1xf32>
    %154 = vector.shape_cast %153 : vector<1x4x1xf32> to vector<4x1xf32>
    %155 = vector.broadcast %154 : vector<4x1xf32> to vector<4x288xf32>
    %156 = vector.broadcast %152 : vector<1x288xf32> to vector<4x288xf32>
    %157 = arith.mulf %155, %156 : vector<4x288xf32>
    %158 = arith.addf %151, %157 : vector<4x288xf32>
    %c0_85 = arith.constant 0 : index
    %c38 = arith.constant 38 : index
    %159 = vector.load %arg5[%c0_85, %c38] : memref<4x326xf32, #tpu.memory_space<vmem>>, vector<1x288xf32>
    %c8 = arith.constant 8 : index
    %c0_86 = arith.constant 0 : index
    %c0_87 = arith.constant 0 : index
    %160 = vector.load %arg2[%c8, %c0_86, %c0_87] : memref<36x4x1xf32, #tpu.memory_space<vmem>>, vector<1x4x1xf32>
    %161 = vector.shape_cast %160 : vector<1x4x1xf32> to vector<4x1xf32>
    %162 = vector.broadcast %161 : vector<4x1xf32> to vector<4x288xf32>
    %163 = vector.broadcast %159 : vector<1x288xf32> to vector<4x288xf32>
    %164 = arith.mulf %162, %163 : vector<4x288xf32>
    %165 = arith.addf %158, %164 : vector<4x288xf32>
    %c1_88 = arith.constant 1 : index
    %c0_89 = arith.constant 0 : index
    %166 = vector.load %arg5[%c1_88, %c0_89] : memref<4x326xf32, #tpu.memory_space<vmem>>, vector<1x288xf32>
    %c9 = arith.constant 9 : index
    %c0_90 = arith.constant 0 : index
    %c0_91 = arith.constant 0 : index
    %167 = vector.load %arg2[%c9, %c0_90, %c0_91] : memref<36x4x1xf32, #tpu.memory_space<vmem>>, vector<1x4x1xf32>
    %168 = vector.shape_cast %167 : vector<1x4x1xf32> to vector<4x1xf32>
    %169 = vector.broadcast %168 : vector<4x1xf32> to vector<4x288xf32>
    %170 = vector.broadcast %166 : vector<1x288xf32> to vector<4x288xf32>
    %171 = arith.mulf %169, %170 : vector<4x288xf32>
    %172 = arith.addf %165, %171 : vector<4x288xf32>
    %c1_92 = arith.constant 1 : index
    %c1_93 = arith.constant 1 : index
    %173 = vector.load %arg5[%c1_92, %c1_93] : memref<4x326xf32, #tpu.memory_space<vmem>>, vector<1x288xf32>
    %c10 = arith.constant 10 : index
    %c0_94 = arith.constant 0 : index
    %c0_95 = arith.constant 0 : index
    %174 = vector.load %arg2[%c10, %c0_94, %c0_95] : memref<36x4x1xf32, #tpu.memory_space<vmem>>, vector<1x4x1xf32>
    %175 = vector.shape_cast %174 : vector<1x4x1xf32> to vector<4x1xf32>
    %176 = vector.broadcast %175 : vector<4x1xf32> to vector<4x288xf32>
    %177 = vector.broadcast %173 : vector<1x288xf32> to vector<4x288xf32>
    %178 = arith.mulf %176, %177 : vector<4x288xf32>
    %179 = arith.addf %172, %178 : vector<4x288xf32>
    %c1_96 = arith.constant 1 : index
    %c2_97 = arith.constant 2 : index
    %180 = vector.load %arg5[%c1_96, %c2_97] : memref<4x326xf32, #tpu.memory_space<vmem>>, vector<1x288xf32>
    %c11 = arith.constant 11 : index
    %c0_98 = arith.constant 0 : index
    %c0_99 = arith.constant 0 : index
    %181 = vector.load %arg2[%c11, %c0_98, %c0_99] : memref<36x4x1xf32, #tpu.memory_space<vmem>>, vector<1x4x1xf32>
    %182 = vector.shape_cast %181 : vector<1x4x1xf32> to vector<4x1xf32>
    %183 = vector.broadcast %182 : vector<4x1xf32> to vector<4x288xf32>
    %184 = vector.broadcast %180 : vector<1x288xf32> to vector<4x288xf32>
    %185 = arith.mulf %183, %184 : vector<4x288xf32>
    %186 = arith.addf %179, %185 : vector<4x288xf32>
    %c1_100 = arith.constant 1 : index
    %c18_101 = arith.constant 18 : index
    %187 = vector.load %arg5[%c1_100, %c18_101] : memref<4x326xf32, #tpu.memory_space<vmem>>, vector<1x288xf32>
    %c12 = arith.constant 12 : index
    %c0_102 = arith.constant 0 : index
    %c0_103 = arith.constant 0 : index
    %188 = vector.load %arg2[%c12, %c0_102, %c0_103] : memref<36x4x1xf32, #tpu.memory_space<vmem>>, vector<1x4x1xf32>
    %189 = vector.shape_cast %188 : vector<1x4x1xf32> to vector<4x1xf32>
    %190 = vector.broadcast %189 : vector<4x1xf32> to vector<4x288xf32>
    %191 = vector.broadcast %187 : vector<1x288xf32> to vector<4x288xf32>
    %192 = arith.mulf %190, %191 : vector<4x288xf32>
    %193 = arith.addf %186, %192 : vector<4x288xf32>
    %c1_104 = arith.constant 1 : index
    %c19_105 = arith.constant 19 : index
    %194 = vector.load %arg5[%c1_104, %c19_105] : memref<4x326xf32, #tpu.memory_space<vmem>>, vector<1x288xf32>
    %c13 = arith.constant 13 : index
    %c0_106 = arith.constant 0 : index
    %c0_107 = arith.constant 0 : index
    %195 = vector.load %arg2[%c13, %c0_106, %c0_107] : memref<36x4x1xf32, #tpu.memory_space<vmem>>, vector<1x4x1xf32>
    %196 = vector.shape_cast %195 : vector<1x4x1xf32> to vector<4x1xf32>
    %197 = vector.broadcast %196 : vector<4x1xf32> to vector<4x288xf32>
    %198 = vector.broadcast %194 : vector<1x288xf32> to vector<4x288xf32>
    %199 = arith.mulf %197, %198 : vector<4x288xf32>
    %200 = arith.addf %193, %199 : vector<4x288xf32>
    %c1_108 = arith.constant 1 : index
    %c20_109 = arith.constant 20 : index
    %201 = vector.load %arg5[%c1_108, %c20_109] : memref<4x326xf32, #tpu.memory_space<vmem>>, vector<1x288xf32>
    %c14 = arith.constant 14 : index
    %c0_110 = arith.constant 0 : index
    %c0_111 = arith.constant 0 : index
    %202 = vector.load %arg2[%c14, %c0_110, %c0_111] : memref<36x4x1xf32, #tpu.memory_space<vmem>>, vector<1x4x1xf32>
    %203 = vector.shape_cast %202 : vector<1x4x1xf32> to vector<4x1xf32>
    %204 = vector.broadcast %203 : vector<4x1xf32> to vector<4x288xf32>
    %205 = vector.broadcast %201 : vector<1x288xf32> to vector<4x288xf32>
    %206 = arith.mulf %204, %205 : vector<4x288xf32>
    %207 = arith.addf %200, %206 : vector<4x288xf32>
    %c1_112 = arith.constant 1 : index
    %c36_113 = arith.constant 36 : index
    %208 = vector.load %arg5[%c1_112, %c36_113] : memref<4x326xf32, #tpu.memory_space<vmem>>, vector<1x288xf32>
    %c15 = arith.constant 15 : index
    %c0_114 = arith.constant 0 : index
    %c0_115 = arith.constant 0 : index
    %209 = vector.load %arg2[%c15, %c0_114, %c0_115] : memref<36x4x1xf32, #tpu.memory_space<vmem>>, vector<1x4x1xf32>
    %210 = vector.shape_cast %209 : vector<1x4x1xf32> to vector<4x1xf32>
    %211 = vector.broadcast %210 : vector<4x1xf32> to vector<4x288xf32>
    %212 = vector.broadcast %208 : vector<1x288xf32> to vector<4x288xf32>
    %213 = arith.mulf %211, %212 : vector<4x288xf32>
    %214 = arith.addf %207, %213 : vector<4x288xf32>
    %c1_116 = arith.constant 1 : index
    %c37_117 = arith.constant 37 : index
    %215 = vector.load %arg5[%c1_116, %c37_117] : memref<4x326xf32, #tpu.memory_space<vmem>>, vector<1x288xf32>
    %c16_118 = arith.constant 16 : index
    %c0_119 = arith.constant 0 : index
    %c0_120 = arith.constant 0 : index
    %216 = vector.load %arg2[%c16_118, %c0_119, %c0_120] : memref<36x4x1xf32, #tpu.memory_space<vmem>>, vector<1x4x1xf32>
    %217 = vector.shape_cast %216 : vector<1x4x1xf32> to vector<4x1xf32>
    %218 = vector.broadcast %217 : vector<4x1xf32> to vector<4x288xf32>
    %219 = vector.broadcast %215 : vector<1x288xf32> to vector<4x288xf32>
    %220 = arith.mulf %218, %219 : vector<4x288xf32>
    %221 = arith.addf %214, %220 : vector<4x288xf32>
    %c1_121 = arith.constant 1 : index
    %c38_122 = arith.constant 38 : index
    %222 = vector.load %arg5[%c1_121, %c38_122] : memref<4x326xf32, #tpu.memory_space<vmem>>, vector<1x288xf32>
    %c17 = arith.constant 17 : index
    %c0_123 = arith.constant 0 : index
    %c0_124 = arith.constant 0 : index
    %223 = vector.load %arg2[%c17, %c0_123, %c0_124] : memref<36x4x1xf32, #tpu.memory_space<vmem>>, vector<1x4x1xf32>
    %224 = vector.shape_cast %223 : vector<1x4x1xf32> to vector<4x1xf32>
    %225 = vector.broadcast %224 : vector<4x1xf32> to vector<4x288xf32>
    %226 = vector.broadcast %222 : vector<1x288xf32> to vector<4x288xf32>
    %227 = arith.mulf %225, %226 : vector<4x288xf32>
    %228 = arith.addf %221, %227 : vector<4x288xf32>
    %c2_125 = arith.constant 2 : index
    %c0_126 = arith.constant 0 : index
    %229 = vector.load %arg5[%c2_125, %c0_126] : memref<4x326xf32, #tpu.memory_space<vmem>>, vector<1x288xf32>
    %c18_127 = arith.constant 18 : index
    %c0_128 = arith.constant 0 : index
    %c0_129 = arith.constant 0 : index
    %230 = vector.load %arg2[%c18_127, %c0_128, %c0_129] : memref<36x4x1xf32, #tpu.memory_space<vmem>>, vector<1x4x1xf32>
    %231 = vector.shape_cast %230 : vector<1x4x1xf32> to vector<4x1xf32>
    %232 = vector.broadcast %231 : vector<4x1xf32> to vector<4x288xf32>
    %233 = vector.broadcast %229 : vector<1x288xf32> to vector<4x288xf32>
    %234 = arith.mulf %232, %233 : vector<4x288xf32>
    %235 = arith.addf %228, %234 : vector<4x288xf32>
    %c2_130 = arith.constant 2 : index
    %c1_131 = arith.constant 1 : index
    %236 = vector.load %arg5[%c2_130, %c1_131] : memref<4x326xf32, #tpu.memory_space<vmem>>, vector<1x288xf32>
    %c19_132 = arith.constant 19 : index
    %c0_133 = arith.constant 0 : index
    %c0_134 = arith.constant 0 : index
    %237 = vector.load %arg2[%c19_132, %c0_133, %c0_134] : memref<36x4x1xf32, #tpu.memory_space<vmem>>, vector<1x4x1xf32>
    %238 = vector.shape_cast %237 : vector<1x4x1xf32> to vector<4x1xf32>
    %239 = vector.broadcast %238 : vector<4x1xf32> to vector<4x288xf32>
    %240 = vector.broadcast %236 : vector<1x288xf32> to vector<4x288xf32>
    %241 = arith.mulf %239, %240 : vector<4x288xf32>
    %242 = arith.addf %235, %241 : vector<4x288xf32>
    %c2_135 = arith.constant 2 : index
    %c2_136 = arith.constant 2 : index
    %243 = vector.load %arg5[%c2_135, %c2_136] : memref<4x326xf32, #tpu.memory_space<vmem>>, vector<1x288xf32>
    %c20_137 = arith.constant 20 : index
    %c0_138 = arith.constant 0 : index
    %c0_139 = arith.constant 0 : index
    %244 = vector.load %arg2[%c20_137, %c0_138, %c0_139] : memref<36x4x1xf32, #tpu.memory_space<vmem>>, vector<1x4x1xf32>
    %245 = vector.shape_cast %244 : vector<1x4x1xf32> to vector<4x1xf32>
    %246 = vector.broadcast %245 : vector<4x1xf32> to vector<4x288xf32>
    %247 = vector.broadcast %243 : vector<1x288xf32> to vector<4x288xf32>
    %248 = arith.mulf %246, %247 : vector<4x288xf32>
    %249 = arith.addf %242, %248 : vector<4x288xf32>
    %c2_140 = arith.constant 2 : index
    %c18_141 = arith.constant 18 : index
    %250 = vector.load %arg5[%c2_140, %c18_141] : memref<4x326xf32, #tpu.memory_space<vmem>>, vector<1x288xf32>
    %c21 = arith.constant 21 : index
    %c0_142 = arith.constant 0 : index
    %c0_143 = arith.constant 0 : index
    %251 = vector.load %arg2[%c21, %c0_142, %c0_143] : memref<36x4x1xf32, #tpu.memory_space<vmem>>, vector<1x4x1xf32>
    %252 = vector.shape_cast %251 : vector<1x4x1xf32> to vector<4x1xf32>
    %253 = vector.broadcast %252 : vector<4x1xf32> to vector<4x288xf32>
    %254 = vector.broadcast %250 : vector<1x288xf32> to vector<4x288xf32>
    %255 = arith.mulf %253, %254 : vector<4x288xf32>
    %256 = arith.addf %249, %255 : vector<4x288xf32>
    %c2_144 = arith.constant 2 : index
    %c19_145 = arith.constant 19 : index
    %257 = vector.load %arg5[%c2_144, %c19_145] : memref<4x326xf32, #tpu.memory_space<vmem>>, vector<1x288xf32>
    %c22 = arith.constant 22 : index
    %c0_146 = arith.constant 0 : index
    %c0_147 = arith.constant 0 : index
    %258 = vector.load %arg2[%c22, %c0_146, %c0_147] : memref<36x4x1xf32, #tpu.memory_space<vmem>>, vector<1x4x1xf32>
    %259 = vector.shape_cast %258 : vector<1x4x1xf32> to vector<4x1xf32>
    %260 = vector.broadcast %259 : vector<4x1xf32> to vector<4x288xf32>
    %261 = vector.broadcast %257 : vector<1x288xf32> to vector<4x288xf32>
    %262 = arith.mulf %260, %261 : vector<4x288xf32>
    %263 = arith.addf %256, %262 : vector<4x288xf32>
    %c2_148 = arith.constant 2 : index
    %c20_149 = arith.constant 20 : index
    %264 = vector.load %arg5[%c2_148, %c20_149] : memref<4x326xf32, #tpu.memory_space<vmem>>, vector<1x288xf32>
    %c23 = arith.constant 23 : index
    %c0_150 = arith.constant 0 : index
    %c0_151 = arith.constant 0 : index
    %265 = vector.load %arg2[%c23, %c0_150, %c0_151] : memref<36x4x1xf32, #tpu.memory_space<vmem>>, vector<1x4x1xf32>
    %266 = vector.shape_cast %265 : vector<1x4x1xf32> to vector<4x1xf32>
    %267 = vector.broadcast %266 : vector<4x1xf32> to vector<4x288xf32>
    %268 = vector.broadcast %264 : vector<1x288xf32> to vector<4x288xf32>
    %269 = arith.mulf %267, %268 : vector<4x288xf32>
    %270 = arith.addf %263, %269 : vector<4x288xf32>
    %c2_152 = arith.constant 2 : index
    %c36_153 = arith.constant 36 : index
    %271 = vector.load %arg5[%c2_152, %c36_153] : memref<4x326xf32, #tpu.memory_space<vmem>>, vector<1x288xf32>
    %c24 = arith.constant 24 : index
    %c0_154 = arith.constant 0 : index
    %c0_155 = arith.constant 0 : index
    %272 = vector.load %arg2[%c24, %c0_154, %c0_155] : memref<36x4x1xf32, #tpu.memory_space<vmem>>, vector<1x4x1xf32>
    %273 = vector.shape_cast %272 : vector<1x4x1xf32> to vector<4x1xf32>
    %274 = vector.broadcast %273 : vector<4x1xf32> to vector<4x288xf32>
    %275 = vector.broadcast %271 : vector<1x288xf32> to vector<4x288xf32>
    %276 = arith.mulf %274, %275 : vector<4x288xf32>
    %277 = arith.addf %270, %276 : vector<4x288xf32>
    %c2_156 = arith.constant 2 : index
    %c37_157 = arith.constant 37 : index
    %278 = vector.load %arg5[%c2_156, %c37_157] : memref<4x326xf32, #tpu.memory_space<vmem>>, vector<1x288xf32>
    %c25 = arith.constant 25 : index
    %c0_158 = arith.constant 0 : index
    %c0_159 = arith.constant 0 : index
    %279 = vector.load %arg2[%c25, %c0_158, %c0_159] : memref<36x4x1xf32, #tpu.memory_space<vmem>>, vector<1x4x1xf32>
    %280 = vector.shape_cast %279 : vector<1x4x1xf32> to vector<4x1xf32>
    %281 = vector.broadcast %280 : vector<4x1xf32> to vector<4x288xf32>
    %282 = vector.broadcast %278 : vector<1x288xf32> to vector<4x288xf32>
    %283 = arith.mulf %281, %282 : vector<4x288xf32>
    %284 = arith.addf %277, %283 : vector<4x288xf32>
    %c2_160 = arith.constant 2 : index
    %c38_161 = arith.constant 38 : index
    %285 = vector.load %arg5[%c2_160, %c38_161] : memref<4x326xf32, #tpu.memory_space<vmem>>, vector<1x288xf32>
    %c26 = arith.constant 26 : index
    %c0_162 = arith.constant 0 : index
    %c0_163 = arith.constant 0 : index
    %286 = vector.load %arg2[%c26, %c0_162, %c0_163] : memref<36x4x1xf32, #tpu.memory_space<vmem>>, vector<1x4x1xf32>
    %287 = vector.shape_cast %286 : vector<1x4x1xf32> to vector<4x1xf32>
    %288 = vector.broadcast %287 : vector<4x1xf32> to vector<4x288xf32>
    %289 = vector.broadcast %285 : vector<1x288xf32> to vector<4x288xf32>
    %290 = arith.mulf %288, %289 : vector<4x288xf32>
    %291 = arith.addf %284, %290 : vector<4x288xf32>
    %c3_164 = arith.constant 3 : index
    %c0_165 = arith.constant 0 : index
    %292 = vector.load %arg5[%c3_164, %c0_165] : memref<4x326xf32, #tpu.memory_space<vmem>>, vector<1x288xf32>
    %c27 = arith.constant 27 : index
    %c0_166 = arith.constant 0 : index
    %c0_167 = arith.constant 0 : index
    %293 = vector.load %arg2[%c27, %c0_166, %c0_167] : memref<36x4x1xf32, #tpu.memory_space<vmem>>, vector<1x4x1xf32>
    %294 = vector.shape_cast %293 : vector<1x4x1xf32> to vector<4x1xf32>
    %295 = vector.broadcast %294 : vector<4x1xf32> to vector<4x288xf32>
    %296 = vector.broadcast %292 : vector<1x288xf32> to vector<4x288xf32>
    %297 = arith.mulf %295, %296 : vector<4x288xf32>
    %298 = arith.addf %291, %297 : vector<4x288xf32>
    %c3_168 = arith.constant 3 : index
    %c1_169 = arith.constant 1 : index
    %299 = vector.load %arg5[%c3_168, %c1_169] : memref<4x326xf32, #tpu.memory_space<vmem>>, vector<1x288xf32>
    %c28 = arith.constant 28 : index
    %c0_170 = arith.constant 0 : index
    %c0_171 = arith.constant 0 : index
    %300 = vector.load %arg2[%c28, %c0_170, %c0_171] : memref<36x4x1xf32, #tpu.memory_space<vmem>>, vector<1x4x1xf32>
    %301 = vector.shape_cast %300 : vector<1x4x1xf32> to vector<4x1xf32>
    %302 = vector.broadcast %301 : vector<4x1xf32> to vector<4x288xf32>
    %303 = vector.broadcast %299 : vector<1x288xf32> to vector<4x288xf32>
    %304 = arith.mulf %302, %303 : vector<4x288xf32>
    %305 = arith.addf %298, %304 : vector<4x288xf32>
    %c3_172 = arith.constant 3 : index
    %c2_173 = arith.constant 2 : index
    %306 = vector.load %arg5[%c3_172, %c2_173] : memref<4x326xf32, #tpu.memory_space<vmem>>, vector<1x288xf32>
    %c29 = arith.constant 29 : index
    %c0_174 = arith.constant 0 : index
    %c0_175 = arith.constant 0 : index
    %307 = vector.load %arg2[%c29, %c0_174, %c0_175] : memref<36x4x1xf32, #tpu.memory_space<vmem>>, vector<1x4x1xf32>
    %308 = vector.shape_cast %307 : vector<1x4x1xf32> to vector<4x1xf32>
    %309 = vector.broadcast %308 : vector<4x1xf32> to vector<4x288xf32>
    %310 = vector.broadcast %306 : vector<1x288xf32> to vector<4x288xf32>
    %311 = arith.mulf %309, %310 : vector<4x288xf32>
    %312 = arith.addf %305, %311 : vector<4x288xf32>
    %c3_176 = arith.constant 3 : index
    %c18_177 = arith.constant 18 : index
    %313 = vector.load %arg5[%c3_176, %c18_177] : memref<4x326xf32, #tpu.memory_space<vmem>>, vector<1x288xf32>
    %c30 = arith.constant 30 : index
    %c0_178 = arith.constant 0 : index
    %c0_179 = arith.constant 0 : index
    %314 = vector.load %arg2[%c30, %c0_178, %c0_179] : memref<36x4x1xf32, #tpu.memory_space<vmem>>, vector<1x4x1xf32>
    %315 = vector.shape_cast %314 : vector<1x4x1xf32> to vector<4x1xf32>
    %316 = vector.broadcast %315 : vector<4x1xf32> to vector<4x288xf32>
    %317 = vector.broadcast %313 : vector<1x288xf32> to vector<4x288xf32>
    %318 = arith.mulf %316, %317 : vector<4x288xf32>
    %319 = arith.addf %312, %318 : vector<4x288xf32>
    %c3_180 = arith.constant 3 : index
    %c19_181 = arith.constant 19 : index
    %320 = vector.load %arg5[%c3_180, %c19_181] : memref<4x326xf32, #tpu.memory_space<vmem>>, vector<1x288xf32>
    %c31 = arith.constant 31 : index
    %c0_182 = arith.constant 0 : index
    %c0_183 = arith.constant 0 : index
    %321 = vector.load %arg2[%c31, %c0_182, %c0_183] : memref<36x4x1xf32, #tpu.memory_space<vmem>>, vector<1x4x1xf32>
    %322 = vector.shape_cast %321 : vector<1x4x1xf32> to vector<4x1xf32>
    %323 = vector.broadcast %322 : vector<4x1xf32> to vector<4x288xf32>
    %324 = vector.broadcast %320 : vector<1x288xf32> to vector<4x288xf32>
    %325 = arith.mulf %323, %324 : vector<4x288xf32>
    %326 = arith.addf %319, %325 : vector<4x288xf32>
    %c3_184 = arith.constant 3 : index
    %c20_185 = arith.constant 20 : index
    %327 = vector.load %arg5[%c3_184, %c20_185] : memref<4x326xf32, #tpu.memory_space<vmem>>, vector<1x288xf32>
    %c32_186 = arith.constant 32 : index
    %c0_187 = arith.constant 0 : index
    %c0_188 = arith.constant 0 : index
    %328 = vector.load %arg2[%c32_186, %c0_187, %c0_188] : memref<36x4x1xf32, #tpu.memory_space<vmem>>, vector<1x4x1xf32>
    %329 = vector.shape_cast %328 : vector<1x4x1xf32> to vector<4x1xf32>
    %330 = vector.broadcast %329 : vector<4x1xf32> to vector<4x288xf32>
    %331 = vector.broadcast %327 : vector<1x288xf32> to vector<4x288xf32>
    %332 = arith.mulf %330, %331 : vector<4x288xf32>
    %333 = arith.addf %326, %332 : vector<4x288xf32>
    %c3_189 = arith.constant 3 : index
    %c36_190 = arith.constant 36 : index
    %334 = vector.load %arg5[%c3_189, %c36_190] : memref<4x326xf32, #tpu.memory_space<vmem>>, vector<1x288xf32>
    %c33 = arith.constant 33 : index
    %c0_191 = arith.constant 0 : index
    %c0_192 = arith.constant 0 : index
    %335 = vector.load %arg2[%c33, %c0_191, %c0_192] : memref<36x4x1xf32, #tpu.memory_space<vmem>>, vector<1x4x1xf32>
    %336 = vector.shape_cast %335 : vector<1x4x1xf32> to vector<4x1xf32>
    %337 = vector.broadcast %336 : vector<4x1xf32> to vector<4x288xf32>
    %338 = vector.broadcast %334 : vector<1x288xf32> to vector<4x288xf32>
    %339 = arith.mulf %337, %338 : vector<4x288xf32>
    %340 = arith.addf %333, %339 : vector<4x288xf32>
    %c3_193 = arith.constant 3 : index
    %c37_194 = arith.constant 37 : index
    %341 = vector.load %arg5[%c3_193, %c37_194] : memref<4x326xf32, #tpu.memory_space<vmem>>, vector<1x288xf32>
    %c34 = arith.constant 34 : index
    %c0_195 = arith.constant 0 : index
    %c0_196 = arith.constant 0 : index
    %342 = vector.load %arg2[%c34, %c0_195, %c0_196] : memref<36x4x1xf32, #tpu.memory_space<vmem>>, vector<1x4x1xf32>
    %343 = vector.shape_cast %342 : vector<1x4x1xf32> to vector<4x1xf32>
    %344 = vector.broadcast %343 : vector<4x1xf32> to vector<4x288xf32>
    %345 = vector.broadcast %341 : vector<1x288xf32> to vector<4x288xf32>
    %346 = arith.mulf %344, %345 : vector<4x288xf32>
    %347 = arith.addf %340, %346 : vector<4x288xf32>
    %c3_197 = arith.constant 3 : index
    %c38_198 = arith.constant 38 : index
    %348 = vector.load %arg5[%c3_197, %c38_198] : memref<4x326xf32, #tpu.memory_space<vmem>>, vector<1x288xf32>
    %c35 = arith.constant 35 : index
    %c0_199 = arith.constant 0 : index
    %c0_200 = arith.constant 0 : index
    %349 = vector.load %arg2[%c35, %c0_199, %c0_200] : memref<36x4x1xf32, #tpu.memory_space<vmem>>, vector<1x4x1xf32>
    %350 = vector.shape_cast %349 : vector<1x4x1xf32> to vector<4x1xf32>
    %351 = vector.broadcast %350 : vector<4x1xf32> to vector<4x288xf32>
    %352 = vector.broadcast %348 : vector<1x288xf32> to vector<4x288xf32>
    %353 = arith.mulf %351, %352 : vector<4x288xf32>
    %354 = arith.addf %347, %353 : vector<4x288xf32>
    %cst_201 = arith.constant 2.000000e-01 : f32
    %355 = vector.broadcast %cst_201 : f32 to vector<4x288xf32>
    %356 = arith.mulf %355, %354 : vector<4x288xf32>
    %357 = arith.maximumf %354, %356 : vector<4x288xf32>
    %c0_202 = arith.constant 0 : index
    %c0_203 = arith.constant 0 : index
    %c0_204 = arith.constant 0 : index
    %358 = vector.load %arg4[%c0_202, %c0_203, %c0_204] : memref<2x4x288xf32, #tpu.memory_space<vmem>>, vector<1x4x288xf32>
    %359 = vector.shape_cast %358 : vector<1x4x288xf32> to vector<4x288xf32>
    %360 = vector.shape_cast %357 : vector<4x288xf32> to vector<1x4x288xf32>
    tpu.vector_store %arg4[%c0_202, %c0_203, %c0_204], %360 {strides = array<i32>} : memref<2x4x288xf32, #tpu.memory_space<vmem>>, vector<1x4x288xf32>,
    %c1_205 = arith.constant 1 : index
    %c0_206 = arith.constant 0 : index
    %c0_207 = arith.constant 0 : index
    %361 = vector.load %arg1[%c1_205, %c0_206, %c0_207] : memref<2x4x256xf32, #tpu.memory_space<vmem>>, vector<1x4x16xf32>
    %362 = vector.shape_cast %361 : vector<1x4x16xf32> to vector<4x16xf32>
    %363 = vector.extract_strided_slice %362 {offsets = [0, 1], sizes = [4, 1], strides = [1, 1]} : vector<4x16xf32> to vector<4x1xf32>
    %364 = vector.extract_strided_slice %362 {offsets = [0, 14], sizes = [4, 1], strides = [1, 1]} : vector<4x16xf32> to vector<4x1xf32>
    %365 = tpu.concatenate %363, %362, %364 in 1 : vector<4x1xf32>, vector<4x16xf32>, vector<4x1xf32> -> vector<4x18xf32>
    %c0_208 = arith.constant 0 : index
    %c18_209 = arith.constant 18 : index
    %366 = vector.load %arg5[%c0_208, %c18_209] : memref<4x326xf32, #tpu.memory_space<vmem>>, vector<4x18xf32>
    tpu.vector_store %arg5[%c0_208, %c18_209], %365 {strides = array<i32>} : memref<4x326xf32, #tpu.memory_space<vmem>>, vector<4x18xf32>,
    %c1_210 = arith.constant 1 : index
    %c0_211 = arith.constant 0 : index
    %c16_212 = arith.constant 16 : index
    %367 = vector.load %arg1[%c1_210, %c0_211, %c16_212] : memref<2x4x256xf32, #tpu.memory_space<vmem>>, vector<1x4x16xf32>
    %368 = vector.shape_cast %367 : vector<1x4x16xf32> to vector<4x16xf32>
    %369 = vector.extract_strided_slice %368 {offsets = [0, 1], sizes = [4, 1], strides = [1, 1]} : vector<4x16xf32> to vector<4x1xf32>
    %370 = vector.extract_strided_slice %368 {offsets = [0, 14], sizes = [4, 1], strides = [1, 1]} : vector<4x16xf32> to vector<4x1xf32>
    %371 = tpu.concatenate %369, %368, %370 in 1 : vector<4x1xf32>, vector<4x16xf32>, vector<4x1xf32> -> vector<4x18xf32>
    %c0_213 = arith.constant 0 : index
    %c36_214 = arith.constant 36 : index
    %372 = vector.load %arg5[%c0_213, %c36_214] : memref<4x326xf32, #tpu.memory_space<vmem>>, vector<4x18xf32>
    tpu.vector_store %arg5[%c0_213, %c36_214], %371 {strides = array<i32>} : memref<4x326xf32, #tpu.memory_space<vmem>>, vector<4x18xf32>,
    %c0_215 = arith.constant 0 : index
    %c0_216 = arith.constant 0 : index
    %373 = vector.load %arg5[%c0_215, %c0_216] : memref<4x326xf32, #tpu.memory_space<vmem>>, vector<4x18xf32>
    tpu.vector_store %arg5[%c0_215, %c0_216], %371 {strides = array<i32>} : memref<4x326xf32, #tpu.memory_space<vmem>>, vector<4x18xf32>,
    %c1_217 = arith.constant 1 : index
    %c0_218 = arith.constant 0 : index
    %c32_219 = arith.constant 32 : index
    %374 = vector.load %arg1[%c1_217, %c0_218, %c32_219] : memref<2x4x256xf32, #tpu.memory_space<vmem>>, vector<1x4x16xf32>
    %375 = vector.shape_cast %374 : vector<1x4x16xf32> to vector<4x16xf32>
    %376 = vector.extract_strided_slice %375 {offsets = [0, 1], sizes = [4, 1], strides = [1, 1]} : vector<4x16xf32> to vector<4x1xf32>
    %377 = vector.extract_strided_slice %375 {offsets = [0, 14], sizes = [4, 1], strides = [1, 1]} : vector<4x16xf32> to vector<4x1xf32>
    %378 = tpu.concatenate %376, %375, %377 in 1 : vector<4x1xf32>, vector<4x16xf32>, vector<4x1xf32> -> vector<4x18xf32>
    %c0_220 = arith.constant 0 : index
    %c54_221 = arith.constant 54 : index
    %379 = vector.load %arg5[%c0_220, %c54_221] : memref<4x326xf32, #tpu.memory_space<vmem>>, vector<4x18xf32>
    tpu.vector_store %arg5[%c0_220, %c54_221], %378 {strides = array<i32>} : memref<4x326xf32, #tpu.memory_space<vmem>>, vector<4x18xf32>,
    %c1_222 = arith.constant 1 : index
    %c0_223 = arith.constant 0 : index
    %c48_224 = arith.constant 48 : index
    %380 = vector.load %arg1[%c1_222, %c0_223, %c48_224] : memref<2x4x256xf32, #tpu.memory_space<vmem>>, vector<1x4x16xf32>
    %381 = vector.shape_cast %380 : vector<1x4x16xf32> to vector<4x16xf32>
    %382 = vector.extract_strided_slice %381 {offsets = [0, 1], sizes = [4, 1], strides = [1, 1]} : vector<4x16xf32> to vector<4x1xf32>
    %383 = vector.extract_strided_slice %381 {offsets = [0, 14], sizes = [4, 1], strides = [1, 1]} : vector<4x16xf32> to vector<4x1xf32>
    %384 = tpu.concatenate %382, %381, %383 in 1 : vector<4x1xf32>, vector<4x16xf32>, vector<4x1xf32> -> vector<4x18xf32>
    %c0_225 = arith.constant 0 : index
    %c72_226 = arith.constant 72 : index
    %385 = vector.load %arg5[%c0_225, %c72_226] : memref<4x326xf32, #tpu.memory_space<vmem>>, vector<4x18xf32>
    tpu.vector_store %arg5[%c0_225, %c72_226], %384 {strides = array<i32>} : memref<4x326xf32, #tpu.memory_space<vmem>>, vector<4x18xf32>,
    %c1_227 = arith.constant 1 : index
    %c0_228 = arith.constant 0 : index
    %c64_229 = arith.constant 64 : index
    %386 = vector.load %arg1[%c1_227, %c0_228, %c64_229] : memref<2x4x256xf32, #tpu.memory_space<vmem>>, vector<1x4x16xf32>
    %387 = vector.shape_cast %386 : vector<1x4x16xf32> to vector<4x16xf32>
    %388 = vector.extract_strided_slice %387 {offsets = [0, 1], sizes = [4, 1], strides = [1, 1]} : vector<4x16xf32> to vector<4x1xf32>
    %389 = vector.extract_strided_slice %387 {offsets = [0, 14], sizes = [4, 1], strides = [1, 1]} : vector<4x16xf32> to vector<4x1xf32>
    %390 = tpu.concatenate %388, %387, %389 in 1 : vector<4x1xf32>, vector<4x16xf32>, vector<4x1xf32> -> vector<4x18xf32>
    %c0_230 = arith.constant 0 : index
    %c90_231 = arith.constant 90 : index
    %391 = vector.load %arg5[%c0_230, %c90_231] : memref<4x326xf32, #tpu.memory_space<vmem>>, vector<4x18xf32>
    tpu.vector_store %arg5[%c0_230, %c90_231], %390 {strides = array<i32>} : memref<4x326xf32, #tpu.memory_space<vmem>>, vector<4x18xf32>,
    %c1_232 = arith.constant 1 : index
    %c0_233 = arith.constant 0 : index
    %c80_234 = arith.constant 80 : index
    %392 = vector.load %arg1[%c1_232, %c0_233, %c80_234] : memref<2x4x256xf32, #tpu.memory_space<vmem>>, vector<1x4x16xf32>
    %393 = vector.shape_cast %392 : vector<1x4x16xf32> to vector<4x16xf32>
    %394 = vector.extract_strided_slice %393 {offsets = [0, 1], sizes = [4, 1], strides = [1, 1]} : vector<4x16xf32> to vector<4x1xf32>
    %395 = vector.extract_strided_slice %393 {offsets = [0, 14], sizes = [4, 1], strides = [1, 1]} : vector<4x16xf32> to vector<4x1xf32>
    %396 = tpu.concatenate %394, %393, %395 in 1 : vector<4x1xf32>, vector<4x16xf32>, vector<4x1xf32> -> vector<4x18xf32>
    %c0_235 = arith.constant 0 : index
    %c108_236 = arith.constant 108 : index
    %397 = vector.load %arg5[%c0_235, %c108_236] : memref<4x326xf32, #tpu.memory_space<vmem>>, vector<4x18xf32>
    tpu.vector_store %arg5[%c0_235, %c108_236], %396 {strides = array<i32>} : memref<4x326xf32, #tpu.memory_space<vmem>>, vector<4x18xf32>,
    %c1_237 = arith.constant 1 : index
    %c0_238 = arith.constant 0 : index
    %c96_239 = arith.constant 96 : index
    %398 = vector.load %arg1[%c1_237, %c0_238, %c96_239] : memref<2x4x256xf32, #tpu.memory_space<vmem>>, vector<1x4x16xf32>
    %399 = vector.shape_cast %398 : vector<1x4x16xf32> to vector<4x16xf32>
    %400 = vector.extract_strided_slice %399 {offsets = [0, 1], sizes = [4, 1], strides = [1, 1]} : vector<4x16xf32> to vector<4x1xf32>
    %401 = vector.extract_strided_slice %399 {offsets = [0, 14], sizes = [4, 1], strides = [1, 1]} : vector<4x16xf32> to vector<4x1xf32>
    %402 = tpu.concatenate %400, %399, %401 in 1 : vector<4x1xf32>, vector<4x16xf32>, vector<4x1xf32> -> vector<4x18xf32>
    %c0_240 = arith.constant 0 : index
    %c126_241 = arith.constant 126 : index
    %403 = vector.load %arg5[%c0_240, %c126_241] : memref<4x326xf32, #tpu.memory_space<vmem>>, vector<4x18xf32>
    tpu.vector_store %arg5[%c0_240, %c126_241], %402 {strides = array<i32>} : memref<4x326xf32, #tpu.memory_space<vmem>>, vector<4x18xf32>,
    %c1_242 = arith.constant 1 : index
    %c0_243 = arith.constant 0 : index
    %c112_244 = arith.constant 112 : index
    %404 = vector.load %arg1[%c1_242, %c0_243, %c112_244] : memref<2x4x256xf32, #tpu.memory_space<vmem>>, vector<1x4x16xf32>
    %405 = vector.shape_cast %404 : vector<1x4x16xf32> to vector<4x16xf32>
    %406 = vector.extract_strided_slice %405 {offsets = [0, 1], sizes = [4, 1], strides = [1, 1]} : vector<4x16xf32> to vector<4x1xf32>
    %407 = vector.extract_strided_slice %405 {offsets = [0, 14], sizes = [4, 1], strides = [1, 1]} : vector<4x16xf32> to vector<4x1xf32>
    %408 = tpu.concatenate %406, %405, %407 in 1 : vector<4x1xf32>, vector<4x16xf32>, vector<4x1xf32> -> vector<4x18xf32>
    %c0_245 = arith.constant 0 : index
    %c144_246 = arith.constant 144 : index
    %409 = vector.load %arg5[%c0_245, %c144_246] : memref<4x326xf32, #tpu.memory_space<vmem>>, vector<4x18xf32>
    tpu.vector_store %arg5[%c0_245, %c144_246], %408 {strides = array<i32>} : memref<4x326xf32, #tpu.memory_space<vmem>>, vector<4x18xf32>,
    %c1_247 = arith.constant 1 : index
    %c0_248 = arith.constant 0 : index
    %c128_249 = arith.constant 128 : index
    %410 = vector.load %arg1[%c1_247, %c0_248, %c128_249] : memref<2x4x256xf32, #tpu.memory_space<vmem>>, vector<1x4x16xf32>
    %411 = vector.shape_cast %410 : vector<1x4x16xf32> to vector<4x16xf32>
    %412 = vector.extract_strided_slice %411 {offsets = [0, 1], sizes = [4, 1], strides = [1, 1]} : vector<4x16xf32> to vector<4x1xf32>
    %413 = vector.extract_strided_slice %411 {offsets = [0, 14], sizes = [4, 1], strides = [1, 1]} : vector<4x16xf32> to vector<4x1xf32>
    %414 = tpu.concatenate %412, %411, %413 in 1 : vector<4x1xf32>, vector<4x16xf32>, vector<4x1xf32> -> vector<4x18xf32>
    %c0_250 = arith.constant 0 : index
    %c162_251 = arith.constant 162 : index
    %415 = vector.load %arg5[%c0_250, %c162_251] : memref<4x326xf32, #tpu.memory_space<vmem>>, vector<4x18xf32>
    tpu.vector_store %arg5[%c0_250, %c162_251], %414 {strides = array<i32>} : memref<4x326xf32, #tpu.memory_space<vmem>>, vector<4x18xf32>,
    %c1_252 = arith.constant 1 : index
    %c0_253 = arith.constant 0 : index
    %c144_254 = arith.constant 144 : index
    %416 = vector.load %arg1[%c1_252, %c0_253, %c144_254] : memref<2x4x256xf32, #tpu.memory_space<vmem>>, vector<1x4x16xf32>
    %417 = vector.shape_cast %416 : vector<1x4x16xf32> to vector<4x16xf32>
    %418 = vector.extract_strided_slice %417 {offsets = [0, 1], sizes = [4, 1], strides = [1, 1]} : vector<4x16xf32> to vector<4x1xf32>
    %419 = vector.extract_strided_slice %417 {offsets = [0, 14], sizes = [4, 1], strides = [1, 1]} : vector<4x16xf32> to vector<4x1xf32>
    %420 = tpu.concatenate %418, %417, %419 in 1 : vector<4x1xf32>, vector<4x16xf32>, vector<4x1xf32> -> vector<4x18xf32>
    %c0_255 = arith.constant 0 : index
    %c180_256 = arith.constant 180 : index
    %421 = vector.load %arg5[%c0_255, %c180_256] : memref<4x326xf32, #tpu.memory_space<vmem>>, vector<4x18xf32>
    tpu.vector_store %arg5[%c0_255, %c180_256], %420 {strides = array<i32>} : memref<4x326xf32, #tpu.memory_space<vmem>>, vector<4x18xf32>,
    %c1_257 = arith.constant 1 : index
    %c0_258 = arith.constant 0 : index
    %c160_259 = arith.constant 160 : index
    %422 = vector.load %arg1[%c1_257, %c0_258, %c160_259] : memref<2x4x256xf32, #tpu.memory_space<vmem>>, vector<1x4x16xf32>
    %423 = vector.shape_cast %422 : vector<1x4x16xf32> to vector<4x16xf32>
    %424 = vector.extract_strided_slice %423 {offsets = [0, 1], sizes = [4, 1], strides = [1, 1]} : vector<4x16xf32> to vector<4x1xf32>
    %425 = vector.extract_strided_slice %423 {offsets = [0, 14], sizes = [4, 1], strides = [1, 1]} : vector<4x16xf32> to vector<4x1xf32>
    %426 = tpu.concatenate %424, %423, %425 in 1 : vector<4x1xf32>, vector<4x16xf32>, vector<4x1xf32> -> vector<4x18xf32>
    %c0_260 = arith.constant 0 : index
    %c198_261 = arith.constant 198 : index
    %427 = vector.load %arg5[%c0_260, %c198_261] : memref<4x326xf32, #tpu.memory_space<vmem>>, vector<4x18xf32>
    tpu.vector_store %arg5[%c0_260, %c198_261], %426 {strides = array<i32>} : memref<4x326xf32, #tpu.memory_space<vmem>>, vector<4x18xf32>,
    %c1_262 = arith.constant 1 : index
    %c0_263 = arith.constant 0 : index
    %c176_264 = arith.constant 176 : index
    %428 = vector.load %arg1[%c1_262, %c0_263, %c176_264] : memref<2x4x256xf32, #tpu.memory_space<vmem>>, vector<1x4x16xf32>
    %429 = vector.shape_cast %428 : vector<1x4x16xf32> to vector<4x16xf32>
    %430 = vector.extract_strided_slice %429 {offsets = [0, 1], sizes = [4, 1], strides = [1, 1]} : vector<4x16xf32> to vector<4x1xf32>
    %431 = vector.extract_strided_slice %429 {offsets = [0, 14], sizes = [4, 1], strides = [1, 1]} : vector<4x16xf32> to vector<4x1xf32>
    %432 = tpu.concatenate %430, %429, %431 in 1 : vector<4x1xf32>, vector<4x16xf32>, vector<4x1xf32> -> vector<4x18xf32>
    %c0_265 = arith.constant 0 : index
    %c216_266 = arith.constant 216 : index
    %433 = vector.load %arg5[%c0_265, %c216_266] : memref<4x326xf32, #tpu.memory_space<vmem>>, vector<4x18xf32>
    tpu.vector_store %arg5[%c0_265, %c216_266], %432 {strides = array<i32>} : memref<4x326xf32, #tpu.memory_space<vmem>>, vector<4x18xf32>,
    %c1_267 = arith.constant 1 : index
    %c0_268 = arith.constant 0 : index
    %c192_269 = arith.constant 192 : index
    %434 = vector.load %arg1[%c1_267, %c0_268, %c192_269] : memref<2x4x256xf32, #tpu.memory_space<vmem>>, vector<1x4x16xf32>
    %435 = vector.shape_cast %434 : vector<1x4x16xf32> to vector<4x16xf32>
    %436 = vector.extract_strided_slice %435 {offsets = [0, 1], sizes = [4, 1], strides = [1, 1]} : vector<4x16xf32> to vector<4x1xf32>
    %437 = vector.extract_strided_slice %435 {offsets = [0, 14], sizes = [4, 1], strides = [1, 1]} : vector<4x16xf32> to vector<4x1xf32>
    %438 = tpu.concatenate %436, %435, %437 in 1 : vector<4x1xf32>, vector<4x16xf32>, vector<4x1xf32> -> vector<4x18xf32>
    %c0_270 = arith.constant 0 : index
    %c234_271 = arith.constant 234 : index
    %439 = vector.load %arg5[%c0_270, %c234_271] : memref<4x326xf32, #tpu.memory_space<vmem>>, vector<4x18xf32>
    tpu.vector_store %arg5[%c0_270, %c234_271], %438 {strides = array<i32>} : memref<4x326xf32, #tpu.memory_space<vmem>>, vector<4x18xf32>,
    %c1_272 = arith.constant 1 : index
    %c0_273 = arith.constant 0 : index
    %c208_274 = arith.constant 208 : index
    %440 = vector.load %arg1[%c1_272, %c0_273, %c208_274] : memref<2x4x256xf32, #tpu.memory_space<vmem>>, vector<1x4x16xf32>
    %441 = vector.shape_cast %440 : vector<1x4x16xf32> to vector<4x16xf32>
    %442 = vector.extract_strided_slice %441 {offsets = [0, 1], sizes = [4, 1], strides = [1, 1]} : vector<4x16xf32> to vector<4x1xf32>
    %443 = vector.extract_strided_slice %441 {offsets = [0, 14], sizes = [4, 1], strides = [1, 1]} : vector<4x16xf32> to vector<4x1xf32>
    %444 = tpu.concatenate %442, %441, %443 in 1 : vector<4x1xf32>, vector<4x16xf32>, vector<4x1xf32> -> vector<4x18xf32>
    %c0_275 = arith.constant 0 : index
    %c252_276 = arith.constant 252 : index
    %445 = vector.load %arg5[%c0_275, %c252_276] : memref<4x326xf32, #tpu.memory_space<vmem>>, vector<4x18xf32>
    tpu.vector_store %arg5[%c0_275, %c252_276], %444 {strides = array<i32>} : memref<4x326xf32, #tpu.memory_space<vmem>>, vector<4x18xf32>,
    %c1_277 = arith.constant 1 : index
    %c0_278 = arith.constant 0 : index
    %c224_279 = arith.constant 224 : index
    %446 = vector.load %arg1[%c1_277, %c0_278, %c224_279] : memref<2x4x256xf32, #tpu.memory_space<vmem>>, vector<1x4x16xf32>
    %447 = vector.shape_cast %446 : vector<1x4x16xf32> to vector<4x16xf32>
    %448 = vector.extract_strided_slice %447 {offsets = [0, 1], sizes = [4, 1], strides = [1, 1]} : vector<4x16xf32> to vector<4x1xf32>
    %449 = vector.extract_strided_slice %447 {offsets = [0, 14], sizes = [4, 1], strides = [1, 1]} : vector<4x16xf32> to vector<4x1xf32>
    %450 = tpu.concatenate %448, %447, %449 in 1 : vector<4x1xf32>, vector<4x16xf32>, vector<4x1xf32> -> vector<4x18xf32>
    %c0_280 = arith.constant 0 : index
    %c270_281 = arith.constant 270 : index
    %451 = vector.load %arg5[%c0_280, %c270_281] : memref<4x326xf32, #tpu.memory_space<vmem>>, vector<4x18xf32>
    tpu.vector_store %arg5[%c0_280, %c270_281], %450 {strides = array<i32>} : memref<4x326xf32, #tpu.memory_space<vmem>>, vector<4x18xf32>,
    %c0_282 = arith.constant 0 : index
    %c306_283 = arith.constant 306 : index
    %452 = vector.load %arg5[%c0_282, %c306_283] : memref<4x326xf32, #tpu.memory_space<vmem>>, vector<4x18xf32>
    tpu.vector_store %arg5[%c0_282, %c306_283], %450 {strides = array<i32>} : memref<4x326xf32, #tpu.memory_space<vmem>>, vector<4x18xf32>,
    %c1_284 = arith.constant 1 : index
    %c0_285 = arith.constant 0 : index
    %c240_286 = arith.constant 240 : index
    %453 = vector.load %arg1[%c1_284, %c0_285, %c240_286] : memref<2x4x256xf32, #tpu.memory_space<vmem>>, vector<1x4x16xf32>
    %454 = vector.shape_cast %453 : vector<1x4x16xf32> to vector<4x16xf32>
    %455 = vector.extract_strided_slice %454 {offsets = [0, 1], sizes = [4, 1], strides = [1, 1]} : vector<4x16xf32> to vector<4x1xf32>
    %456 = vector.extract_strided_slice %454 {offsets = [0, 14], sizes = [4, 1], strides = [1, 1]} : vector<4x16xf32> to vector<4x1xf32>
    %457 = tpu.concatenate %455, %454, %456 in 1 : vector<4x1xf32>, vector<4x16xf32>, vector<4x1xf32> -> vector<4x18xf32>
    %c0_287 = arith.constant 0 : index
    %c288_288 = arith.constant 288 : index
    %458 = vector.load %arg5[%c0_287, %c288_288] : memref<4x326xf32, #tpu.memory_space<vmem>>, vector<4x18xf32>
    tpu.vector_store %arg5[%c0_287, %c288_288], %457 {strides = array<i32>} : memref<4x326xf32, #tpu.memory_space<vmem>>, vector<4x18xf32>,
    %c0_289 = arith.constant 0 : index
    %c0_290 = arith.constant 0 : index
    %459 = vector.load %arg3[%c0_289, %c0_290] : memref<4x1xf32, #tpu.memory_space<vmem>>, vector<4x1xf32>
    %460 = vector.shape_cast %459 : vector<4x1xf32> to vector<4x1xf32>
    %461 = vector.broadcast %460 : vector<4x1xf32> to vector<4x288xf32>
    %c0_291 = arith.constant 0 : index
    %c0_292 = arith.constant 0 : index
    %462 = vector.load %arg5[%c0_291, %c0_292] : memref<4x326xf32, #tpu.memory_space<vmem>>, vector<1x288xf32>
    %c0_293 = arith.constant 0 : index
    %c0_294 = arith.constant 0 : index
    %c0_295 = arith.constant 0 : index
    %463 = vector.load %arg2[%c0_293, %c0_294, %c0_295] : memref<36x4x1xf32, #tpu.memory_space<vmem>>, vector<1x4x1xf32>
    %464 = vector.shape_cast %463 : vector<1x4x1xf32> to vector<4x1xf32>
    %465 = vector.broadcast %464 : vector<4x1xf32> to vector<4x288xf32>
    %466 = vector.broadcast %462 : vector<1x288xf32> to vector<4x288xf32>
    %467 = arith.mulf %465, %466 : vector<4x288xf32>
    %468 = arith.addf %461, %467 : vector<4x288xf32>
    %c0_296 = arith.constant 0 : index
    %c1_297 = arith.constant 1 : index
    %469 = vector.load %arg5[%c0_296, %c1_297] : memref<4x326xf32, #tpu.memory_space<vmem>>, vector<1x288xf32>
    %c1_298 = arith.constant 1 : index
    %c0_299 = arith.constant 0 : index
    %c0_300 = arith.constant 0 : index
    %470 = vector.load %arg2[%c1_298, %c0_299, %c0_300] : memref<36x4x1xf32, #tpu.memory_space<vmem>>, vector<1x4x1xf32>
    %471 = vector.shape_cast %470 : vector<1x4x1xf32> to vector<4x1xf32>
    %472 = vector.broadcast %471 : vector<4x1xf32> to vector<4x288xf32>
    %473 = vector.broadcast %469 : vector<1x288xf32> to vector<4x288xf32>
    %474 = arith.mulf %472, %473 : vector<4x288xf32>
    %475 = arith.addf %468, %474 : vector<4x288xf32>
    %c0_301 = arith.constant 0 : index
    %c2_302 = arith.constant 2 : index
    %476 = vector.load %arg5[%c0_301, %c2_302] : memref<4x326xf32, #tpu.memory_space<vmem>>, vector<1x288xf32>
    %c2_303 = arith.constant 2 : index
    %c0_304 = arith.constant 0 : index
    %c0_305 = arith.constant 0 : index
    %477 = vector.load %arg2[%c2_303, %c0_304, %c0_305] : memref<36x4x1xf32, #tpu.memory_space<vmem>>, vector<1x4x1xf32>
    %478 = vector.shape_cast %477 : vector<1x4x1xf32> to vector<4x1xf32>
    %479 = vector.broadcast %478 : vector<4x1xf32> to vector<4x288xf32>
    %480 = vector.broadcast %476 : vector<1x288xf32> to vector<4x288xf32>
    %481 = arith.mulf %479, %480 : vector<4x288xf32>
    %482 = arith.addf %475, %481 : vector<4x288xf32>
    %c0_306 = arith.constant 0 : index
    %c18_307 = arith.constant 18 : index
    %483 = vector.load %arg5[%c0_306, %c18_307] : memref<4x326xf32, #tpu.memory_space<vmem>>, vector<1x288xf32>
    %c3_308 = arith.constant 3 : index
    %c0_309 = arith.constant 0 : index
    %c0_310 = arith.constant 0 : index
    %484 = vector.load %arg2[%c3_308, %c0_309, %c0_310] : memref<36x4x1xf32, #tpu.memory_space<vmem>>, vector<1x4x1xf32>
    %485 = vector.shape_cast %484 : vector<1x4x1xf32> to vector<4x1xf32>
    %486 = vector.broadcast %485 : vector<4x1xf32> to vector<4x288xf32>
    %487 = vector.broadcast %483 : vector<1x288xf32> to vector<4x288xf32>
    %488 = arith.mulf %486, %487 : vector<4x288xf32>
    %489 = arith.addf %482, %488 : vector<4x288xf32>
    %c0_311 = arith.constant 0 : index
    %c19_312 = arith.constant 19 : index
    %490 = vector.load %arg5[%c0_311, %c19_312] : memref<4x326xf32, #tpu.memory_space<vmem>>, vector<1x288xf32>
    %c4_313 = arith.constant 4 : index
    %c0_314 = arith.constant 0 : index
    %c0_315 = arith.constant 0 : index
    %491 = vector.load %arg2[%c4_313, %c0_314, %c0_315] : memref<36x4x1xf32, #tpu.memory_space<vmem>>, vector<1x4x1xf32>
    %492 = vector.shape_cast %491 : vector<1x4x1xf32> to vector<4x1xf32>
    %493 = vector.broadcast %492 : vector<4x1xf32> to vector<4x288xf32>
    %494 = vector.broadcast %490 : vector<1x288xf32> to vector<4x288xf32>
    %495 = arith.mulf %493, %494 : vector<4x288xf32>
    %496 = arith.addf %489, %495 : vector<4x288xf32>
    %c0_316 = arith.constant 0 : index
    %c20_317 = arith.constant 20 : index
    %497 = vector.load %arg5[%c0_316, %c20_317] : memref<4x326xf32, #tpu.memory_space<vmem>>, vector<1x288xf32>
    %c5_318 = arith.constant 5 : index
    %c0_319 = arith.constant 0 : index
    %c0_320 = arith.constant 0 : index
    %498 = vector.load %arg2[%c5_318, %c0_319, %c0_320] : memref<36x4x1xf32, #tpu.memory_space<vmem>>, vector<1x4x1xf32>
    %499 = vector.shape_cast %498 : vector<1x4x1xf32> to vector<4x1xf32>
    %500 = vector.broadcast %499 : vector<4x1xf32> to vector<4x288xf32>
    %501 = vector.broadcast %497 : vector<1x288xf32> to vector<4x288xf32>
    %502 = arith.mulf %500, %501 : vector<4x288xf32>
    %503 = arith.addf %496, %502 : vector<4x288xf32>
    %c0_321 = arith.constant 0 : index
    %c36_322 = arith.constant 36 : index
    %504 = vector.load %arg5[%c0_321, %c36_322] : memref<4x326xf32, #tpu.memory_space<vmem>>, vector<1x288xf32>
    %c6_323 = arith.constant 6 : index
    %c0_324 = arith.constant 0 : index
    %c0_325 = arith.constant 0 : index
    %505 = vector.load %arg2[%c6_323, %c0_324, %c0_325] : memref<36x4x1xf32, #tpu.memory_space<vmem>>, vector<1x4x1xf32>
    %506 = vector.shape_cast %505 : vector<1x4x1xf32> to vector<4x1xf32>
    %507 = vector.broadcast %506 : vector<4x1xf32> to vector<4x288xf32>
    %508 = vector.broadcast %504 : vector<1x288xf32> to vector<4x288xf32>
    %509 = arith.mulf %507, %508 : vector<4x288xf32>
    %510 = arith.addf %503, %509 : vector<4x288xf32>
    %c0_326 = arith.constant 0 : index
    %c37_327 = arith.constant 37 : index
    %511 = vector.load %arg5[%c0_326, %c37_327] : memref<4x326xf32, #tpu.memory_space<vmem>>, vector<1x288xf32>
    %c7_328 = arith.constant 7 : index
    %c0_329 = arith.constant 0 : index
    %c0_330 = arith.constant 0 : index
    %512 = vector.load %arg2[%c7_328, %c0_329, %c0_330] : memref<36x4x1xf32, #tpu.memory_space<vmem>>, vector<1x4x1xf32>
    %513 = vector.shape_cast %512 : vector<1x4x1xf32> to vector<4x1xf32>
    %514 = vector.broadcast %513 : vector<4x1xf32> to vector<4x288xf32>
    %515 = vector.broadcast %511 : vector<1x288xf32> to vector<4x288xf32>
    %516 = arith.mulf %514, %515 : vector<4x288xf32>
    %517 = arith.addf %510, %516 : vector<4x288xf32>
    %c0_331 = arith.constant 0 : index
    %c38_332 = arith.constant 38 : index
    %518 = vector.load %arg5[%c0_331, %c38_332] : memref<4x326xf32, #tpu.memory_space<vmem>>, vector<1x288xf32>
    %c8_333 = arith.constant 8 : index
    %c0_334 = arith.constant 0 : index
    %c0_335 = arith.constant 0 : index
    %519 = vector.load %arg2[%c8_333, %c0_334, %c0_335] : memref<36x4x1xf32, #tpu.memory_space<vmem>>, vector<1x4x1xf32>
    %520 = vector.shape_cast %519 : vector<1x4x1xf32> to vector<4x1xf32>
    %521 = vector.broadcast %520 : vector<4x1xf32> to vector<4x288xf32>
    %522 = vector.broadcast %518 : vector<1x288xf32> to vector<4x288xf32>
    %523 = arith.mulf %521, %522 : vector<4x288xf32>
    %524 = arith.addf %517, %523 : vector<4x288xf32>
    %c1_336 = arith.constant 1 : index
    %c0_337 = arith.constant 0 : index
    %525 = vector.load %arg5[%c1_336, %c0_337] : memref<4x326xf32, #tpu.memory_space<vmem>>, vector<1x288xf32>
    %c9_338 = arith.constant 9 : index
    %c0_339 = arith.constant 0 : index
    %c0_340 = arith.constant 0 : index
    %526 = vector.load %arg2[%c9_338, %c0_339, %c0_340] : memref<36x4x1xf32, #tpu.memory_space<vmem>>, vector<1x4x1xf32>
    %527 = vector.shape_cast %526 : vector<1x4x1xf32> to vector<4x1xf32>
    %528 = vector.broadcast %527 : vector<4x1xf32> to vector<4x288xf32>
    %529 = vector.broadcast %525 : vector<1x288xf32> to vector<4x288xf32>
    %530 = arith.mulf %528, %529 : vector<4x288xf32>
    %531 = arith.addf %524, %530 : vector<4x288xf32>
    %c1_341 = arith.constant 1 : index
    %c1_342 = arith.constant 1 : index
    %532 = vector.load %arg5[%c1_341, %c1_342] : memref<4x326xf32, #tpu.memory_space<vmem>>, vector<1x288xf32>
    %c10_343 = arith.constant 10 : index
    %c0_344 = arith.constant 0 : index
    %c0_345 = arith.constant 0 : index
    %533 = vector.load %arg2[%c10_343, %c0_344, %c0_345] : memref<36x4x1xf32, #tpu.memory_space<vmem>>, vector<1x4x1xf32>
    %534 = vector.shape_cast %533 : vector<1x4x1xf32> to vector<4x1xf32>
    %535 = vector.broadcast %534 : vector<4x1xf32> to vector<4x288xf32>
    %536 = vector.broadcast %532 : vector<1x288xf32> to vector<4x288xf32>
    %537 = arith.mulf %535, %536 : vector<4x288xf32>
    %538 = arith.addf %531, %537 : vector<4x288xf32>
    %c1_346 = arith.constant 1 : index
    %c2_347 = arith.constant 2 : index
    %539 = vector.load %arg5[%c1_346, %c2_347] : memref<4x326xf32, #tpu.memory_space<vmem>>, vector<1x288xf32>
    %c11_348 = arith.constant 11 : index
    %c0_349 = arith.constant 0 : index
    %c0_350 = arith.constant 0 : index
    %540 = vector.load %arg2[%c11_348, %c0_349, %c0_350] : memref<36x4x1xf32, #tpu.memory_space<vmem>>, vector<1x4x1xf32>
    %541 = vector.shape_cast %540 : vector<1x4x1xf32> to vector<4x1xf32>
    %542 = vector.broadcast %541 : vector<4x1xf32> to vector<4x288xf32>
    %543 = vector.broadcast %539 : vector<1x288xf32> to vector<4x288xf32>
    %544 = arith.mulf %542, %543 : vector<4x288xf32>
    %545 = arith.addf %538, %544 : vector<4x288xf32>
    %c1_351 = arith.constant 1 : index
    %c18_352 = arith.constant 18 : index
    %546 = vector.load %arg5[%c1_351, %c18_352] : memref<4x326xf32, #tpu.memory_space<vmem>>, vector<1x288xf32>
    %c12_353 = arith.constant 12 : index
    %c0_354 = arith.constant 0 : index
    %c0_355 = arith.constant 0 : index
    %547 = vector.load %arg2[%c12_353, %c0_354, %c0_355] : memref<36x4x1xf32, #tpu.memory_space<vmem>>, vector<1x4x1xf32>
    %548 = vector.shape_cast %547 : vector<1x4x1xf32> to vector<4x1xf32>
    %549 = vector.broadcast %548 : vector<4x1xf32> to vector<4x288xf32>
    %550 = vector.broadcast %546 : vector<1x288xf32> to vector<4x288xf32>
    %551 = arith.mulf %549, %550 : vector<4x288xf32>
    %552 = arith.addf %545, %551 : vector<4x288xf32>
    %c1_356 = arith.constant 1 : index
    %c19_357 = arith.constant 19 : index
    %553 = vector.load %arg5[%c1_356, %c19_357] : memref<4x326xf32, #tpu.memory_space<vmem>>, vector<1x288xf32>
    %c13_358 = arith.constant 13 : index
    %c0_359 = arith.constant 0 : index
    %c0_360 = arith.constant 0 : index
    %554 = vector.load %arg2[%c13_358, %c0_359, %c0_360] : memref<36x4x1xf32, #tpu.memory_space<vmem>>, vector<1x4x1xf32>
    %555 = vector.shape_cast %554 : vector<1x4x1xf32> to vector<4x1xf32>
    %556 = vector.broadcast %555 : vector<4x1xf32> to vector<4x288xf32>
    %557 = vector.broadcast %553 : vector<1x288xf32> to vector<4x288xf32>
    %558 = arith.mulf %556, %557 : vector<4x288xf32>
    %559 = arith.addf %552, %558 : vector<4x288xf32>
    %c1_361 = arith.constant 1 : index
    %c20_362 = arith.constant 20 : index
    %560 = vector.load %arg5[%c1_361, %c20_362] : memref<4x326xf32, #tpu.memory_space<vmem>>, vector<1x288xf32>
    %c14_363 = arith.constant 14 : index
    %c0_364 = arith.constant 0 : index
    %c0_365 = arith.constant 0 : index
    %561 = vector.load %arg2[%c14_363, %c0_364, %c0_365] : memref<36x4x1xf32, #tpu.memory_space<vmem>>, vector<1x4x1xf32>
    %562 = vector.shape_cast %561 : vector<1x4x1xf32> to vector<4x1xf32>
    %563 = vector.broadcast %562 : vector<4x1xf32> to vector<4x288xf32>
    %564 = vector.broadcast %560 : vector<1x288xf32> to vector<4x288xf32>
    %565 = arith.mulf %563, %564 : vector<4x288xf32>
    %566 = arith.addf %559, %565 : vector<4x288xf32>
    %c1_366 = arith.constant 1 : index
    %c36_367 = arith.constant 36 : index
    %567 = vector.load %arg5[%c1_366, %c36_367] : memref<4x326xf32, #tpu.memory_space<vmem>>, vector<1x288xf32>
    %c15_368 = arith.constant 15 : index
    %c0_369 = arith.constant 0 : index
    %c0_370 = arith.constant 0 : index
    %568 = vector.load %arg2[%c15_368, %c0_369, %c0_370] : memref<36x4x1xf32, #tpu.memory_space<vmem>>, vector<1x4x1xf32>
    %569 = vector.shape_cast %568 : vector<1x4x1xf32> to vector<4x1xf32>
    %570 = vector.broadcast %569 : vector<4x1xf32> to vector<4x288xf32>
    %571 = vector.broadcast %567 : vector<1x288xf32> to vector<4x288xf32>
    %572 = arith.mulf %570, %571 : vector<4x288xf32>
    %573 = arith.addf %566, %572 : vector<4x288xf32>
    %c1_371 = arith.constant 1 : index
    %c37_372 = arith.constant 37 : index
    %574 = vector.load %arg5[%c1_371, %c37_372] : memref<4x326xf32, #tpu.memory_space<vmem>>, vector<1x288xf32>
    %c16_373 = arith.constant 16 : index
    %c0_374 = arith.constant 0 : index
    %c0_375 = arith.constant 0 : index
    %575 = vector.load %arg2[%c16_373, %c0_374, %c0_375] : memref<36x4x1xf32, #tpu.memory_space<vmem>>, vector<1x4x1xf32>
    %576 = vector.shape_cast %575 : vector<1x4x1xf32> to vector<4x1xf32>
    %577 = vector.broadcast %576 : vector<4x1xf32> to vector<4x288xf32>
    %578 = vector.broadcast %574 : vector<1x288xf32> to vector<4x288xf32>
    %579 = arith.mulf %577, %578 : vector<4x288xf32>
    %580 = arith.addf %573, %579 : vector<4x288xf32>
    %c1_376 = arith.constant 1 : index
    %c38_377 = arith.constant 38 : index
    %581 = vector.load %arg5[%c1_376, %c38_377] : memref<4x326xf32, #tpu.memory_space<vmem>>, vector<1x288xf32>
    %c17_378 = arith.constant 17 : index
    %c0_379 = arith.constant 0 : index
    %c0_380 = arith.constant 0 : index
    %582 = vector.load %arg2[%c17_378, %c0_379, %c0_380] : memref<36x4x1xf32, #tpu.memory_space<vmem>>, vector<1x4x1xf32>
    %583 = vector.shape_cast %582 : vector<1x4x1xf32> to vector<4x1xf32>
    %584 = vector.broadcast %583 : vector<4x1xf32> to vector<4x288xf32>
    %585 = vector.broadcast %581 : vector<1x288xf32> to vector<4x288xf32>
    %586 = arith.mulf %584, %585 : vector<4x288xf32>
    %587 = arith.addf %580, %586 : vector<4x288xf32>
    %c2_381 = arith.constant 2 : index
    %c0_382 = arith.constant 0 : index
    %588 = vector.load %arg5[%c2_381, %c0_382] : memref<4x326xf32, #tpu.memory_space<vmem>>, vector<1x288xf32>
    %c18_383 = arith.constant 18 : index
    %c0_384 = arith.constant 0 : index
    %c0_385 = arith.constant 0 : index
    %589 = vector.load %arg2[%c18_383, %c0_384, %c0_385] : memref<36x4x1xf32, #tpu.memory_space<vmem>>, vector<1x4x1xf32>
    %590 = vector.shape_cast %589 : vector<1x4x1xf32> to vector<4x1xf32>
    %591 = vector.broadcast %590 : vector<4x1xf32> to vector<4x288xf32>
    %592 = vector.broadcast %588 : vector<1x288xf32> to vector<4x288xf32>
    %593 = arith.mulf %591, %592 : vector<4x288xf32>
    %594 = arith.addf %587, %593 : vector<4x288xf32>
    %c2_386 = arith.constant 2 : index
    %c1_387 = arith.constant 1 : index
    %595 = vector.load %arg5[%c2_386, %c1_387] : memref<4x326xf32, #tpu.memory_space<vmem>>, vector<1x288xf32>
    %c19_388 = arith.constant 19 : index
    %c0_389 = arith.constant 0 : index
    %c0_390 = arith.constant 0 : index
    %596 = vector.load %arg2[%c19_388, %c0_389, %c0_390] : memref<36x4x1xf32, #tpu.memory_space<vmem>>, vector<1x4x1xf32>
    %597 = vector.shape_cast %596 : vector<1x4x1xf32> to vector<4x1xf32>
    %598 = vector.broadcast %597 : vector<4x1xf32> to vector<4x288xf32>
    %599 = vector.broadcast %595 : vector<1x288xf32> to vector<4x288xf32>
    %600 = arith.mulf %598, %599 : vector<4x288xf32>
    %601 = arith.addf %594, %600 : vector<4x288xf32>
    %c2_391 = arith.constant 2 : index
    %c2_392 = arith.constant 2 : index
    %602 = vector.load %arg5[%c2_391, %c2_392] : memref<4x326xf32, #tpu.memory_space<vmem>>, vector<1x288xf32>
    %c20_393 = arith.constant 20 : index
    %c0_394 = arith.constant 0 : index
    %c0_395 = arith.constant 0 : index
    %603 = vector.load %arg2[%c20_393, %c0_394, %c0_395] : memref<36x4x1xf32, #tpu.memory_space<vmem>>, vector<1x4x1xf32>
    %604 = vector.shape_cast %603 : vector<1x4x1xf32> to vector<4x1xf32>
    %605 = vector.broadcast %604 : vector<4x1xf32> to vector<4x288xf32>
    %606 = vector.broadcast %602 : vector<1x288xf32> to vector<4x288xf32>
    %607 = arith.mulf %605, %606 : vector<4x288xf32>
    %608 = arith.addf %601, %607 : vector<4x288xf32>
    %c2_396 = arith.constant 2 : index
    %c18_397 = arith.constant 18 : index
    %609 = vector.load %arg5[%c2_396, %c18_397] : memref<4x326xf32, #tpu.memory_space<vmem>>, vector<1x288xf32>
    %c21_398 = arith.constant 21 : index
    %c0_399 = arith.constant 0 : index
    %c0_400 = arith.constant 0 : index
    %610 = vector.load %arg2[%c21_398, %c0_399, %c0_400] : memref<36x4x1xf32, #tpu.memory_space<vmem>>, vector<1x4x1xf32>
    %611 = vector.shape_cast %610 : vector<1x4x1xf32> to vector<4x1xf32>
    %612 = vector.broadcast %611 : vector<4x1xf32> to vector<4x288xf32>
    %613 = vector.broadcast %609 : vector<1x288xf32> to vector<4x288xf32>
    %614 = arith.mulf %612, %613 : vector<4x288xf32>
    %615 = arith.addf %608, %614 : vector<4x288xf32>
    %c2_401 = arith.constant 2 : index
    %c19_402 = arith.constant 19 : index
    %616 = vector.load %arg5[%c2_401, %c19_402] : memref<4x326xf32, #tpu.memory_space<vmem>>, vector<1x288xf32>
    %c22_403 = arith.constant 22 : index
    %c0_404 = arith.constant 0 : index
    %c0_405 = arith.constant 0 : index
    %617 = vector.load %arg2[%c22_403, %c0_404, %c0_405] : memref<36x4x1xf32, #tpu.memory_space<vmem>>, vector<1x4x1xf32>
    %618 = vector.shape_cast %617 : vector<1x4x1xf32> to vector<4x1xf32>
    %619 = vector.broadcast %618 : vector<4x1xf32> to vector<4x288xf32>
    %620 = vector.broadcast %616 : vector<1x288xf32> to vector<4x288xf32>
    %621 = arith.mulf %619, %620 : vector<4x288xf32>
    %622 = arith.addf %615, %621 : vector<4x288xf32>
    %c2_406 = arith.constant 2 : index
    %c20_407 = arith.constant 20 : index
    %623 = vector.load %arg5[%c2_406, %c20_407] : memref<4x326xf32, #tpu.memory_space<vmem>>, vector<1x288xf32>
    %c23_408 = arith.constant 23 : index
    %c0_409 = arith.constant 0 : index
    %c0_410 = arith.constant 0 : index
    %624 = vector.load %arg2[%c23_408, %c0_409, %c0_410] : memref<36x4x1xf32, #tpu.memory_space<vmem>>, vector<1x4x1xf32>
    %625 = vector.shape_cast %624 : vector<1x4x1xf32> to vector<4x1xf32>
    %626 = vector.broadcast %625 : vector<4x1xf32> to vector<4x288xf32>
    %627 = vector.broadcast %623 : vector<1x288xf32> to vector<4x288xf32>
    %628 = arith.mulf %626, %627 : vector<4x288xf32>
    %629 = arith.addf %622, %628 : vector<4x288xf32>
    %c2_411 = arith.constant 2 : index
    %c36_412 = arith.constant 36 : index
    %630 = vector.load %arg5[%c2_411, %c36_412] : memref<4x326xf32, #tpu.memory_space<vmem>>, vector<1x288xf32>
    %c24_413 = arith.constant 24 : index
    %c0_414 = arith.constant 0 : index
    %c0_415 = arith.constant 0 : index
    %631 = vector.load %arg2[%c24_413, %c0_414, %c0_415] : memref<36x4x1xf32, #tpu.memory_space<vmem>>, vector<1x4x1xf32>
    %632 = vector.shape_cast %631 : vector<1x4x1xf32> to vector<4x1xf32>
    %633 = vector.broadcast %632 : vector<4x1xf32> to vector<4x288xf32>
    %634 = vector.broadcast %630 : vector<1x288xf32> to vector<4x288xf32>
    %635 = arith.mulf %633, %634 : vector<4x288xf32>
    %636 = arith.addf %629, %635 : vector<4x288xf32>
    %c2_416 = arith.constant 2 : index
    %c37_417 = arith.constant 37 : index
    %637 = vector.load %arg5[%c2_416, %c37_417] : memref<4x326xf32, #tpu.memory_space<vmem>>, vector<1x288xf32>
    %c25_418 = arith.constant 25 : index
    %c0_419 = arith.constant 0 : index
    %c0_420 = arith.constant 0 : index
    %638 = vector.load %arg2[%c25_418, %c0_419, %c0_420] : memref<36x4x1xf32, #tpu.memory_space<vmem>>, vector<1x4x1xf32>
    %639 = vector.shape_cast %638 : vector<1x4x1xf32> to vector<4x1xf32>
    %640 = vector.broadcast %639 : vector<4x1xf32> to vector<4x288xf32>
    %641 = vector.broadcast %637 : vector<1x288xf32> to vector<4x288xf32>
    %642 = arith.mulf %640, %641 : vector<4x288xf32>
    %643 = arith.addf %636, %642 : vector<4x288xf32>
    %c2_421 = arith.constant 2 : index
    %c38_422 = arith.constant 38 : index
    %644 = vector.load %arg5[%c2_421, %c38_422] : memref<4x326xf32, #tpu.memory_space<vmem>>, vector<1x288xf32>
    %c26_423 = arith.constant 26 : index
    %c0_424 = arith.constant 0 : index
    %c0_425 = arith.constant 0 : index
    %645 = vector.load %arg2[%c26_423, %c0_424, %c0_425] : memref<36x4x1xf32, #tpu.memory_space<vmem>>, vector<1x4x1xf32>
    %646 = vector.shape_cast %645 : vector<1x4x1xf32> to vector<4x1xf32>
    %647 = vector.broadcast %646 : vector<4x1xf32> to vector<4x288xf32>
    %648 = vector.broadcast %644 : vector<1x288xf32> to vector<4x288xf32>
    %649 = arith.mulf %647, %648 : vector<4x288xf32>
    %650 = arith.addf %643, %649 : vector<4x288xf32>
    %c3_426 = arith.constant 3 : index
    %c0_427 = arith.constant 0 : index
    %651 = vector.load %arg5[%c3_426, %c0_427] : memref<4x326xf32, #tpu.memory_space<vmem>>, vector<1x288xf32>
    %c27_428 = arith.constant 27 : index
    %c0_429 = arith.constant 0 : index
    %c0_430 = arith.constant 0 : index
    %652 = vector.load %arg2[%c27_428, %c0_429, %c0_430] : memref<36x4x1xf32, #tpu.memory_space<vmem>>, vector<1x4x1xf32>
    %653 = vector.shape_cast %652 : vector<1x4x1xf32> to vector<4x1xf32>
    %654 = vector.broadcast %653 : vector<4x1xf32> to vector<4x288xf32>
    %655 = vector.broadcast %651 : vector<1x288xf32> to vector<4x288xf32>
    %656 = arith.mulf %654, %655 : vector<4x288xf32>
    %657 = arith.addf %650, %656 : vector<4x288xf32>
    %c3_431 = arith.constant 3 : index
    %c1_432 = arith.constant 1 : index
    %658 = vector.load %arg5[%c3_431, %c1_432] : memref<4x326xf32, #tpu.memory_space<vmem>>, vector<1x288xf32>
    %c28_433 = arith.constant 28 : index
    %c0_434 = arith.constant 0 : index
    %c0_435 = arith.constant 0 : index
    %659 = vector.load %arg2[%c28_433, %c0_434, %c0_435] : memref<36x4x1xf32, #tpu.memory_space<vmem>>, vector<1x4x1xf32>
    %660 = vector.shape_cast %659 : vector<1x4x1xf32> to vector<4x1xf32>
    %661 = vector.broadcast %660 : vector<4x1xf32> to vector<4x288xf32>
    %662 = vector.broadcast %658 : vector<1x288xf32> to vector<4x288xf32>
    %663 = arith.mulf %661, %662 : vector<4x288xf32>
    %664 = arith.addf %657, %663 : vector<4x288xf32>
    %c3_436 = arith.constant 3 : index
    %c2_437 = arith.constant 2 : index
    %665 = vector.load %arg5[%c3_436, %c2_437] : memref<4x326xf32, #tpu.memory_space<vmem>>, vector<1x288xf32>
    %c29_438 = arith.constant 29 : index
    %c0_439 = arith.constant 0 : index
    %c0_440 = arith.constant 0 : index
    %666 = vector.load %arg2[%c29_438, %c0_439, %c0_440] : memref<36x4x1xf32, #tpu.memory_space<vmem>>, vector<1x4x1xf32>
    %667 = vector.shape_cast %666 : vector<1x4x1xf32> to vector<4x1xf32>
    %668 = vector.broadcast %667 : vector<4x1xf32> to vector<4x288xf32>
    %669 = vector.broadcast %665 : vector<1x288xf32> to vector<4x288xf32>
    %670 = arith.mulf %668, %669 : vector<4x288xf32>
    %671 = arith.addf %664, %670 : vector<4x288xf32>
    %c3_441 = arith.constant 3 : index
    %c18_442 = arith.constant 18 : index
    %672 = vector.load %arg5[%c3_441, %c18_442] : memref<4x326xf32, #tpu.memory_space<vmem>>, vector<1x288xf32>
    %c30_443 = arith.constant 30 : index
    %c0_444 = arith.constant 0 : index
    %c0_445 = arith.constant 0 : index
    %673 = vector.load %arg2[%c30_443, %c0_444, %c0_445] : memref<36x4x1xf32, #tpu.memory_space<vmem>>, vector<1x4x1xf32>
    %674 = vector.shape_cast %673 : vector<1x4x1xf32> to vector<4x1xf32>
    %675 = vector.broadcast %674 : vector<4x1xf32> to vector<4x288xf32>
    %676 = vector.broadcast %672 : vector<1x288xf32> to vector<4x288xf32>
    %677 = arith.mulf %675, %676 : vector<4x288xf32>
    %678 = arith.addf %671, %677 : vector<4x288xf32>
    %c3_446 = arith.constant 3 : index
    %c19_447 = arith.constant 19 : index
    %679 = vector.load %arg5[%c3_446, %c19_447] : memref<4x326xf32, #tpu.memory_space<vmem>>, vector<1x288xf32>
    %c31_448 = arith.constant 31 : index
    %c0_449 = arith.constant 0 : index
    %c0_450 = arith.constant 0 : index
    %680 = vector.load %arg2[%c31_448, %c0_449, %c0_450] : memref<36x4x1xf32, #tpu.memory_space<vmem>>, vector<1x4x1xf32>
    %681 = vector.shape_cast %680 : vector<1x4x1xf32> to vector<4x1xf32>
    %682 = vector.broadcast %681 : vector<4x1xf32> to vector<4x288xf32>
    %683 = vector.broadcast %679 : vector<1x288xf32> to vector<4x288xf32>
    %684 = arith.mulf %682, %683 : vector<4x288xf32>
    %685 = arith.addf %678, %684 : vector<4x288xf32>
    %c3_451 = arith.constant 3 : index
    %c20_452 = arith.constant 20 : index
    %686 = vector.load %arg5[%c3_451, %c20_452] : memref<4x326xf32, #tpu.memory_space<vmem>>, vector<1x288xf32>
    %c32_453 = arith.constant 32 : index
    %c0_454 = arith.constant 0 : index
    %c0_455 = arith.constant 0 : index
    %687 = vector.load %arg2[%c32_453, %c0_454, %c0_455] : memref<36x4x1xf32, #tpu.memory_space<vmem>>, vector<1x4x1xf32>
    %688 = vector.shape_cast %687 : vector<1x4x1xf32> to vector<4x1xf32>
    %689 = vector.broadcast %688 : vector<4x1xf32> to vector<4x288xf32>
    %690 = vector.broadcast %686 : vector<1x288xf32> to vector<4x288xf32>
    %691 = arith.mulf %689, %690 : vector<4x288xf32>
    %692 = arith.addf %685, %691 : vector<4x288xf32>
    %c3_456 = arith.constant 3 : index
    %c36_457 = arith.constant 36 : index
    %693 = vector.load %arg5[%c3_456, %c36_457] : memref<4x326xf32, #tpu.memory_space<vmem>>, vector<1x288xf32>
    %c33_458 = arith.constant 33 : index
    %c0_459 = arith.constant 0 : index
    %c0_460 = arith.constant 0 : index
    %694 = vector.load %arg2[%c33_458, %c0_459, %c0_460] : memref<36x4x1xf32, #tpu.memory_space<vmem>>, vector<1x4x1xf32>
    %695 = vector.shape_cast %694 : vector<1x4x1xf32> to vector<4x1xf32>
    %696 = vector.broadcast %695 : vector<4x1xf32> to vector<4x288xf32>
    %697 = vector.broadcast %693 : vector<1x288xf32> to vector<4x288xf32>
    %698 = arith.mulf %696, %697 : vector<4x288xf32>
    %699 = arith.addf %692, %698 : vector<4x288xf32>
    %c3_461 = arith.constant 3 : index
    %c37_462 = arith.constant 37 : index
    %700 = vector.load %arg5[%c3_461, %c37_462] : memref<4x326xf32, #tpu.memory_space<vmem>>, vector<1x288xf32>
    %c34_463 = arith.constant 34 : index
    %c0_464 = arith.constant 0 : index
    %c0_465 = arith.constant 0 : index
    %701 = vector.load %arg2[%c34_463, %c0_464, %c0_465] : memref<36x4x1xf32, #tpu.memory_space<vmem>>, vector<1x4x1xf32>
    %702 = vector.shape_cast %701 : vector<1x4x1xf32> to vector<4x1xf32>
    %703 = vector.broadcast %702 : vector<4x1xf32> to vector<4x288xf32>
    %704 = vector.broadcast %700 : vector<1x288xf32> to vector<4x288xf32>
    %705 = arith.mulf %703, %704 : vector<4x288xf32>
    %706 = arith.addf %699, %705 : vector<4x288xf32>
    %c3_466 = arith.constant 3 : index
    %c38_467 = arith.constant 38 : index
    %707 = vector.load %arg5[%c3_466, %c38_467] : memref<4x326xf32, #tpu.memory_space<vmem>>, vector<1x288xf32>
    %c35_468 = arith.constant 35 : index
    %c0_469 = arith.constant 0 : index
    %c0_470 = arith.constant 0 : index
    %708 = vector.load %arg2[%c35_468, %c0_469, %c0_470] : memref<36x4x1xf32, #tpu.memory_space<vmem>>, vector<1x4x1xf32>
    %709 = vector.shape_cast %708 : vector<1x4x1xf32> to vector<4x1xf32>
    %710 = vector.broadcast %709 : vector<4x1xf32> to vector<4x288xf32>
    %711 = vector.broadcast %707 : vector<1x288xf32> to vector<4x288xf32>
    %712 = arith.mulf %710, %711 : vector<4x288xf32>
    %713 = arith.addf %706, %712 : vector<4x288xf32>
    %cst_471 = arith.constant 2.000000e-01 : f32
    %714 = vector.broadcast %cst_471 : f32 to vector<4x288xf32>
    %715 = arith.mulf %714, %713 : vector<4x288xf32>
    %716 = arith.maximumf %713, %715 : vector<4x288xf32>
    %c1_472 = arith.constant 1 : index
    %c0_473 = arith.constant 0 : index
    %c0_474 = arith.constant 0 : index
    %717 = vector.load %arg4[%c1_472, %c0_473, %c0_474] : memref<2x4x288xf32, #tpu.memory_space<vmem>>, vector<1x4x288xf32>
    %718 = vector.shape_cast %717 : vector<1x4x288xf32> to vector<4x288xf32>
    %719 = vector.shape_cast %716 : vector<4x288xf32> to vector<1x4x288xf32>
    tpu.vector_store %arg4[%c1_472, %c0_473, %c0_474], %719 {strides = array<i32>} : memref<2x4x288xf32, #tpu.memory_space<vmem>>, vector<1x4x288xf32>,
    return
  }
  func.func @transform_0(%arg0: i32) -> (i32, i32, i32) {
    %c0_i32 = arith.constant 0 : i32
    %c0_i32_0 = arith.constant 0 : i32
    %c0_i32_1 = arith.constant 0 : i32
    return %arg0, %c0_i32, %c0_i32_0 : i32, i32, i32
  }
  func.func @transform_1(%arg0: i32) -> (i32, i32, i32) {
    %c0_i32 = arith.constant 0 : i32
    %c0_i32_0 = arith.constant 0 : i32
    %c0_i32_1 = arith.constant 0 : i32
    %c0_i32_2 = arith.constant 0 : i32
    return %c0_i32, %c0_i32_0, %c0_i32_1 : i32, i32, i32
  }
  func.func @transform_2(%arg0: i32) -> (i32, i32) {
    %c0_i32 = arith.constant 0 : i32
    %c0_i32_0 = arith.constant 0 : i32
    %c0_i32_1 = arith.constant 0 : i32
    return %c0_i32, %c0_i32_0 : i32, i32
  }
  func.func @transform_3(%arg0: i32) -> (i32, i32, i32) {
    %c0_i32 = arith.constant 0 : i32
    %c0_i32_0 = arith.constant 0 : i32
    %c0_i32_1 = arith.constant 0 : i32
    return %arg0, %c0_i32, %c0_i32_0 : i32, i32, i32
  }
}

</mosaic_0001>

<bundles_post_ra>
// kernel: tpu_custom_call.1
= control target key start
LH: loop header
LB: loop body
LE: loop exit
PB: predicated region body
PF: predicated region fallthrough
CT: control target
= control target key end

     0   :  { %s2795_s14 = smov 127   ;;  %s2796_s15 = smov 3   ;;  %s4478_s0 = inlined_call_operand.vmem [shape: f32[2,4,256], index: 0, kind: input, shape index: {}]   ;;  %s4479_s1 = inlined_call_operand.vmem [shape: f32[36,4,1], index: 1, kind: input, shape index: {}]   ;;  %s4480_s2 = inlined_call_operand.vmem [shape: f32[4,1], index: 2, kind: input, shape index: {}]   ;;  %s4481_s3 = inlined_call_operand.hbm [shape: f32[2,4,288], index: 3, kind: output, shape index: {}]  }
   0x1   :  { %v17_v0 = vld [vmem:[%s4478_s0] sm:$0xf]  ;;  %s2797_s18 = smov 1   ;;  %s2798_s19 = smov 113  }
   0x2   :  { %19 = vrot.lane.b32.xlu0 %v17_v0, %s2795_s14  ;;  %25 = vrot.lane.b32.xlu1 %v17_v0, %s2796_s15  ;;  %v38_v1 = vld [vmem:[%s4478_s0] sm:$0xf] }
   0x3   :  { %v59_v2 = vld [vmem:[%s4478_s0] sm:$0xf] }
   0x6   :  { %22 = vrot.lane.b32.xlu0 %v17_v0, %s2797_s18  ;;  %43 = vrot.lane.b32.xlu1 %v38_v1, %s2798_s19 }
   0x7   :  { %8 = vsyncpa [#allocation4], 0  ;;  %s2799_s22 = smov 111   ;;  %s2800_s23 = smov 97   ;;  %v78_v3 = vld [vmem:[%s4478_s0] sm:$0xf] }
   0x8   :  { %s2801_s26 = smov 115   ;;  %s4482_s27 = smov 81   ;;  %v97_v4 = vld [vmem:[%s4478_s0] sm:$0xf]  ;;  %v178_v8 = vld [vmem:[%s4478_s0 + $0x4] sm:$0xf] }
   0x9   :  { %s2803_s30 = smov 95   ;;  %s4492_s4 = smov 65   ;;  %v116_v5 = vld [vmem:[%s4478_s0] sm:$0xf]  ;;  %v197_v9 = vld [vmem:[%s4478_s0 + $0x4] sm:$0xf] }
   0xa   :  { %40 = vrot.lane.b32.xlu0 %v38_v1, %s2799_s22  ;;  %64 = vrot.lane.b32.xlu1 %v59_v2, %s2800_s23  ;;  %s2805_s7 = smov 99   ;;  %s4486_s8 = smov 49   ;;  %v135_v6 = vld [vmem:[%s4478_s0] sm:$0xf]  ;;  %v216_v10 = vld [vmem:[%s4478_s0 + $0x4] sm:$0xf] }
   0xb   :  { %s2807_s11 = smov 79   ;;  %s4484_s12 = smov 33   ;;  %v159_v7 = vld [vmem:[%s4478_s0] sm:$0xf]  ;;  %v235_v11 = vld [vmem:[%s4478_s0 + $0x4] sm:$0xf] }
   0xc   :  { %s2809_s17 = smov 83   ;;  %s4508_s20 = smov 17   ;;  %v254_v12 = vld [vmem:[%s4478_s0 + $0x4] sm:$0xf]  ;;  %vm28_vm0 = vcmask 7168   ;;  %vm30_vm1 = vcmask 138240  }
   0xd   :  { %s2811_s25 = smov 63   ;;  %s4523_s5 = smov 67   ;;  %v273_v13 = vld [vmem:[%s4478_s0 + $0x4] sm:$0xf]  ;;  %v2828_v62 = vmov 0   ;;  %vm15_vm2 = vcmask 568864  }
   0xe   :  { %46 = vrot.lane.b32.xlu0 %v38_v1, %s2801_s26  ;;  %83 = vrot.lane.b32.xlu1 %v78_v3, %s4482_s27  ;;  %s4503_s10 = smov 47   ;;  %s4501_s21 = smov 51   ;;  %v297_v14 = vld [vmem:[%s4478_s0 + $0x4] sm:$0xf]  ;;  %vm36_vm3 = vcmask 289936   ;;  %vm55_vm4 = vcmask 437536  }
   0xf   :  { %s4490_s29 = smov 31   ;;  %s4488_s13 = smov 35   ;;  %2769 = vset.pattern.permute.xlu1 %v2828_v62  ;;  %2770 = vset.pattern.permute.xlu0 %v2828_v62  ;;  %vm57_vm5 = vcmask 142336   ;;  %vm76_vm6 = vcmask 585136   ;;  %vm4517_vm7 = vcmask 732736   ;;  %vm4516_vm8 = vcmask 880336  }
  0x10   :  { %s4512_s24 = smov 15   ;;  %s4510_s28 = smov 19   ;;  %vm4514_vm9 = vcmask 1027936   ;;  %vm155_vm10 = vcmask 1044464   ;;  %vm156_vm11 = vcmask 130052   ;;  %vm152_vm12 = vcmask 1031168  }
  0x11   :  { %s2820_s6 = smov 36   ;;  %s4521_s9 = smov 54   ;;  %vm3048_vm13 = vmor %vm156_vm11, %vm155_vm10  ;;  %vm4515_vm14 = vcmask 273536   ;;  %vm4518_vm15 = vcmask 421136   ;;  %vm4519_vm10 = vcmask 716336   ;;  %vm4520_vm11 = vcmask 863936  }
  0x12   :  { %61 = vrot.lane.b32.xlu0 %v59_v2, %s2803_s30  ;;  %102 = vrot.lane.b32.xlu1 %v97_v4, %s4492_s4  ;;  %s4496_s16 = smov 72  }
  0x16   :  { %67 = vrot.lane.b32.xlu0 %v59_v2, %s2805_s7  ;;  %121 = vrot.lane.b32.xlu1 %v116_v5, %s4486_s8 }
  0x1a   :  { %80 = vrot.lane.b32.xlu0 %v78_v3, %s2807_s11  ;;  %140 = vrot.lane.b32.xlu1 %v135_v6, %s4484_s12 }
  0x1e   :  { %86 = vrot.lane.b32.xlu0 %v78_v3, %s2809_s17  ;;  %164 = vrot.lane.b32.xlu1 %v159_v7, %s4508_s20 }
  0x22   :  { %99 = vrot.lane.b32.xlu0 %v97_v4, %s2811_s25  ;;  %183 = vrot.lane.b32.xlu1 %v178_v8, %s2797_s18 }
  0x26   :  { %105 = vrot.lane.b32.xlu0 %v97_v4, %s4523_s5  ;;  %202 = vrot.lane.b32.xlu1 %v197_v9, %s2798_s19 }
  0x2a   :  { %118 = vrot.lane.b32.xlu0 %v116_v5, %s4503_s10  ;;  %221 = vrot.lane.b32.xlu1 %v216_v10, %s2800_s23 }
  0x2e   :  { %124 = vrot.lane.b32.xlu0 %v116_v5, %s4501_s21  ;;  %240 = vrot.lane.b32.xlu1 %v235_v11, %s4482_s27  ;;  %s2819_s27 = smov 18  }
  0x32   :  { %137 = vrot.lane.b32.xlu0 %v135_v6, %s4490_s29  ;;  %259 = vrot.lane.b32.xlu1 %v254_v12, %s4492_s4  ;;  %s4495_s4 = smov 34  }
  0x36   :  { %143 = vrot.lane.b32.xlu0 %v135_v6, %s4488_s13  ;;  %278 = vrot.lane.b32.xlu1 %v273_v13, %s4486_s8  ;;  %s4562_s8 = smov 108  }
  0x3a   :  { %161 = vrot.lane.b32.xlu0 %v159_v7, %s4512_s24  ;;  %302 = vrot.lane.b32.xlu1 %v297_v14, %s4484_s12  ;;  %s4560_s12 = smov 90  }
  0x3e   :  { %167 = vrot.lane.b32.xlu0 %v159_v7, %s4510_s28 }
  0x42   :  { %180 = vrot.lane.b32.xlu0 %v178_v8, %s2795_s14 }
  0x46   :  { %186 = vrot.lane.b32.xlu0 %v178_v8, %s2796_s15 }
  0x4a   :  { %199 = vrot.lane.b32.xlu0 %v197_v9, %s2799_s22 }
  0x4e   :  { %205 = vrot.lane.b32.xlu0 %v197_v9, %s2801_s26 }
  0x52   :  { %218 = vrot.lane.b32.xlu0 %v216_v10, %s2803_s30 }
  0x56   :  { %224 = vrot.lane.b32.xlu0 %v216_v10, %s2805_s7 }
  0x5a   :  { %237 = vrot.lane.b32.xlu0 %v235_v11, %s2807_s11 }
  0x5e   :  { %243 = vrot.lane.b32.xlu0 %v235_v11, %s2809_s17 }
  0x62   :  { %256 = vrot.lane.b32.xlu0 %v254_v12, %s2811_s25 }
  0x66   :  { %262 = vrot.lane.b32.xlu0 %v254_v12, %s4523_s5  ;;  %s4558_s5 = smov 110  }
  0x6a   :  { %275 = vrot.lane.b32.xlu0 %v273_v13, %s4503_s10  ;;  %s4522_s10 = smov 32  }
  0x6e   :  { %281 = vrot.lane.b32.xlu0 %v273_v13, %s4501_s21  ;;  %s4554_s21 = smov 92  }
  0x72   :  { %299 = vrot.lane.b32.xlu0 %v297_v14, %s4490_s29  ;;  %s4494_s29 = smov 16  }
  0x74   :  { %v20_v15 = vpop.permute.xlu0 %19  ;;  %v26_v16 = vpop.permute.xlu1 %25 }
  0x76   :  { %305 = vrot.lane.b32.xlu0 %v297_v14, %s4488_s13  ;;  %s2825_s13 = smov 126   ;;  %v2832_v14 = vmov 0.0  }
  0x77   :  { %16 = vst.msk [vmem:[#allocation2 + $0x8] sm:$0xf] %vm15_vm2, %v2832_v14  ;;  %vm4530_vm2 = vcmask 568736  }
  0x78   :  { %v23_v17 = vpop.permute.xlu0 %22  ;;  %v44_v21 = vpop.permute.xlu1 %43 }
  0x79   :  { %v29_v18 = vsel %vm28_vm0, %v20_v15, %v23_v17 }
  0x7a   :  { %v31_v19 = vsel %vm30_vm1, %v29_v18, %v26_v16 }
  0x7b   :  { %33 = vrot.lane.b32.xlu1 %v31_v19, %s2819_s27 }
  0x7c   :  { %v41_v20 = vpop.permute.xlu0 %40  ;;  %v65_v26 = vpop.permute.xlu1 %64 }
  0x7d   :  { %v49_v22 = vsel %vm28_vm0, %v41_v20, %v44_v21 }
  0x80   :  { %v47_v23 = vpop.permute.xlu0 %46  ;;  %v84_v31 = vpop.permute.xlu1 %83 }
  0x81   :  { %v2960_v24 = vsel %vm30_vm1, %v49_v22, %v47_v23 }
  0x82   :  { %52 = vrot.lane.b32.xlu1 %v2960_v24, %s2820_s6 }
  0x84   :  { %v62_v25 = vpop.permute.xlu0 %61  ;;  %v103_v36 = vpop.permute.xlu1 %102 }
  0x85   :  { %v70_v27 = vsel %vm28_vm0, %v62_v25, %v65_v26 }
  0x88   :  { %v68_v28 = vpop.permute.xlu0 %67  ;;  %v122_v41 = vpop.permute.xlu1 %121 }
  0x89   :  { %v71_v29 = vsel %vm30_vm1, %v70_v27, %v68_v28 }
  0x8a   :  { %73 = vrot.lane.b32.xlu1 %v71_v29, %s4521_s9  ;;  %v321_v29 = vld [vmem:[%s4478_s0 + $0x4] sm:$0xf]  ;;  %s4607_s9 = smov 81  }
  0x8c   :  { %v81_v30 = vpop.permute.xlu0 %80  ;;  %v141_v46 = vpop.permute.xlu1 %140 }
  0x8d   :  { %v89_v32 = vsel %vm28_vm0, %v81_v30, %v84_v31  ;;  %v340_v31 = vld [vmem:[%s4480_s2] sm:$0xf] }
  0x90   :  { %v87_v33 = vpop.permute.xlu0 %86  ;;  %v165_v51 = vpop.permute.xlu1 %164 }
  0x91   :  { %v90_v34 = vsel %vm30_vm1, %v89_v32, %v87_v33  ;;  %v2633_v33 = vld [vmem:[%s4479_s1 + $0x4] sm:$0xf] }
  0x92   :  { %92 = vrot.lane.b32.xlu1 %v90_v34, %s4496_s16  ;;  %s4498_s16 = smov 88   ;;  %v2642_v34 = vld [vmem:[%s4479_s1 + $0x28] sm:$0xf] }
  0x94   :  { %v100_v35 = vpop.permute.xlu0 %99  ;;  %v184_v56 = vpop.permute.xlu1 %183 }
  0x95   :  { %v108_v37 = vsel %vm28_vm0, %v100_v35, %v103_v36  ;;  %v2643_v36 = vld [vmem:[%s4479_s1 + $0x2c] sm:$0xf] }
  0x98   :  { %v106_v38 = vpop.permute.xlu0 %105  ;;  %v203_v61 = vpop.permute.xlu1 %202 }
  0x99   :  { %v109_v39 = vsel %vm30_vm1, %v108_v37, %v106_v38  ;;  %v2645_v38 = vld [vmem:[%s4479_s1 + $0x34] sm:$0xf] }
  0x9a   :  { %111 = vrot.lane.b32.xlu1 %v109_v39, %s4560_s12  ;;  %v2646_v39 = vld [vmem:[%s4479_s1 + $0x38] sm:$0xf] }
  0x9c   :  { %v119_v40 = vpop.permute.xlu0 %118  ;;  %v222_v3 = vpop.permute.xlu1 %221 }
  0x9d   :  { %v127_v42 = vsel %vm28_vm0, %v119_v40, %v122_v41  ;;  %v2647_v41 = vld [vmem:[%s4479_s1 + $0x3c] sm:$0xf] }
  0xa0   :  { %v125_v43 = vpop.permute.xlu0 %124  ;;  %v241_v8 = vpop.permute.xlu1 %240 }
  0xa1   :  { %v128_v44 = vsel %vm30_vm1, %v127_v42, %v125_v43  ;;  %v2648_v42 = vld [vmem:[%s4479_s1 + $0x40] sm:$0xf] }
  0xa2   :  { %130 = vrot.lane.b32.xlu1 %v128_v44, %s4562_s8  ;;  %v2649_v44 = vld [vmem:[%s4479_s1 + $0x44] sm:$0xf] }
  0xa4   :  { %v138_v45 = vpop.permute.xlu0 %137  ;;  %v260_v13 = vpop.permute.xlu1 %259 }
  0xa5   :  { %v146_v47 = vsel %vm28_vm0, %v138_v45, %v141_v46  ;;  %v4564_v46 = vmov 0 }
  0xa6   :  { %v4565_v46 = vsel %vm3048_vm13, 4294967295, %v4564_v46 }
  0xa7   :  { %4566 = vst [vmem:[#allocation6_spill] sm:$0xff] %v4565_v46 }
  0xa8   :  { %v144_v48 = vpop.permute.xlu0 %143  ;;  %v279_v19 = vpop.permute.xlu1 %278 }
  0xa9   :  { %v147_v49 = vsel %vm30_vm1, %v146_v47, %v144_v48 }
  0xaa   :  { %149 = vrot.lane.b32.xlu1 %v147_v49, %s2825_s13 }
  0xac   :  { %v162_v50 = vpop.permute.xlu0 %161  ;;  %v303_v25 = vpop.permute.xlu1 %302 }
  0xad   :  { %v170_v52 = vsel %vm28_vm0, %v162_v50, %v165_v51 }
  0xb0   :  { %v168_v53 = vpop.permute.xlu0 %167 }
  0xb1   :  { %v171_v54 = vsel %vm30_vm1, %v170_v52, %v168_v53 }
  0xb2   :  { %173 = vrot.lane.b32.xlu1 %v171_v54, %s4494_s29  ;;  %s4499_s29 = smov 52  }
  0xb4   :  { %v181_v55 = vpop.permute.xlu0 %180 }
  0xb5   :  { %v189_v57 = vsel %vm28_vm0, %v181_v55, %v184_v56  ;;  %v4567_v56 = vmov 0 }
  0xb8   :  { %v187_v58 = vpop.permute.xlu0 %186 }
  0xb9   :  { %v190_v59 = vsel %vm30_vm1, %v189_v57, %v187_v58 }
  0xba   :  { %192 = vrot.lane.b32.xlu1 %v190_v59, %s4495_s4  ;;  %s4497_s4 = smov 70  }
  0xbc   :  { %v200_v60 = vpop.permute.xlu0 %199 }
  0xbd   :  { %v208_v63 = vsel %vm28_vm0, %v200_v60, %v203_v61 }
  0xc0   :  { %v206_v0 = vpop.permute.xlu0 %205 }
  0xc1   :  { %v209_v1 = vsel %vm30_vm1, %v208_v63, %v206_v0 }
  0xc2   :  { %211 = vrot.lane.b32.xlu1 %v209_v1, %s4499_s29  ;;  %s4505_s29 = smov 50  }
  0xc4   :  { %v219_v2 = vpop.permute.xlu0 %218 }
  0xc5   :  { %v227_v4 = vsel %vm28_vm0, %v219_v2, %v222_v3  ;;  %v347_v2 = vld [vmem:[%s4479_s1] sm:$0xf]  ;;  %v2634_v3 = vld [vmem:[%s4479_s1 + $0x8] sm:$0xf] }
  0xc8   :  { %v225_v5 = vpop.permute.xlu0 %224 }
  0xc9   :  { %v228_v6 = vsel %vm30_vm1, %v227_v4, %v225_v5  ;;  %v2635_v4 = vld [vmem:[%s4479_s1 + $0xc] sm:$0xf]  ;;  %v2636_v5 = vld [vmem:[%s4479_s1 + $0x10] sm:$0xf] }
  0xca   :  { %230 = vrot.lane.b32.xlu1 %v228_v6, %s4497_s4  ;;  %s4500_s4 = smov 106   ;;  %v2637_v6 = vld [vmem:[%s4479_s1 + $0x14] sm:$0xf] }
  0xcc   :  { %v238_v7 = vpop.permute.xlu0 %237 }
  0xcd   :  { %v246_v9 = vsel %vm28_vm0, %v238_v7, %v241_v8  ;;  %v2638_v7 = vld [vmem:[%s4479_s1 + $0x18] sm:$0xf]  ;;  %v2639_v8 = vld [vmem:[%s4479_s1 + $0x1c] sm:$0xf] }
  0xd0   :  { %v244_v10 = vpop.permute.xlu0 %243 }
  0xd1   :  { %v247_v11 = vsel %vm30_vm1, %v246_v9, %v244_v10  ;;  %v2640_v9 = vld [vmem:[%s4479_s1 + $0x20] sm:$0xf]  ;;  %v2641_v10 = vld [vmem:[%s4479_s1 + $0x24] sm:$0xf] }
  0xd2   :  { %249 = vrot.lane.b32.xlu1 %v247_v11, %s4498_s16  ;;  %s4506_s16 = smov 124   ;;  %v354_v11 = vlaneseq }
  0xd4   :  { %v257_v12 = vpop.permute.xlu0 %256 }
  0xd5   :  { %v265_v15 = vsel %vm28_vm0, %v257_v12, %v260_v13  ;;  %v355_v13 = vshrl.u32 %v354_v11, 7 }
  0xd7   :  { %v3101_v14 = vsub.s32 1, %v355_v13 }
  0xd8   :  { %v263_v16 = vpop.permute.xlu0 %262 }
  0xd9   :  { %v266_v17 = vsel %vm30_vm1, %v265_v15, %v263_v16  ;;  %4570 = vst [vmem:[#allocation8_spill] sm:$0xff] %v3101_v14  ;;  %v3105_v16 = vsub.s32 0, %v355_v13 }
  0xda   :  { %268 = vrot.lane.b32.xlu1 %v266_v17, %s4500_s4  ;;  %s4507_s4 = smov 14  }
  0xdb   :  { %4571 = vst [vmem:[#allocation9_spill] sm:$0xff] %v3105_v16 }
  0xdc   :  { %v276_v18 = vpop.permute.xlu0 %275 }
  0xdd   :  { %v284_v20 = vsel %vm28_vm0, %v276_v18, %v279_v19  ;;  %v3107_v18 = vsub.s32 2, %v355_v13 }
  0xdf   :  { %4572 = vst [vmem:[#allocation10_spill] sm:$0xff] %v3107_v18 }
  0xe0   :  { %v282_v21 = vpop.permute.xlu0 %281 }
  0xe1   :  { %v285_v22 = vsel %vm30_vm1, %v284_v20, %v282_v21 }
  0xe2   :  { %287 = vrot.lane.b32.xlu1 %v285_v22, %s4506_s16  ;;  %s4610_s16 = smov 72  }
  0xe4   :  { %v300_v23 = vpop.permute.xlu0 %299 }
  0xe5   :  { %v308_v26 = vsel %vm28_vm0, %v300_v23, %v303_v25 }
  0xe8   :  { %v306_v27 = vpop.permute.xlu0 %305 }
  0xe9   :  { %v309_v28 = vsel %vm30_vm1, %v308_v26, %v306_v27 }
  0xea   :  { %316 = vrot.lane.b32.xlu0 %v309_v28, %s4505_s29  ;;  %311 = vrot.lane.b32.xlu1 %v309_v28, %s4507_s4  ;;  %s4605_s4 = smov 67   ;;  %s4608_s29 = smov 47  }
  0xed   :  { %v34_v30 = vpop.permute.xlu1 %33 }
  0xee   :  { %37 = vst.msk [vmem:[#allocation2] sm:$0xf] %vm36_vm3, %v34_v30  ;;  %326 = vrot.lane.b32.xlu0 %v321_v29, %s4508_s20  ;;  %323 = vrot.lane.b32.xlu1 %v321_v29, %s4512_s24  ;;  %s4552_s24 = smov 91  }
  0xf2   :  { %329 = vrot.lane.b32.xlu1 %v321_v29, %s4510_s28  ;;  %s4647_s28 = smov 110  }
  0xf4   :  { %v53_v32 = vpop.permute.xlu1 %52 }
  0xf5   :  { %56 = vst.msk [vmem:[#allocation2] sm:$0xf] %vm55_vm4, %v53_v32 }
  0xf6   :  { %58 = vst.msk [vmem:[#allocation2] sm:$0xf] %vm57_vm5, %v2960_v24  ;;  %343 = vperm.xlu1 %2769, %v340_v31   ;;  %v2644_v24 = vld [vmem:[%s4479_s1 + $0x30] sm:$0xf] }
  0xfa   :  { %379 = vperm.xlu1 %2769, %v2633_v33  }
  0xfc   :  { %v74_v35 = vpop.permute.xlu1 %73 }
  0xfd   :  { %77 = vst.msk [vmem:[#allocation2] sm:$0xf] %vm76_vm6, %v74_v35 }
  0xfe   :  { %633 = vperm.xlu1 %2769, %v2642_v34  }
 0x102   :  { %660 = vperm.xlu1 %2769, %v2643_v36  }
 0x104   :  { %v93_v37 = vpop.permute.xlu1 %92 }
 0x105   :  { %96 = vst.msk [vmem:[#allocation2] sm:$0xf] %vm4517_vm7, %v93_v37  ;;  %vm4528_vm7 = vcmask 1014784  }
 0x106   :  { %687 = vperm.xlu1 %2769, %v2644_v24  }
 0x10a   :  { %714 = vperm.xlu1 %2769, %v2645_v38  }
 0x10c   :  { %v112_v40 = vpop.permute.xlu1 %111 }
 0x10d   :  { %115 = vst.msk [vmem:[#allocation2] sm:$0xf] %vm4516_vm8, %v112_v40  ;;  %vm294_vm8 = vcmask 113668  }
 0x10e   :  { %741 = vperm.xlu1 %2769, %v2646_v39  }
 0x112   :  { %768 = vperm.xlu1 %2769, %v2647_v41  }
 0x114   :  { %v131_v43 = vpop.permute.xlu1 %130 }
 0x115   :  { %134 = vst.msk [vmem:[#allocation2] sm:$0xf] %vm4514_vm9, %v131_v43  ;;  %vm4529_vm9 = vcmask 1011536  }
 0x116   :  { %795 = vperm.xlu1 %2769, %v2648_v42  }
 0x11a   :  { %822 = vperm.xlu1 %2769, %v2649_v44  }
 0x11c   :  { %v150_v45 = vpop.permute.xlu1 %149 }
 0x11d   :  { %v151_v47 = vrot.slane %v150_v45, 4 }
 0x11f   :  { %v153_v48 = vsel %vm152_vm12, %v151_v47, %v150_v45 }
 0x120   :  { %158 = vst.msk [vmem:[#allocation2] sm:$0xff] %vm3048_vm13, %v153_v48 }
 0x124   :  { %v174_v49 = vpop.permute.xlu1 %173 }
 0x125   :  { %177 = vst.msk [vmem:[#allocation2 + $0x4] sm:$0xf] %vm4515_vm14, %v174_v49  ;;  %vm293_vm14 = vcmask 1044448  }
 0x12c   :  { %v193_v50 = vpop.permute.xlu1 %192 }
 0x12d   :  { %196 = vst.msk [vmem:[#allocation2 + $0x4] sm:$0xf] %vm4518_vm15, %v193_v50  ;;  %vm3061_vm15 = vmor %vm294_vm8, %vm293_vm14  ;;  %vm4525_vm8 = vcmask 404736   ;;  %vm394_vm14 = vcmask 1039360  }
 0x12e   :  { %v4568_v56 = vsel %vm3061_vm15, 4294967295, %v4567_v56 }
 0x12f   :  { %4569 = vst [vmem:[#allocation7_spill] sm:$0xff] %v4568_v56 }
 0x134   :  { %v212_v51 = vpop.permute.xlu1 %211 }
 0x135   :  { %215 = vst.msk [vmem:[#allocation2 + $0x4] sm:$0xf] %vm4530_vm2, %v212_v51  ;;  %vm589_vm2 = vcmask 736256  }
 0x13c   :  { %v231_v52 = vpop.permute.xlu1 %230 }
 0x13d   :  { %234 = vst.msk [vmem:[#allocation2 + $0x4] sm:$0xf] %vm4519_vm10, %v231_v52  ;;  %vm4527_vm10 = vcmask 257136  }
 0x144   :  { %v250_v53 = vpop.permute.xlu1 %249 }
 0x145   :  { %253 = vst.msk [vmem:[#allocation2 + $0x4] sm:$0xf] %vm4520_vm11, %v250_v53  ;;  %vm4526_vm11 = vcmask 552336  }
 0x14c   :  { %v269_v54 = vpop.permute.xlu1 %268 }
 0x14d   :  { %272 = vst.msk [vmem:[#allocation2 + $0x4] sm:$0xf] %vm4529_vm9, %v269_v54  ;;  %vm4551_vm9 = vcmask 744448  }
 0x154   :  { %v288_v55 = vpop.permute.xlu1 %287 }
 0x155   :  { %v289_v57 = vrot.slane %v288_v55, 4 }
 0x157   :  { %v291_v58 = vsel %vm4528_vm7, %v289_v57, %v288_v55  ;;  %vm533_vm7 = vcmask 752640  }
 0x158   :  { %296 = vst.msk [vmem:[#allocation2 + $0x4] sm:$0xff] %vm3061_vm15, %v291_v58 }
 0x15c   :  { %v317_v59 = vpop.permute.xlu0 %316  ;;  %v312_v60 = vpop.permute.xlu1 %311 }
 0x15d   :  { %315 = vst.msk [vmem:[#allocation2 + $0x8] sm:$0xf] %vm4527_vm10, %v312_v60  ;;  %vm505_vm10 = vcmask 883712  }
 0x15e   :  { %320 = vst.msk [vmem:[#allocation2 + $0x8] sm:$0xf] %vm4526_vm11, %v317_v59  ;;  %vm477_vm11 = vcmask 891904  }
 0x160   :  { %v324_v61 = vpop.permute.xlu1 %323  ;;  %v327_v62 = vpop.permute.xlu0 %326 }
 0x161   :  { %v332_v63 = vsel %vm28_vm0, %v324_v61, %v327_v62 }
 0x164   :  { %v330_v0 = vpop.permute.xlu1 %329 }
 0x165   :  { %v333_v1 = vsel %vm30_vm1, %v332_v63, %v330_v0 }
 0x166   :  { %335 = vrot.lane.b32.xlu0 %v333_v1, %s4522_s10  ;;  %s4556_s10 = smov 109  }
 0x16a   :  { %350 = vperm.xlu0 %2770, %v347_v2  }
 0x16e   :  { %407 = vperm.xlu0 %2770, %v2634_v3  }
 0x172   :  { %434 = vperm.xlu0 %2770, %v2635_v4  }
 0x175   :  { %v3103_v15 = vpop.permute.xlu1 %343 }
 0x176   :  { %462 = vperm.xlu0 %2770, %v2636_v5  }
 0x179   :  { %v380_v21 = vpop.permute.xlu1 %379 }
 0x17a   :  { %490 = vperm.xlu0 %2770, %v2637_v6  }
 0x17d   :  { %v634_v51 = vpop.permute.xlu1 %633 }
 0x17e   :  { %518 = vperm.xlu0 %2770, %v2638_v7  }
 0x181   :  { %v661_v58 = vpop.permute.xlu1 %660 }
 0x182   :  { %546 = vperm.xlu0 %2770, %v2639_v8  }
 0x185   :  { %v688_v63 = vpop.permute.xlu1 %687 }
 0x186   :  { %574 = vperm.xlu0 %2770, %v2640_v9  }
 0x189   :  { %v715_v4 = vpop.permute.xlu1 %714 }
 0x18a   :  { %604 = vperm.xlu0 %2770, %v2641_v10  }
 0x18d   :  { %v742_v10 = vpop.permute.xlu1 %741 }
 0x1d8   :  { %v336_v12 = vpop.permute.xlu0 %335 }
 0x1d9   :  { %339 = vst.msk [vmem:[#allocation2 + $0x8] sm:$0xf] %vm4525_vm8, %v336_v12  ;;  %vm449_vm8 = vcmask 900096  }
 0x1e0   :  { %v346_v17 = vld [vmem:[#allocation2] ss:$4 sm:$0x7]  ;;  %v599_v45 = vld [vmem:[#allocation2 + $0x1] ss:$4 sm:$0x7] }
 0x1e1   :  { %v3110_v19 = vrot.slane %v346_v17, %v3101_v14  ;;  %v3113_v20 = vrot.slane %v346_v17, %v3105_v16  ;;  %v3118_v25 = vrot.slane %v346_v17, %v3107_v18  ;;  %v3151_v48 = vrot.slane %v599_v45, %v3105_v16 }
 0x1e2   :  { %v3158_v52 = vrot.slane %v599_v45, %v3107_v18  ;;  %v3185_v5 = vrot.slane %v599_v45, %v3101_v14 }
 0x1e3   :  { %v383_v22 = vmul.f32 %v380_v21, %v3110_v19  ;;  %v382_v23 = vmul.f32 %v380_v21, %v3113_v20  ;;  %v384_v27 = vmul.f32 %v380_v21, %v3118_v25  ;;  %v636_v54 = vmul.f32 %v634_v51, %v3151_v48  ;;  %v769_v21 = vpop.permute.xlu1 %768 }
 0x1e4   :  { %v638_v57 = vmul.f32 %v634_v51, %v3158_v52  ;;  %v663_v60 = vmul.f32 %v661_v58, %v3151_v48  ;;  %v665_v62 = vmul.f32 %v661_v58, %v3158_v52  ;;  %v690_v1 = vmul.f32 %v688_v63, %v3151_v48 }
 0x1e5   :  { %390 = vrot.lane.b32.xlu0 %v383_v22, %s2795_s14  ;;  %388 = vrot.lane.b32.xlu1 %v382_v23, %s2795_s14  ;;  %v692_v3 = vmul.f32 %v688_v63, %v3158_v52  ;;  %v717_v7 = vmul.f32 %v715_v4, %v3151_v48  ;;  %v719_v8 = vmul.f32 %v715_v4, %v3158_v52 }
 0x1e6   :  { %v637_v9 = vmul.f32 %v634_v51, %v3185_v5  ;;  %v744_v11 = vmul.f32 %v742_v10, %v3151_v48  ;;  %v664_v12 = vmul.f32 %v661_v58, %v3185_v5  ;;  %v746_v13 = vmul.f32 %v742_v10, %v3158_v52 }
 0x1e7   :  { %v691_v17 = vmul.f32 %v688_v63, %v3185_v5  ;;  %v771_v22 = vmul.f32 %v769_v21, %v3151_v48  ;;  %v718_v23 = vmul.f32 %v715_v4, %v3185_v5 }
 0x1e9   :  { %v3122_v26 = vpop.permute.xlu0 %350  ;;  %392 = vrot.lane.b32.xlu1 %v384_v27, %s2795_s14  ;;  %v773_v27 = vmul.f32 %v769_v21, %v3158_v52 }
 0x1ea   :  { %v369_v63 = vmul.f32 %v3113_v20, %v3122_v26  ;;  %v370_v4 = vmul.f32 %v3110_v19, %v3122_v26 }
 0x1ed   :  { %v408_v28 = vpop.permute.xlu0 %407 }
 0x1ee   :  { %v411_v29 = vmul.f32 %v408_v28, %v3110_v19  ;;  %v410_v30 = vmul.f32 %v408_v28, %v3113_v20  ;;  %v412_v33 = vmul.f32 %v408_v28, %v3118_v25  ;;  %v745_v28 = vmul.f32 %v742_v10, %v3185_v5 }
 0x1f0   :  { %418 = vrot.lane.b32.xlu0 %v411_v29, %s2825_s13  ;;  %416 = vrot.lane.b32.xlu1 %v410_v30, %s2825_s13  ;;  %v796_v29 = vpop.permute.xlu1 %795  ;;  %v772_v30 = vmul.f32 %v769_v21, %v3185_v5 }
 0x1f1   :  { %v435_v31 = vpop.permute.xlu0 %434 }
 0x1f2   :  { %v438_v32 = vmul.f32 %v435_v31, %v3110_v19  ;;  %v437_v36 = vmul.f32 %v435_v31, %v3113_v20  ;;  %v439_v38 = vmul.f32 %v435_v31, %v3118_v25  ;;  %v798_v31 = vmul.f32 %v796_v29, %v3151_v48 }
 0x1f4   :  { %445 = vrot.lane.b32.xlu0 %v438_v32, %s4558_s5  ;;  %420 = vrot.lane.b32.xlu1 %v412_v33, %s2825_s13  ;;  %v799_v32 = vmul.f32 %v796_v29, %v3185_v5  ;;  %v800_v33 = vmul.f32 %v796_v29, %v3158_v52 }
 0x1f5   :  { %v463_v34 = vpop.permute.xlu0 %462 }
 0x1f6   :  { %v466_v35 = vmul.f32 %v463_v34, %v3110_v19  ;;  %v465_v41 = vmul.f32 %v463_v34, %v3113_v20  ;;  %v467_v43 = vmul.f32 %v463_v34, %v3118_v25  ;;  %v823_v34 = vpop.permute.xlu1 %822 }
 0x1f8   :  { %473 = vrot.lane.b32.xlu0 %v466_v35, %s4556_s10  ;;  %443 = vrot.lane.b32.xlu1 %v437_v36, %s4558_s5  ;;  %v825_v35 = vmul.f32 %v823_v34, %v3151_v48  ;;  %v826_v36 = vmul.f32 %v823_v34, %v3185_v5 }
 0x1f9   :  { %v491_v24 = vpop.permute.xlu0 %490 }
 0x1fa   :  { %v494_v37 = vmul.f32 %v491_v24, %v3110_v19  ;;  %v493_v49 = vmul.f32 %v491_v24, %v3113_v20  ;;  %v495_v53 = vmul.f32 %v491_v24, %v3118_v25  ;;  %v2650_v24 = vld [vmem:[%s4479_s1 + $0x48] sm:$0xf] }
 0x1fc   :  { %501 = vrot.lane.b32.xlu0 %v494_v37, %s4562_s8  ;;  %447 = vrot.lane.b32.xlu1 %v439_v38, %s4558_s5  ;;  %v827_v37 = vmul.f32 %v823_v34, %v3158_v52  ;;  %v2651_v38 = vld [vmem:[%s4479_s1 + $0x4c] sm:$0xf] }
 0x1fd   :  { %v519_v39 = vpop.permute.xlu0 %518 }
 0x1fe   :  { %v522_v40 = vmul.f32 %v519_v39, %v3110_v19  ;;  %v521_v55 = vmul.f32 %v519_v39, %v3113_v20  ;;  %v523_v59 = vmul.f32 %v519_v39, %v3118_v25 }
 0x200   :  { %529 = vrot.lane.b32.xlu0 %v522_v40, %s4554_s21  ;;  %471 = vrot.lane.b32.xlu1 %v465_v41, %s4556_s10 }
 0x201   :  { %v547_v42 = vpop.permute.xlu0 %546 }
 0x202   :  { %v550_v44 = vmul.f32 %v547_v42, %v3110_v19  ;;  %v549_v61 = vmul.f32 %v547_v42, %v3113_v20  ;;  %v551_v0 = vmul.f32 %v547_v42, %v3118_v25 }
 0x204   :  { %557 = vrot.lane.b32.xlu0 %v550_v44, %s4552_s24  ;;  %475 = vrot.lane.b32.xlu1 %v467_v43, %s4556_s10 }
 0x205   :  { %v575_v47 = vpop.permute.xlu0 %574 }
 0x206   :  { %v578_v50 = vmul.f32 %v575_v47, %v3110_v19  ;;  %v577_v2 = vmul.f32 %v575_v47, %v3113_v20  ;;  %v579_v6 = vmul.f32 %v575_v47, %v3118_v25 }
 0x208   :  { %585 = vrot.lane.b32.xlu0 %v578_v50, %s4560_s12  ;;  %499 = vrot.lane.b32.xlu1 %v493_v49, %s4562_s8 }
 0x209   :  { %v3231_v40 = vpop.permute.xlu0 %604 }
 0x20c   :  { %642 = vrot.lane.b32.xlu0 %v636_v54, %s2795_s14  ;;  %503 = vrot.lane.b32.xlu1 %v495_v53, %s4562_s8 }
 0x210   :  { %646 = vrot.lane.b32.xlu0 %v638_v57, %s2795_s14  ;;  %527 = vrot.lane.b32.xlu1 %v521_v55, %s4554_s21 }
 0x214   :  { %669 = vrot.lane.b32.xlu0 %v663_v60, %s2825_s13  ;;  %531 = vrot.lane.b32.xlu1 %v523_v59, %s4554_s21 }
 0x218   :  { %673 = vrot.lane.b32.xlu0 %v665_v62, %s2825_s13  ;;  %555 = vrot.lane.b32.xlu1 %v549_v61, %s4552_s24 }
 0x21c   :  { %696 = vrot.lane.b32.xlu0 %v690_v1, %s4558_s5  ;;  %559 = vrot.lane.b32.xlu1 %v551_v0, %s4552_s24 }
 0x220   :  { %700 = vrot.lane.b32.xlu0 %v692_v3, %s4558_s5  ;;  %583 = vrot.lane.b32.xlu1 %v577_v2, %s4560_s12  ;;  %v371_v2 = vmul.f32 %v3118_v25, %v3122_v26 }
 0x222   :  { %v374_v10 = vadd.f32 %v371_v2, %v3103_v15 }
 0x224   :  { %723 = vrot.lane.b32.xlu0 %v717_v7, %s4556_s10  ;;  %587 = vrot.lane.b32.xlu1 %v579_v6, %s4560_s12  ;;  %v372_v6 = vadd.f32 %v369_v63, %v3103_v15 }
 0x228   :  { %727 = vrot.lane.b32.xlu0 %v719_v8, %s4556_s10  ;;  %644 = vrot.lane.b32.xlu1 %v637_v9, %s2795_s14 }
 0x22c   :  { %750 = vrot.lane.b32.xlu0 %v744_v11, %s4562_s8  ;;  %671 = vrot.lane.b32.xlu1 %v664_v12, %s2825_s13  ;;  %v373_v12 = vadd.f32 %v370_v4, %v3103_v15 }
 0x230   :  { %754 = vrot.lane.b32.xlu0 %v746_v13, %s4562_s8  ;;  %698 = vrot.lane.b32.xlu1 %v691_v17, %s4558_s5 }
 0x234   :  { %777 = vrot.lane.b32.xlu0 %v771_v22, %s4554_s21  ;;  %725 = vrot.lane.b32.xlu1 %v718_v23, %s4556_s10 }
 0x238   :  { %781 = vrot.lane.b32.xlu0 %v773_v27, %s4554_s21  ;;  %752 = vrot.lane.b32.xlu1 %v745_v28, %s4562_s8 }
 0x23c   :  { %804 = vrot.lane.b32.xlu0 %v798_v31, %s4552_s24  ;;  %779 = vrot.lane.b32.xlu1 %v772_v30, %s4554_s21 }
 0x240   :  { %808 = vrot.lane.b32.xlu0 %v800_v33, %s4552_s24  ;;  %806 = vrot.lane.b32.xlu1 %v799_v32, %s4552_s24 }
 0x244   :  { %831 = vrot.lane.b32.xlu0 %v825_v35, %s4560_s12  ;;  %833 = vrot.lane.b32.xlu1 %v826_v36, %s4560_s12 }
 0x248   :  { %835 = vrot.lane.b32.xlu0 %v827_v37, %s4560_s12  ;;  %851 = vperm.xlu1 %2769, %v2650_v24  }
 0x24c   :  { %880 = vperm.xlu0 %2770, %v2651_v38  }
 0x257   :  { %v389_v39 = vpop.permute.xlu1 %388  ;;  %v391_v41 = vpop.permute.xlu0 %390 }
 0x258   :  { %v395_v3 = vsel %vm394_vm14, %v389_v39, %v391_v41 }
 0x259   :  { %v400_v8 = vadd.f32 %v395_v3, %v372_v6  ;;  %v625_v6 = vmul.f32 %v3158_v52, %v3231_v40 }
 0x25b   :  { %v393_v42 = vpop.permute.xlu1 %392 }
 0x25c   :  { %v396_v11 = vsel %vm394_vm14, %v391_v41, %v393_v42  ;;  %v402_v19 = vadd.f32 %v393_v42, %v374_v10 }
 0x25d   :  { %v401_v21 = vadd.f32 %v396_v11, %v373_v12 }
 0x262   :  { %v419_v43 = vpop.permute.xlu0 %418  ;;  %v417_v44 = vpop.permute.xlu1 %416 }
 0x263   :  { %v422_v7 = vsel %vm152_vm12, %v417_v44, %v419_v43 }
 0x264   :  { %v427_v13 = vadd.f32 %v422_v7, %v400_v8  ;;  %v624_v8 = vmul.f32 %v3185_v5, %v3231_v40 }
 0x266   :  { %v446_v45 = vpop.permute.xlu0 %445  ;;  %v421_v47 = vpop.permute.xlu1 %420 }
 0x267   :  { %v423_v26 = vsel %vm152_vm12, %v419_v43, %v421_v47  ;;  %v429_v28 = vadd.f32 %v421_v47, %v402_v19 }
 0x268   :  { %v428_v31 = vadd.f32 %v423_v26, %v401_v21 }
 0x26a   :  { %v474_v49 = vpop.permute.xlu0 %473  ;;  %v444_v50 = vpop.permute.xlu1 %443 }
 0x26b   :  { %v450_v25 = vsel %vm449_vm8, %v444_v50, %v446_v45 }
 0x26c   :  { %v455_v22 = vadd.f32 %v450_v25, %v427_v13 }
 0x26e   :  { %v502_v51 = vpop.permute.xlu0 %501  ;;  %v448_v53 = vpop.permute.xlu1 %447 }
 0x26f   :  { %v451_v29 = vsel %vm449_vm8, %v446_v45, %v448_v53  ;;  %v457_v32 = vadd.f32 %v448_v53, %v429_v28 }
 0x270   :  { %v456_v35 = vadd.f32 %v451_v29, %v428_v31 }
 0x272   :  { %v530_v54 = vpop.permute.xlu0 %529  ;;  %v472_v55 = vpop.permute.xlu1 %471 }
 0x273   :  { %v478_v17 = vsel %vm477_vm11, %v472_v55, %v474_v49 }
 0x274   :  { %v483_v15 = vadd.f32 %v478_v17, %v455_v22 }
 0x276   :  { %v558_v57 = vpop.permute.xlu0 %557  ;;  %v476_v58 = vpop.permute.xlu1 %475 }
 0x277   :  { %v479_v33 = vsel %vm477_vm11, %v474_v49, %v476_v58  ;;  %v485_v38 = vadd.f32 %v476_v58, %v457_v32 }
 0x278   :  { %v484_v42 = vadd.f32 %v479_v33, %v456_v35  ;;  %v2653_v35 = vld [vmem:[%s4479_s1 + $0x54] sm:$0xf] }
 0x27a   :  { %v3233_v59 = vpop.permute.xlu0 %585  ;;  %v500_v60 = vpop.permute.xlu1 %499 }
 0x27b   :  { %v506_v30 = vsel %vm505_vm10, %v500_v60, %v502_v51 }
 0x27c   :  { %v511_v36 = vadd.f32 %v506_v30, %v483_v15  ;;  %v2652_v30 = vld [vmem:[%s4479_s1 + $0x50] sm:$0xf] }
 0x27e   :  { %v3235_v61 = vpop.permute.xlu0 %642  ;;  %v504_v62 = vpop.permute.xlu1 %503 }
 0x27f   :  { %v507_v39 = vsel %vm505_vm10, %v502_v51, %v504_v62  ;;  %v513_v44 = vadd.f32 %v504_v62, %v485_v38  ;;  %v623_v51 = vmul.f32 %v3151_v48, %v3231_v40  ;;  %v846_v40 = vld [vmem:[#allocation2 + $0x2] ss:$4 sm:$0x7] }
 0x280   :  { %v512_v47 = vadd.f32 %v507_v39, %v484_v42  ;;  %v3307_v17 = vrot.slane %v846_v40, %v3105_v16  ;;  %v3310_v21 = vrot.slane %v846_v40, %v3101_v14  ;;  %v3315_v29 = vrot.slane %v846_v40, %v3107_v18  ;;  %v2654_v42 = vld [vmem:[%s4479_s1 + $0x58] sm:$0xf] }
 0x282   :  { %v3239_v0 = vpop.permute.xlu0 %646  ;;  %v528_v1 = vpop.permute.xlu1 %527 }
 0x283   :  { %v534_v34 = vsel %vm533_vm7, %v528_v1, %v530_v54 }
 0x284   :  { %v539_v43 = vadd.f32 %v534_v34, %v511_v36 }
 0x286   :  { %v3248_v20 = vpop.permute.xlu0 %669  ;;  %v532_v9 = vpop.permute.xlu1 %531 }
 0x287   :  { %v535_v45 = vsel %vm533_vm7, %v530_v54, %v532_v9  ;;  %v541_v55 = vadd.f32 %v532_v9, %v513_v44 }
 0x288   :  { %v540_v63 = vadd.f32 %v535_v45, %v512_v47 }
 0x28a   :  { %v3256_v23 = vpop.permute.xlu0 %673  ;;  %v556_v27 = vpop.permute.xlu1 %555 }
 0x28b   :  { %v562_v41 = vsel %vm4551_vm9, %v556_v27, %v558_v57 }
 0x28c   :  { %v567_v49 = vadd.f32 %v562_v41, %v539_v43 }
 0x28e   :  { %v3262_v24 = vpop.permute.xlu0 %696  ;;  %v560_v37 = vpop.permute.xlu1 %559 }
 0x28f   :  { %v563_v60 = vsel %vm4551_vm9, %v558_v57, %v560_v37  ;;  %v569_v2 = vadd.f32 %v560_v37, %v541_v55 }
 0x290   :  { %v568_v62 = vadd.f32 %v563_v60, %v540_v63 }
 0x292   :  { %v3267_v50 = vpop.permute.xlu0 %700  ;;  %v584_v53 = vpop.permute.xlu1 %583 }
 0x293   :  { %v590_v58 = vsel %vm589_vm2, %v584_v53, %v3233_v59  ;;  %v2655_v53 = vld [vmem:[%s4479_s1 + $0x5c] sm:$0xf] }
 0x294   :  { %v595_v1 = vadd.f32 %v590_v58, %v567_v49 }
 0x296   :  { %v3274_v3 = vadd.f32 %v623_v51, %v595_v1  ;;  %v3276_v54 = vpop.permute.xlu0 %723  ;;  %v588_v4 = vpop.permute.xlu1 %587  ;;  %v2656_v1 = vld [vmem:[%s4479_s1 + $0x60] sm:$0xf] }
 0x297   :  { %v591_v57 = vsel %vm589_vm2, %v3233_v59, %v588_v4  ;;  %v597_v7 = vadd.f32 %v588_v4, %v569_v2 }
 0x298   :  { %v596_v48 = vadd.f32 %v591_v57, %v568_v62 }
 0x299   :  { %v3284_v9 = vadd.f32 %v625_v6, %v597_v7  ;;  %v2657_v7 = vld [vmem:[%s4479_s1 + $0x64] sm:$0xf] }
 0x29a   :  { %v3286_v10 = vpop.permute.xlu0 %727  ;;  %v3288_v11 = vadd.f32 %v624_v8, %v596_v48 }
 0x29e   :  { %v3290_v25 = vpop.permute.xlu0 %750 }
 0x2a2   :  { %v3292_v12 = vpop.permute.xlu0 %754 }
 0x2a6   :  { %v3294_v13 = vpop.permute.xlu0 %777 }
 0x2aa   :  { %v3296_v52 = vpop.permute.xlu0 %781 }
 0x2ae   :  { %v3298_v59 = vpop.permute.xlu0 %804 }
 0x2b2   :  { %v3300_v19 = vpop.permute.xlu0 %808 }
 0x2b6   :  { %v3302_v5 = vpop.permute.xlu0 %831 }
 0x2ba   :  { %v3304_v26 = vpop.permute.xlu0 %835 }
 0x2cb   :  { %v881_v22 = vpop.permute.xlu0 %880 }
 0x2cc   :  { %v883_v27 = vmul.f32 %v881_v22, %v3307_v17  ;;  %v884_v28 = vmul.f32 %v881_v22, %v3310_v21  ;;  %v885_v31 = vmul.f32 %v881_v22, %v3315_v29 }
 0x2ce   :  { %891 = vrot.lane.b32.xlu0 %v884_v28, %s2795_s14  ;;  %889 = vrot.lane.b32.xlu1 %v883_v27, %s2795_s14  ;;  %v2658_v28 = vld [vmem:[%s4479_s1 + $0x68] sm:$0xf] }
 0x2d2   :  { %907 = vperm.xlu0 %2770, %v2652_v30   ;;  %893 = vrot.lane.b32.xlu1 %v885_v31, %s2795_s14 }
 0x340   :  { %v3324_v15 = vpop.permute.xlu0 %891 }
 0x351   :  { %v908_v32 = vpop.permute.xlu0 %907 }
 0x352   :  { %v910_v33 = vmul.f32 %v908_v32, %v3307_v17  ;;  %v911_v34 = vmul.f32 %v908_v32, %v3310_v21  ;;  %v912_v36 = vmul.f32 %v908_v32, %v3315_v29 }
 0x354   :  { %918 = vrot.lane.b32.xlu0 %v911_v34, %s2825_s13  ;;  %916 = vrot.lane.b32.xlu1 %v910_v33, %s2825_s13 }
 0x358   :  { %934 = vperm.xlu0 %2770, %v2653_v35   ;;  %920 = vrot.lane.b32.xlu1 %v912_v36, %s2825_s13  ;;  %v2659_v35 = vld [vmem:[%s4479_s1 + $0x6c] sm:$0xf] }
 0x3c6   :  { %v3335_v37 = vpop.permute.xlu0 %918 }
 0x3d7   :  { %v935_v38 = vpop.permute.xlu0 %934 }
 0x3d8   :  { %v937_v39 = vmul.f32 %v935_v38, %v3307_v17  ;;  %v938_v41 = vmul.f32 %v935_v38, %v3310_v21  ;;  %v939_v43 = vmul.f32 %v935_v38, %v3315_v29  ;;  %v3401_v38 = vpop.permute.xlu1 %644 }
 0x3da   :  { %945 = vrot.lane.b32.xlu0 %v938_v41, %s4558_s5  ;;  %943 = vrot.lane.b32.xlu1 %v937_v39, %s4558_s5  ;;  %v2660_v39 = vld [vmem:[%s4479_s1 + $0x70] sm:$0xf] }
 0x3dc   :  { %v3406_v41 = vpop.permute.xlu1 %671 }
 0x3de   :  { %961 = vperm.xlu0 %2770, %v2654_v42   ;;  %947 = vrot.lane.b32.xlu1 %v939_v43, %s4558_s5 }
 0x3e0   :  { %v3408_v42 = vpop.permute.xlu1 %698 }
 0x3e4   :  { %v3410_v43 = vpop.permute.xlu1 %725 }
 0x44c   :  { %v3346_v44 = vpop.permute.xlu0 %945 }
 0x45d   :  { %v962_v45 = vpop.permute.xlu0 %961 }
 0x45e   :  { %v964_v47 = vmul.f32 %v962_v45, %v3307_v17  ;;  %v965_v49 = vmul.f32 %v962_v45, %v3310_v21  ;;  %v966_v55 = vmul.f32 %v962_v45, %v3315_v29  ;;  %v3412_v45 = vpop.permute.xlu1 %752 }
 0x460   :  { %972 = vrot.lane.b32.xlu0 %v965_v49, %s4556_s10  ;;  %970 = vrot.lane.b32.xlu1 %v964_v47, %s4556_s10 }
 0x462   :  { %v3414_v47 = vpop.permute.xlu1 %779 }
 0x464   :  { %988 = vperm.xlu0 %2770, %v2655_v53   ;;  %974 = vrot.lane.b32.xlu1 %v966_v55, %s4556_s10 }
 0x466   :  { %v3416_v49 = vpop.permute.xlu1 %806 }
 0x46a   :  { %v3418_v53 = vpop.permute.xlu1 %833 }
 0x46e   :  { %v3420_v55 = vpop.permute.xlu1 %851 }
 0x4d2   :  { %v3357_v60 = vpop.permute.xlu0 %972 }
 0x4e3   :  { %v989_v58 = vpop.permute.xlu0 %988 }
 0x4e4   :  { %v991_v51 = vmul.f32 %v989_v58, %v3307_v17  ;;  %v992_v63 = vmul.f32 %v989_v58, %v3310_v21  ;;  %v993_v2 = vmul.f32 %v989_v58, %v3315_v29  ;;  %v3422_v58 = vpop.permute.xlu1 %889 }
 0x4e6   :  { %999 = vrot.lane.b32.xlu0 %v992_v63, %s4562_s8  ;;  %997 = vrot.lane.b32.xlu1 %v991_v51, %s4562_s8 }
 0x4e8   :  { %v3424_v51 = vpop.permute.xlu1 %893 }
 0x4ea   :  { %1015 = vperm.xlu0 %2770, %v2656_v1   ;;  %1001 = vrot.lane.b32.xlu1 %v993_v2, %s4562_s8 }
 0x4ec   :  { %v3426_v63 = vpop.permute.xlu1 %916 }
 0x4f0   :  { %v3428_v1 = vpop.permute.xlu1 %920 }
 0x4f4   :  { %v3430_v2 = vpop.permute.xlu1 %943 }
 0x558   :  { %v3368_v62 = vpop.permute.xlu0 %999 }
 0x569   :  { %v1016_v4 = vpop.permute.xlu0 %1015 }
 0x56a   :  { %v1018_v6 = vmul.f32 %v1016_v4, %v3307_v17  ;;  %v1019_v57 = vmul.f32 %v1016_v4, %v3310_v21  ;;  %v1020_v8 = vmul.f32 %v1016_v4, %v3315_v29  ;;  %v3432_v4 = vpop.permute.xlu1 %947 }
 0x56c   :  { %1026 = vrot.lane.b32.xlu0 %v1019_v57, %s4554_s21  ;;  %1024 = vrot.lane.b32.xlu1 %v1018_v6, %s4554_s21 }
 0x56e   :  { %v3434_v6 = vpop.permute.xlu1 %970 }
 0x570   :  { %1042 = vperm.xlu0 %2770, %v2657_v7   ;;  %1028 = vrot.lane.b32.xlu1 %v1020_v8, %s4554_s21 }
 0x572   :  { %v3436_v57 = vpop.permute.xlu1 %974 }
 0x576   :  { %v3438_v7 = vpop.permute.xlu1 %997 }
 0x57a   :  { %v3440_v8 = vpop.permute.xlu1 %1001 }
 0x5de   :  { %v3379_v48 = vpop.permute.xlu0 %1026 }
 0x5ef   :  { %v1043_v40 = vpop.permute.xlu0 %1042 }
 0x5f0   :  { %v1045_v22 = vmul.f32 %v1043_v40, %v3307_v17  ;;  %v1046_v27 = vmul.f32 %v1043_v40, %v3310_v21  ;;  %v1047_v30 = vmul.f32 %v1043_v40, %v3315_v29  ;;  %v3442_v40 = vpop.permute.xlu1 %1024 }
 0x5f2   :  { %1053 = vrot.lane.b32.xlu0 %v1046_v27, %s4552_s24  ;;  %1051 = vrot.lane.b32.xlu1 %v1045_v22, %s4552_s24 }
 0x5f4   :  { %v3444_v22 = vpop.permute.xlu1 %1028 }
 0x5f6   :  { %1069 = vperm.xlu0 %2770, %v2658_v28   ;;  %1055 = vrot.lane.b32.xlu1 %v1047_v30, %s4552_s24 }
 0x664   :  { %v3390_v31 = vpop.permute.xlu0 %1053  ;;  %v3446_v27 = vpop.permute.xlu1 %1051 }
 0x668   :  { %v3448_v28 = vpop.permute.xlu1 %1055 }
 0x669   :  { %4573 = vst [vmem:[#allocation11_spill] sm:$0xff] %v3448_v28 }
 0x675   :  { %v1070_v32 = vpop.permute.xlu0 %1069 }
 0x676   :  { %v1072_v33 = vmul.f32 %v1070_v32, %v3307_v17  ;;  %v1073_v34 = vmul.f32 %v1070_v32, %v3310_v21  ;;  %v1074_v36 = vmul.f32 %v1070_v32, %v3315_v29  ;;  %v1093_v32 = vld [vmem:[#allocation2 + $0x3] ss:$4 sm:$0x7] }
 0x677   :  { %v3463_v46 = vrot.slane %v1093_v32, %v3107_v18 }
 0x678   :  { %1080 = vrot.lane.b32.xlu0 %v1073_v34, %s4560_s12  ;;  %1078 = vrot.lane.b32.xlu1 %v1072_v33, %s4560_s12  ;;  %v3455_v34 = vrot.slane %v1093_v32, %v3105_v16  ;;  %v2661_v16 = vld [vmem:[%s4479_s1 + $0x74] sm:$0xf] }
 0x67c   :  { %1098 = vperm.xlu0 %2770, %v2659_v35   ;;  %1082 = vrot.lane.b32.xlu1 %v1074_v36, %s4560_s12  ;;  %v3458_v35 = vrot.slane %v1093_v32, %v3101_v14 }
 0x67e   :  { %4576 = vst [vmem:[#allocation14_spill] sm:$0xff] %v3458_v35 }
 0x680   :  { %1127 = vperm.xlu1 %2769, %v2660_v39  }
 0x6ea   :  { %v3450_v30 = vpop.permute.xlu1 %1078 }
 0x6eb   :  { %4574 = vst [vmem:[#allocation12_spill] sm:$0xff] %v3450_v30 }
 0x6ee   :  { %v3452_v33 = vpop.permute.xlu1 %1082 }
 0x6ef   :  { %4575 = vst [vmem:[#allocation13_spill] sm:$0xff] %v3452_v33 }
 0x6ff   :  { %v1128_v36 = vpop.permute.xlu1 %1127 }
 0x700   :  { %v1130_v39 = vmul.f32 %v1128_v36, %v3455_v34  ;;  %v1131_v56 = vmul.f32 %v1128_v36, %v3458_v35  ;;  %v1132_v33 = vmul.f32 %v1128_v36, %v3463_v46 }
 0x702   :  { %1138 = vrot.lane.b32.xlu1 %v1131_v56, %s2795_s14  ;;  %1136 = vrot.lane.b32.xlu0 %v1130_v39, %s2795_s14  ;;  %v2662_v56 = vld [vmem:[%s4479_s1 + $0x78] sm:$0xf] }
 0x706   :  { %1154 = vperm.xlu1 %2769, %v2661_v16   ;;  %1140 = vrot.lane.b32.xlu0 %v1132_v33, %s2795_s14 }
 0x774   :  { %v3472_v14 = vpop.permute.xlu1 %1138 }
 0x785   :  { %v1155_v28 = vpop.permute.xlu1 %1154 }
 0x786   :  { %v1157_v30 = vmul.f32 %v1155_v28, %v3455_v34  ;;  %v1158_v32 = vmul.f32 %v1155_v28, %v3458_v35  ;;  %v1159_v36 = vmul.f32 %v1155_v28, %v3463_v46 }
 0x788   :  { %1165 = vrot.lane.b32.xlu1 %v1158_v32, %s2825_s13  ;;  %1163 = vrot.lane.b32.xlu0 %v1157_v30, %s2825_s13  ;;  %v2663_v30 = vld [vmem:[%s4479_s1 + $0x7c] sm:$0xf] }
 0x78c   :  { %1181 = vperm.xlu1 %2769, %v2662_v56   ;;  %1167 = vrot.lane.b32.xlu0 %v1159_v36, %s2825_s13 }
 0x7fa   :  { %v3483_v16 = vpop.permute.xlu1 %1165 }
 0x7fb   :  { %4577 = vst [vmem:[#allocation15_spill] sm:$0xff] %v3483_v16 }
 0x80b   :  { %v1182_v33 = vpop.permute.xlu1 %1181 }
 0x80c   :  { %v1184_v39 = vmul.f32 %v1182_v33, %v3455_v34  ;;  %v1185_v18 = vmul.f32 %v1182_v33, %v3458_v35  ;;  %v1186_v28 = vmul.f32 %v1182_v33, %v3463_v46 }
 0x80e   :  { %1192 = vrot.lane.b32.xlu1 %v1185_v18, %s4558_s5  ;;  %1190 = vrot.lane.b32.xlu0 %v1184_v39, %s4558_s5  ;;  %v2664_v18 = vld [vmem:[%s4479_s1 + $0x80] sm:$0xf] }
 0x812   :  { %1208 = vperm.xlu1 %2769, %v2663_v30   ;;  %1194 = vrot.lane.b32.xlu0 %v1186_v28, %s4558_s5  ;;  %s4618_s5 = smov 19  }
 0x880   :  { %v3494_v32 = vpop.permute.xlu1 %1192 }
 0x881   :  { %4578 = vst [vmem:[#allocation16_spill] sm:$0xff] %v3494_v32 }
 0x891   :  { %v1209_v56 = vpop.permute.xlu1 %1208 }
 0x892   :  { %v1211_v36 = vmul.f32 %v1209_v56, %v3455_v34  ;;  %v1212_v16 = vmul.f32 %v1209_v56, %v3458_v35  ;;  %v1213_v33 = vmul.f32 %v1209_v56, %v3463_v46 }
 0x894   :  { %1219 = vrot.lane.b32.xlu1 %v1212_v16, %s4556_s10  ;;  %1217 = vrot.lane.b32.xlu0 %v1211_v36, %s4556_s10  ;;  %v2665_v16 = vld [vmem:[%s4479_s1 + $0x84] sm:$0xf] }
 0x898   :  { %1235 = vperm.xlu1 %2769, %v2664_v18   ;;  %1221 = vrot.lane.b32.xlu0 %v1213_v33, %s4556_s10  ;;  %s4617_s10 = smov 15  }
 0x906   :  { %v3505_v39 = vpop.permute.xlu1 %1219 }
 0x907   :  { %4579 = vst [vmem:[#allocation17_spill] sm:$0xff] %v3505_v39 }
 0x917   :  { %v1236_v30 = vpop.permute.xlu1 %1235 }
 0x918   :  { %v1238_v28 = vmul.f32 %v1236_v30, %v3455_v34  ;;  %v1239_v32 = vmul.f32 %v1236_v30, %v3458_v35  ;;  %v1240_v56 = vmul.f32 %v1236_v30, %v3463_v46 }
 0x91a   :  { %1246 = vrot.lane.b32.xlu1 %v1239_v32, %s4562_s8  ;;  %1244 = vrot.lane.b32.xlu0 %v1238_v28, %s4562_s8  ;;  %v2666_v32 = vld [vmem:[%s4479_s1 + $0x88] sm:$0xf] }
 0x91e   :  { %1262 = vperm.xlu1 %2769, %v2665_v16   ;;  %1248 = vrot.lane.b32.xlu0 %v1240_v56, %s4562_s8 }
 0x98c   :  { %v3516_v36 = vpop.permute.xlu1 %1246 }
 0x98d   :  { %4580 = vst [vmem:[#allocation18_spill] sm:$0xff] %v3516_v36 }
 0x99d   :  { %v1263_v18 = vpop.permute.xlu1 %1262 }
 0x99e   :  { %v1265_v33 = vmul.f32 %v1263_v18, %v3455_v34  ;;  %v1266_v39 = vmul.f32 %v1263_v18, %v3458_v35  ;;  %v1267_v30 = vmul.f32 %v1263_v18, %v3463_v46 }
 0x9a0   :  { %1273 = vrot.lane.b32.xlu1 %v1266_v39, %s4554_s21  ;;  %1271 = vrot.lane.b32.xlu0 %v1265_v33, %s4554_s21  ;;  %v2667_v39 = vld [vmem:[%s4479_s1 + $0x8c] sm:$0xf] }
 0x9a4   :  { %1289 = vperm.xlu1 %2769, %v2666_v32   ;;  %1275 = vrot.lane.b32.xlu0 %v1267_v30, %s4554_s21  ;;  %s4614_s21 = smov 35  }
 0xa12   :  { %v3527_v28 = vpop.permute.xlu1 %1273 }
 0xa13   :  { %4581 = vst [vmem:[#allocation19_spill] sm:$0xff] %v3527_v28 }
 0xa23   :  { %v1290_v16 = vpop.permute.xlu1 %1289 }
 0xa24   :  { %v1292_v56 = vmul.f32 %v1290_v16, %v3455_v34  ;;  %v1293_v36 = vmul.f32 %v1290_v16, %v3458_v35  ;;  %v1294_v18 = vmul.f32 %v1290_v16, %v3463_v46 }
 0xa26   :  { %1300 = vrot.lane.b32.xlu1 %v1293_v36, %s4552_s24  ;;  %1298 = vrot.lane.b32.xlu0 %v1292_v56, %s4552_s24  ;;  %v2668_v36 = vld [vmem:[%s4478_s0 + $0x8] sm:$0xf]  ;;  %v3561_v56 = vpop.permute.xlu0 %1080 }
 0xa2a   :  { %1316 = vperm.xlu1 %2769, %v2667_v39   ;;  %1302 = vrot.lane.b32.xlu0 %v1294_v18, %s4552_s24  ;;  %v3563_v39 = vpop.permute.xlu0 %1098  ;;  %s4613_s24 = smov 31  }
 0xa2e   :  { %v3565_v18 = vpop.permute.xlu0 %1136 }
 0xa2f   :  { %4584 = vst [vmem:[#allocation22_spill] sm:$0xff] %v3565_v18  ;;  %v675_v18 = vsel %vm152_vm12, %v3248_v20, %v3406_v41  ;;  %v729_v20 = vsel %vm477_vm11, %v3276_v54, %v3410_v43  ;;  %v730_v54 = vsel %vm477_vm11, %v3410_v43, %v3286_v10  ;;  %v837_v43 = vsel %vm589_vm2, %v3302_v5, %v3418_v53 }
 0xa30   :  { %v838_v5 = vsel %vm589_vm2, %v3418_v53, %v3304_v26 }
 0xa98   :  { %v3538_v33 = vpop.permute.xlu1 %1300 }
 0xa99   :  { %4582 = vst [vmem:[#allocation20_spill] sm:$0xff] %v3538_v33  ;;  %v648_v33 = vsel %vm394_vm14, %v3235_v61, %v3401_v38 }
 0xaa9   :  { %v1317_v32 = vpop.permute.xlu1 %1316 }
 0xaaa   :  { %v1319_v30 = vmul.f32 %v1317_v32, %v3455_v34  ;;  %v1320_v28 = vmul.f32 %v1317_v32, %v3458_v35  ;;  %v1321_v16 = vmul.f32 %v1317_v32, %v3463_v46  ;;  %v3567_v32 = vpop.permute.xlu0 %1140 }
 0xaab   :  { %4585 = vst [vmem:[#allocation23_spill] sm:$0xff] %v3567_v32  ;;  %v653_v32 = vadd.f32 %v648_v33, %v3274_v3 }
 0xaac   :  { %1327 = vrot.lane.b32.xlu1 %v1320_v28, %s4560_s12  ;;  %1325 = vrot.lane.b32.xlu0 %v1319_v30, %s4560_s12  ;;  %v3555_v28 = vld [vmem:[%s4478_s0 + $0x8] sm:$0xf] }
 0xaad   :  { %4583 = vst [vmem:[#allocation21_spill] sm:$0xff] %v3555_v28 }
 0xaae   :  { %v3569_v30 = vpop.permute.xlu0 %1163 }
 0xaaf   :  { %4586 = vst [vmem:[#allocation24_spill] sm:$0xff] %v3569_v30  ;;  %v680_v30 = vadd.f32 %v675_v18, %v653_v32 }
 0xab0   :  { %1329 = vrot.lane.b32.xlu0 %v1321_v16, %s4560_s12  ;;  %1355 = vrot.lane.b32.xlu1 %v2668_v36, %s2795_s14  ;;  %v655_v16 = vadd.f32 %v3239_v0, %v3284_v9  ;;  %v702_v9 = vsel %vm449_vm8, %v3262_v24, %v3408_v42  ;;  %v756_v24 = vsel %vm505_vm10, %v3290_v25, %v3412_v45 }
 0xab1   :  { %v707_v33 = vadd.f32 %v702_v9, %v680_v30  ;;  %v810_v25 = vsel %vm4551_vm9, %v3298_v59, %v3416_v49  ;;  %v811_v59 = vsel %vm4551_vm9, %v3416_v49, %v3300_v19  ;;  %v871_v49 = vmul.f32 %v3310_v21, %v3420_v55 }
 0xab2   :  { %v682_v35 = vadd.f32 %v3256_v23, %v655_v16  ;;  %v676_v16 = vsel %vm152_vm12, %v3406_v41, %v3256_v23  ;;  %v949_v21 = vsel %vm449_vm8, %v3430_v2, %v3346_v44  ;;  %v950_v2 = vsel %vm449_vm8, %v3346_v44, %v3432_v4 }
 0xab4   :  { %1358 = vrot.lane.b32.xlu0 %v2668_v36, %s2797_s18  ;;  %1361 = vrot.lane.b32.xlu1 %v2668_v36, %s2796_s15  ;;  %v3571_v36 = vpop.permute.xlu0 %1167  ;;  %v709_v61 = vadd.f32 %v3267_v50, %v682_v35  ;;  %v734_v35 = vadd.f32 %v729_v20, %v707_v33 }
 0xab5   :  { %4587 = vst [vmem:[#allocation25_spill] sm:$0xff] %v3571_v36  ;;  %v649_v36 = vsel %vm394_vm14, %v3401_v38, %v3239_v0  ;;  %v703_v0 = vsel %vm449_vm8, %v3408_v42, %v3267_v50  ;;  %v757_v50 = vsel %vm505_vm10, %v3412_v45, %v3292_v12  ;;  %v870_v45 = vmul.f32 %v3307_v17, %v3420_v55 }
 0xab6   :  { %v654_v3 = vadd.f32 %v649_v36, %v3288_v11  ;;  %v736_v23 = vadd.f32 %v3286_v10, %v709_v61  ;;  %v783_v11 = vsel %vm533_vm7, %v3294_v13, %v3414_v47  ;;  %v761_v18 = vadd.f32 %v756_v24, %v734_v35 }
 0xab7   :  { %v784_v13 = vsel %vm533_vm7, %v3414_v47, %v3296_v52 }
 0xab8   :  { %1373 = vrot.lane.b32.xlu1 %v3555_v28, %s2799_s22  ;;  %v681_v38 = vadd.f32 %v676_v16, %v654_v3  ;;  %v788_v30 = vadd.f32 %v783_v11, %v761_v18  ;;  %v763_v10 = vadd.f32 %v3292_v12, %v736_v23  ;;  %v872_v3 = vmul.f32 %v3315_v29, %v3420_v55 }
 0xab9   :  { %v976_v23 = vsel %vm477_vm11, %v3434_v6, %v3357_v60  ;;  %v977_v6 = vsel %vm477_vm11, %v3357_v60, %v3436_v57 }
 0xaba   :  { %v708_v41 = vadd.f32 %v703_v0, %v681_v38  ;;  %v815_v9 = vadd.f32 %v810_v25, %v788_v30  ;;  %v790_v61 = vadd.f32 %v3296_v52, %v763_v10  ;;  %v895_v52 = vsel %vm394_vm14, %v3422_v58, %v3324_v15 }
 0xabb   :  { %v896_v58 = vsel %vm394_vm14, %v3324_v15, %v3424_v51 }
 0xabc   :  { %1379 = vrot.lane.b32.xlu1 %v3555_v28, %s2801_s26  ;;  %v3578_v28 = vpop.permute.xlu0 %1190  ;;  %v735_v42 = vadd.f32 %v730_v54, %v708_v41  ;;  %v842_v16 = vadd.f32 %v837_v43, %v815_v9  ;;  %v817_v47 = vadd.f32 %v3300_v19, %v790_v61  ;;  %v922_v19 = vsel %vm152_vm12, %v3426_v63, %v3335_v37  ;;  %v4589_v43 = vld [vmem:[#allocation12_spill] sm:$0xff] }
 0xabd   :  { %4588 = vst [vmem:[#allocation26_spill] sm:$0xff] %v3578_v28  ;;  %v923_v63 = vsel %vm152_vm12, %v3335_v37, %v3428_v1 }
 0xabe   :  { %v762_v36 = vadd.f32 %v757_v50, %v735_v42  ;;  %v873_v33 = vadd.f32 %v870_v45, %v842_v16  ;;  %v844_v0 = vadd.f32 %v3304_v26, %v817_v47  ;;  %v4590_v45 = vld [vmem:[#allocation11_spill] sm:$0xff]  ;;  %v1119_v47 = vmul.f32 %v3463_v46, %v3563_v39 }
 0xabf   :  { %v1058_v61 = vsel %vm4551_vm9, %v3390_v31, %v4590_v45  ;;  %v4596_v46 = vld [vmem:[#allocation23_spill] sm:$0xff] }
 0xac0   :  { %v3599_v28 = vpop.permute.xlu0 %1194  ;;  %v789_v12 = vadd.f32 %v784_v13, %v762_v36  ;;  %v900_v53 = vadd.f32 %v895_v52, %v873_v33  ;;  %v875_v29 = vadd.f32 %v872_v3, %v844_v0  ;;  %v4593_v3 = vld [vmem:[#allocation14_spill] sm:$0xff]  ;;  %v4594_v33 = vld [vmem:[#allocation15_spill] sm:$0xff]  ;;  %v4595_v0 = vld [vmem:[#allocation24_spill] sm:$0xff] }
 0xac1   :  { %v1118_v52 = vmul.f32 %v4593_v3, %v3563_v39 }
 0xac2   :  { %v816_v17 = vadd.f32 %v811_v59, %v789_v12  ;;  %v927_v35 = vadd.f32 %v922_v19, %v900_v53  ;;  %v902_v26 = vadd.f32 %v3424_v51, %v875_v29  ;;  %v1003_v51 = vsel %vm505_vm10, %v3438_v7, %v3368_v62 }
 0xac3   :  { %v1004_v7 = vsel %vm505_vm10, %v3368_v62, %v3440_v8  ;;  %v1117_v62 = vmul.f32 %v3455_v34, %v3563_v39  ;;  %v1169_v19 = vsel %vm152_vm12, %v4595_v0, %v4594_v33  ;;  %v1143_v29 = vsel %vm394_vm14, %v3472_v14, %v4596_v46 }
 0xac4   :  { %v3614_v32 = vpop.permute.xlu0 %1217  ;;  %v843_v24 = vadd.f32 %v838_v5, %v816_v17  ;;  %v954_v11 = vadd.f32 %v949_v21, %v927_v35  ;;  %v929_v15 = vadd.f32 %v3428_v1, %v902_v26  ;;  %v1030_v1 = vsel %vm533_vm7, %v3442_v40, %v3379_v48  ;;  %v4592_v5 = vld [vmem:[#allocation22_spill] sm:$0xff] }
 0xac5   :  { %v1031_v40 = vsel %vm533_vm7, %v3379_v48, %v3444_v22  ;;  %v4591_v48 = vld [vmem:[#allocation13_spill] sm:$0xff]  ;;  %v1142_v34 = vsel %vm394_vm14, %v4592_v5, %v3472_v14  ;;  %v4598_v21 = vld [vmem:[#allocation26_spill] sm:$0xff] }
 0xac6   :  { %v874_v55 = vadd.f32 %v871_v49, %v843_v24  ;;  %v981_v18 = vadd.f32 %v976_v23, %v954_v11  ;;  %v956_v37 = vadd.f32 %v3432_v4, %v929_v15  ;;  %v1057_v4 = vsel %vm4551_vm9, %v3446_v27, %v3390_v31  ;;  %v4599_v23 = vld [vmem:[#allocation25_spill] sm:$0xff] }
 0xac7   :  { %v1085_v16 = vsel %vm589_vm2, %v3561_v56, %v4591_v48  ;;  %v4600_v11 = vld [vmem:[#allocation17_spill] sm:$0xff] }
 0xac8   :  { %v3635_v20 = vpop.permute.xlu0 %1221  ;;  %v901_v54 = vadd.f32 %v896_v58, %v874_v55  ;;  %v1008_v42 = vadd.f32 %v1003_v51, %v981_v18  ;;  %v983_v44 = vadd.f32 %v3436_v57, %v956_v37  ;;  %v1084_v57 = vsel %vm589_vm2, %v4589_v43, %v3561_v56  ;;  %v4597_v58 = vld [vmem:[#allocation16_spill] sm:$0xff]  ;;  %v4601_v18 = vld [vmem:[#allocation18_spill] sm:$0xff] }
 0xac9   :  { %v1196_v55 = vsel %vm449_vm8, %v4598_v21, %v4597_v58  ;;  %v1223_v15 = vsel %vm477_vm11, %v3614_v32, %v4600_v11  ;;  %v1224_v32 = vsel %vm477_vm11, %v4600_v11, %v3635_v20  ;;  %v2671_v21 = vld [vmem:[%s4478_s0 + $0x8] sm:$0xf] }
 0xaca   :  { %v928_v41 = vadd.f32 %v923_v63, %v901_v54  ;;  %v1035_v10 = vadd.f32 %v1030_v1, %v1008_v42  ;;  %v1010_v60 = vadd.f32 %v3440_v8, %v983_v44  ;;  %v1170_v54 = vsel %vm152_vm12, %v4594_v33, %v4599_v23  ;;  %v4602_v42 = vld [vmem:[#allocation19_spill] sm:$0xff] }
 0xacc   :  { %v3652_v38 = vpop.permute.xlu0 %1244  ;;  %v955_v25 = vadd.f32 %v950_v2, %v928_v41  ;;  %v1062_v9 = vadd.f32 %v1057_v4, %v1035_v10  ;;  %v1037_v27 = vadd.f32 %v3444_v22, %v1010_v60  ;;  %v1197_v41 = vsel %vm449_vm8, %v4597_v58, %v3599_v28 }
 0xacd   :  { %v1250_v37 = vsel %vm505_vm10, %v3652_v38, %v4601_v18  ;;  %v4603_v38 = vld [vmem:[#allocation20_spill] sm:$0xff] }
 0xace   :  { %v982_v30 = vadd.f32 %v977_v6, %v955_v25  ;;  %v1089_v59 = vadd.f32 %v1084_v57, %v1062_v9  ;;  %v1064_v12 = vadd.f32 %v4590_v45, %v1037_v27 }
 0xad0   :  { %v1249_v50 = vpop.permute.xlu0 %1248  ;;  %v1009_v36 = vadd.f32 %v1004_v7, %v982_v30  ;;  %v1120_v31 = vadd.f32 %v1117_v62, %v1089_v59  ;;  %v1091_v49 = vadd.f32 %v4591_v48, %v1064_v12 }
 0xad1   :  { %v1251_v60 = vsel %vm505_vm10, %v4601_v18, %v1249_v50  ;;  %v2673_v18 = vld [vmem:[%s4478_s0 + $0x8] sm:$0xf] }
 0xad2   :  { %v1036_v8 = vadd.f32 %v1031_v40, %v1009_v36  ;;  %v1147_v24 = vadd.f32 %v1142_v34, %v1120_v31  ;;  %v1122_v53 = vadd.f32 %v1119_v47, %v1091_v49 }
 0xad4   :  { %v1272_v13 = vpop.permute.xlu0 %1271  ;;  %v1063_v22 = vadd.f32 %v1058_v61, %v1036_v8  ;;  %v1174_v35 = vadd.f32 %v1169_v19, %v1147_v24  ;;  %v1149_v63 = vadd.f32 %v4596_v46, %v1122_v53  ;;  %v4604_v46 = vld [vmem:[#allocation21_spill] sm:$0xff] }
 0xad5   :  { %v1277_v44 = vsel %vm533_vm7, %v1272_v13, %v4602_v42 }
 0xad6   :  { %v1090_v56 = vadd.f32 %v1085_v16, %v1063_v22  ;;  %v1201_v51 = vadd.f32 %v1196_v55, %v1174_v35  ;;  %v1176_v14 = vadd.f32 %v4599_v23, %v1149_v63 }
 0xad8   :  { %v1276_v17 = vpop.permute.xlu0 %1275  ;;  %v1121_v39 = vadd.f32 %v1118_v52, %v1090_v56  ;;  %v1228_v1 = vadd.f32 %v1223_v15, %v1201_v51  ;;  %v1203_v25 = vadd.f32 %v3599_v28, %v1176_v14 }
 0xad9   :  { %v1278_v36 = vsel %vm533_vm7, %v4602_v42, %v1276_v17 }
 0xada   :  { %v1148_v2 = vadd.f32 %v1143_v29, %v1121_v39  ;;  %v1255_v4 = vadd.f32 %v1250_v37, %v1228_v1  ;;  %v1230_v10 = vadd.f32 %v3635_v20, %v1203_v25 }
 0xadc   :  { %v1299_v26 = vpop.permute.xlu0 %1298  ;;  %v1175_v6 = vadd.f32 %v1170_v54, %v1148_v2  ;;  %v1282_v28 = vadd.f32 %v1277_v44, %v1255_v4  ;;  %v1257_v57 = vadd.f32 %v1249_v50, %v1230_v10  ;;  %v2670_v50 = vld [vmem:[%s4478_s0 + $0x8] sm:$0xf] }
 0xadd   :  { %v1304_v40 = vsel %vm4551_vm9, %v1299_v26, %v4603_v38  ;;  %1392 = vrot.lane.b32.xlu1 %v2670_v50, %s2803_s30  ;;  %v2672_v54 = vld [vmem:[%s4478_s0 + $0x8] sm:$0xf] }
 0xade   :  { %v1202_v7 = vadd.f32 %v1197_v41, %v1175_v6  ;;  %v1309_v62 = vadd.f32 %v1304_v40, %v1282_v28  ;;  %v1284_v45 = vadd.f32 %v1276_v17, %v1257_v57  ;;  %v2674_v44 = vld [vmem:[%s4478_s0 + $0x8] sm:$0xf] }
 0xadf   :  { %v2675_v40 = vld [vmem:[%s4478_s0 + $0x8] sm:$0xf] }
 0xae0   :  { %v1303_v30 = vpop.permute.xlu0 %1302  ;;  %v1229_v43 = vadd.f32 %v1224_v32, %v1202_v7 }
 0xae1   :  { %v1305_v20 = vsel %vm4551_vm9, %v4603_v38, %v1303_v30  ;;  %v1311_v12 = vadd.f32 %v1303_v30, %v1284_v45  ;;  %vm1350_vm9 = vcmask 257024   ;;  %1398 = vrot.lane.b32.xlu1 %v2670_v50, %s2805_s7 }
 0xae2   :  { %v1256_v9 = vadd.f32 %v1251_v60, %v1229_v43 }
 0xae4   :  { %v1283_v8 = vadd.f32 %v1278_v36, %v1256_v9 }
 0xae5   :  { %1410 = vrot.lane.b32.xlu1 %v2671_v21, %s2807_s11 }
 0xae6   :  { %v1310_v48 = vadd.f32 %v1305_v20, %v1283_v8 }
 0xae9   :  { %1416 = vrot.lane.b32.xlu1 %v2671_v21, %s2809_s17 }
 0xaed   :  { %1428 = vrot.lane.b32.xlu1 %v2672_v54, %s2811_s25 }
 0xaf1   :  { %1434 = vrot.lane.b32.xlu1 %v2672_v54, %s4605_s4 }
 0xaf5   :  { %1446 = vrot.lane.b32.xlu1 %v2673_v18, %s4608_s29 }
 0xb1e   :  { %v1328_v13 = vpop.permute.xlu1 %1327  ;;  %v1326_v27 = vpop.permute.xlu0 %1325 }
 0xb1f   :  { %v1331_v61 = vsel %vm589_vm2, %v1326_v27, %v1328_v13 }
 0xb20   :  { %v1336_v59 = vadd.f32 %v1331_v61, %v1309_v62 }
 0xb22   :  { %v1330_v16 = vpop.permute.xlu0 %1329  ;;  %v1356_v47 = vpop.permute.xlu1 %1355  ;;  %v1339_v22 = vmul.f32 0.2, %v1336_v59 }
 0xb23   :  { %v1332_v5 = vsel %vm589_vm2, %v1328_v13, %v1330_v16  ;;  %v1338_v34 = vadd.f32 %v1330_v16, %v1311_v12  ;;  %v2676_v13 = vld [vmem:[%s4478_s0 + $0xc] sm:$0xf] }
 0xb24   :  { %v1337_v3 = vadd.f32 %v1332_v5, %v1310_v48  ;;  %v1342_v19 = vmax.f32 %v1336_v59, %v1339_v22  ;;  %v2677_v12 = vld [vmem:[%s4478_s0 + $0xc] sm:$0xf] }
 0xb25   :  { %v1341_v52 = vmul.f32 0.2, %v1338_v34 }
 0xb26   :  { %v1340_v31 = vmul.f32 0.2, %v1337_v3  ;;  %v1359_v17 = vpop.permute.xlu0 %1358  ;;  %v1362_v49 = vpop.permute.xlu1 %1361 }
 0xb27   :  { %v1344_v33 = vmax.f32 %v1338_v34, %v1341_v52  ;;  %v1364_v0 = vsel %vm28_vm0, %v1356_v47, %v1359_v17 }
 0xb28   :  { %v1343_v56 = vmax.f32 %v1337_v3, %v1340_v31  ;;  %v1365_v24 = vsel %vm30_vm1, %v1364_v0, %v1362_v49  ;;  %v2678_v31 = vld [vmem:[%s4478_s0 + $0xc] sm:$0xf] }
 0xb29   :  { %1351 = vst.msk [vmem:[#allocation3 + $0x8] sm:$0xf] %vm1350_vm9, %v1344_v33  ;;  %1367 = vrot.lane.b32.xlu0 %v1365_v24, %s2819_s27  ;;  %s4609_s27 = smov 51   ;;  %v2679_v24 = vld [vmem:[%s4478_s0 + $0xc] sm:$0xf] }
 0xb2a   :  { %v1347_v53 = vcombine.low %v1342_v19, %v1343_v56  ;;  %v1374_v29 = vpop.permute.xlu1 %1373  ;;  %1452 = vrot.lane.b32.xlu1 %v2673_v18, %s4609_s27 }
 0xb2c   :  { %1349 = vst [vmem:[#allocation3] sm:$0xff] %v1347_v53 }
 0xb2d   :  { %1376 = vrot.lane.b32.xlu0 %v4604_v46, %s2798_s19 }
 0xb2e   :  { %v1380_v55 = vpop.permute.xlu1 %1379  ;;  %1464 = vrot.lane.b32.xlu1 %v2674_v44, %s4613_s24 }
 0xb32   :  { %1470 = vrot.lane.b32.xlu1 %v2674_v44, %s4614_s21 }
 0xb36   :  { %1484 = vrot.lane.b32.xlu1 %v2675_v40, %s4617_s10 }
 0xb3a   :  { %1490 = vrot.lane.b32.xlu1 %v2675_v40, %s4618_s5 }
 0xb3e   :  { %1502 = vrot.lane.b32.xlu1 %v2676_v13, %s2795_s14 }
 0xb42   :  { %1508 = vrot.lane.b32.xlu1 %v2676_v13, %s2796_s15  ;;  %s4623_s15 = smov 16  }
 0xb46   :  { %1520 = vrot.lane.b32.xlu1 %v2677_v12, %s2799_s22 }
 0xb4a   :  { %1526 = vrot.lane.b32.xlu1 %v2677_v12, %s2801_s26  ;;  %s4625_s26 = smov 34  }
 0xb4e   :  { %1538 = vrot.lane.b32.xlu1 %v2678_v31, %s2803_s30  ;;  %s4627_s30 = smov 52  }
 0xb4f   :  { %v1393_v63 = vpop.permute.xlu1 %1392 }
 0xb52   :  { %1544 = vrot.lane.b32.xlu1 %v2678_v31, %s2805_s7  ;;  %s4648_s7 = smov 109  }
 0xb53   :  { %v1399_v11 = vpop.permute.xlu1 %1398 }
 0xb56   :  { %1556 = vrot.lane.b32.xlu1 %v2679_v24, %s2807_s11  ;;  %s4629_s11 = smov 70  }
 0xb57   :  { %v1411_v14 = vpop.permute.xlu1 %1410 }
 0xb5a   :  { %1562 = vrot.lane.b32.xlu1 %v2679_v24, %s2809_s17  ;;  %s4649_s17 = smov 108  }
 0xb5b   :  { %v1417_v37 = vpop.permute.xlu1 %1416 }
 0xb5f   :  { %v1429_v32 = vpop.permute.xlu1 %1428 }
 0xb63   :  { %v1435_v7 = vpop.permute.xlu1 %1434 }
 0xb67   :  { %v1447_v60 = vpop.permute.xlu1 %1446 }
 0xb9b   :  { %v1368_v58 = vpop.permute.xlu0 %1367 }
 0xb9c   :  { %1370 = vst.msk [vmem:[#allocation2] sm:$0xf] %vm36_vm3, %v1368_v58  ;;  %vm4612_vm3 = vcmask 732736   ;;  %v1453_v43 = vpop.permute.xlu1 %1452 }
 0xb9f   :  { %v1377_v39 = vpop.permute.xlu0 %1376 }
 0xba0   :  { %v1382_v35 = vsel %vm28_vm0, %v1374_v29, %v1377_v39  ;;  %v1465_v9 = vpop.permute.xlu1 %1464  ;;  %v2680_v39 = vld [vmem:[%s4478_s0 + $0xc] sm:$0xf] }
 0xba1   :  { %v1383_v26 = vsel %vm30_vm1, %v1382_v35, %v1380_v55  ;;  %1574 = vrot.lane.b32.xlu1 %v2680_v39, %s2811_s25  ;;  %s4631_s25 = smov 88  }
 0xba2   :  { %1385 = vrot.lane.b32.xlu0 %v1383_v26, %s2820_s6  ;;  %s4606_s6 = smov 54  }
 0xba4   :  { %v1471_v27 = vpop.permute.xlu1 %1470 }
 0xba5   :  { %1580 = vrot.lane.b32.xlu1 %v2680_v39, %s4605_s4 }
 0xba6   :  { %1395 = vrot.lane.b32.xlu0 %v2670_v50, %s2800_s23  ;;  %v1657_v50 = vld [vmem:[%s4479_s1] sm:$0xf] }
 0xba8   :  { %v1485_v8 = vpop.permute.xlu1 %1484 }
 0xbac   :  { %v1491_v47 = vpop.permute.xlu1 %1490 }
 0xbb0   :  { %v1503_v3 = vpop.permute.xlu1 %1502 }
 0xbb4   :  { %v1509_v17 = vpop.permute.xlu1 %1508 }
 0xbb8   :  { %v1521_v19 = vpop.permute.xlu1 %1520 }
 0xbbc   :  { %v1527_v53 = vpop.permute.xlu1 %1526 }
 0xc14   :  { %v1386_v23 = vpop.permute.xlu0 %1385 }
 0xc15   :  { %1388 = vst.msk [vmem:[#allocation2] sm:$0xf] %vm55_vm4, %v1386_v23  ;;  %vm4616_vm4 = vcmask 880336  }
 0xc16   :  { %1389 = vst.msk [vmem:[#allocation2] sm:$0xf] %vm57_vm5, %v1383_v26  ;;  %vm4620_vm5 = vcmask 1027936  }
 0xc18   :  { %v1396_v15 = vpop.permute.xlu0 %1395 }
 0xc19   :  { %v1401_v2 = vsel %vm28_vm0, %v1393_v63, %v1396_v15  ;;  %v2681_v15 = vld [vmem:[%s4478_s0 + $0xc] sm:$0xf] }
 0xc1a   :  { %v1402_v51 = vsel %vm30_vm1, %v1401_v2, %v1399_v11  ;;  %1592 = vrot.lane.b32.xlu1 %v2681_v15, %s4608_s29  ;;  %s4633_s29 = smov 106  }
 0xc1b   :  { %1404 = vrot.lane.b32.xlu0 %v1402_v51, %s4606_s6  ;;  %s4611_s6 = smov 65  }
 0xc1e   :  { %1598 = vrot.lane.b32.xlu1 %v2681_v15, %s4609_s27  ;;  %s4639_s27 = smov 14  }
 0xc1f   :  { %1413 = vrot.lane.b32.xlu0 %v2671_v21, %s4607_s9  ;;  %v1539_v21 = vpop.permute.xlu1 %1538 }
 0xc23   :  { %v1545_v35 = vpop.permute.xlu1 %1544 }
 0xc8d   :  { %v1405_v41 = vpop.permute.xlu0 %1404 }
 0xc8e   :  { %1407 = vst.msk [vmem:[#allocation2] sm:$0xf] %vm76_vm6, %v1405_v41  ;;  %vm4624_vm6 = vcmask 273536  }
 0xc91   :  { %v1414_v6 = vpop.permute.xlu0 %1413 }
 0xc92   :  { %v1419_v1 = vsel %vm28_vm0, %v1411_v14, %v1414_v6  ;;  %v2682_v6 = vld [vmem:[%s4478_s0 + $0xc] sm:$0xf] }
 0xc93   :  { %v1420_v25 = vsel %vm30_vm1, %v1419_v1, %v1417_v37  ;;  %1612 = vrot.lane.b32.xlu1 %v2682_v6, %s4613_s24  ;;  %s4635_s24 = smov 124  }
 0xc94   :  { %1422 = vrot.lane.b32.xlu0 %v1420_v25, %s4610_s16  ;;  %s4615_s16 = smov 49  }
 0xc97   :  { %1618 = vrot.lane.b32.xlu1 %v2682_v6, %s4614_s21  ;;  %s4638_s21 = smov 50  }
 0xc98   :  { %1431 = vrot.lane.b32.xlu0 %v2672_v54, %s4611_s6  ;;  %v1557_v54 = vpop.permute.xlu1 %1556 }
 0xc9c   :  { %v1563_v2 = vpop.permute.xlu1 %1562 }
 0xd06   :  { %v1423_v42 = vpop.permute.xlu0 %1422 }
 0xd07   :  { %1425 = vst.msk [vmem:[#allocation2] sm:$0xf] %vm4612_vm3, %v1423_v42  ;;  %vm4628_vm3 = vcmask 568736  }
 0xd0a   :  { %v1432_v4 = vpop.permute.xlu0 %1431 }
 0xd0b   :  { %v1437_v30 = vsel %vm28_vm0, %v1429_v32, %v1432_v4 }
 0xd0c   :  { %v1438_v10 = vsel %vm30_vm1, %v1437_v30, %v1435_v7 }
 0xd0d   :  { %1440 = vrot.lane.b32.xlu0 %v1438_v10, %s4560_s12  ;;  %s4619_s12 = smov 33  }
 0xd11   :  { %1449 = vrot.lane.b32.xlu0 %v2673_v18, %s4615_s16  ;;  %v1575_v18 = vpop.permute.xlu1 %1574 }
 0xd15   :  { %v1581_v1 = vpop.permute.xlu1 %1580 }
 0xd7f   :  { %v1441_v38 = vpop.permute.xlu0 %1440 }
 0xd80   :  { %1443 = vst.msk [vmem:[#allocation2] sm:$0xf] %vm4616_vm4, %v1441_v38  ;;  %vm4630_vm4 = vcmask 716336  }
 0xd83   :  { %v1450_v28 = vpop.permute.xlu0 %1449 }
 0xd84   :  { %v1455_v57 = vsel %vm28_vm0, %v1447_v60, %v1450_v28 }
 0xd85   :  { %v1456_v36 = vsel %vm30_vm1, %v1455_v57, %v1453_v43 }
 0xd86   :  { %1458 = vrot.lane.b32.xlu0 %v1456_v36, %s4562_s8  ;;  %s4621_s8 = smov 17  }
 0xd8a   :  { %1467 = vrot.lane.b32.xlu0 %v2674_v44, %s4619_s12  ;;  %v1593_v44 = vpop.permute.xlu1 %1592 }
 0xd8e   :  { %v1599_v4 = vpop.permute.xlu1 %1598 }
 0xd92   :  { %v1613_v38 = vpop.permute.xlu1 %1612 }
 0xd96   :  { %v1619_v57 = vpop.permute.xlu1 %1618 }
 0xdf8   :  { %v1459_v62 = vpop.permute.xlu0 %1458 }
 0xdf9   :  { %1461 = vst.msk [vmem:[#allocation2] sm:$0xf] %vm4620_vm5, %v1459_v62  ;;  %vm4632_vm5 = vcmask 863936  }
 0xdfc   :  { %v1468_v45 = vpop.permute.xlu0 %1467 }
 0xdfd   :  { %v1473_v20 = vsel %vm28_vm0, %v1465_v9, %v1468_v45  ;;  %v1650_v45 = vld [vmem:[%s4480_s2] sm:$0xf] }
 0xdfe   :  { %v1474_v61 = vsel %vm30_vm1, %v1473_v20, %v1471_v27  ;;  %v2683_v27 = vld [vmem:[%s4478_s0 + $0xc] sm:$0xf]  ;;  %v2684_v20 = vld [vmem:[%s4479_s1 + $0x4] sm:$0xf]  ;;  %s4642_s0 = smov 32  }
 0xdff   :  { %1476 = vrot.lane.b32.xlu0 %v1474_v61, %s2825_s13 }
 0xe03   :  { %1487 = vrot.lane.b32.xlu0 %v2675_v40, %s4621_s8 }
 0xe71   :  { %v1477_v59 = vpop.permute.xlu0 %1476 }
 0xe72   :  { %v1478_v48 = vrot.slane %v1477_v59, 4 }
 0xe74   :  { %v1479_v16 = vsel %vm152_vm12, %v1478_v48, %v1477_v59 }
 0xe75   :  { %1481 = vst.msk [vmem:[#allocation2] sm:$0xff] %vm3048_vm13, %v1479_v16  ;;  %v1488_v5 = vpop.permute.xlu0 %1487  ;;  %vm4626_vm13 = vcmask 421136  }
 0xe76   :  { %v1493_v34 = vsel %vm28_vm0, %v1485_v8, %v1488_v5 }
 0xe77   :  { %v1494_v22 = vsel %vm30_vm1, %v1493_v34, %v1491_v47 }
 0xe78   :  { %1496 = vrot.lane.b32.xlu0 %v1494_v22, %s4623_s15 }
 0xe7c   :  { %1505 = vrot.lane.b32.xlu0 %v2676_v13, %s2797_s18 }
 0xeea   :  { %v1497_v52 = vpop.permute.xlu0 %1496 }
 0xeeb   :  { %1499 = vst.msk [vmem:[#allocation2 + $0x4] sm:$0xf] %vm4624_vm6, %v1497_v52  ;;  %vm4634_vm6 = vcmask 1011536  }
 0xeee   :  { %v1506_v49 = vpop.permute.xlu0 %1505 }
 0xeef   :  { %v1511_v33 = vsel %vm28_vm0, %v1503_v3, %v1506_v49  ;;  %v4644_v3 = vld [vmem:[#allocation9_spill] sm:$0xff] }
 0xef0   :  { %v1512_v0 = vsel %vm30_vm1, %v1511_v33, %v1509_v17  ;;  %v4646_v33 = vld [vmem:[#allocation10_spill] sm:$0xff] }
 0xef1   :  { %1514 = vrot.lane.b32.xlu0 %v1512_v0, %s4625_s26 }
 0xef5   :  { %1523 = vrot.lane.b32.xlu0 %v2677_v12, %s2798_s19 }
 0xf63   :  { %v1515_v56 = vpop.permute.xlu0 %1514 }
 0xf64   :  { %1517 = vst.msk [vmem:[#allocation2 + $0x4] sm:$0xf] %vm4626_vm13, %v1515_v56  ;;  %vm4636_vm13 = vcmask 1014784  }
 0xf67   :  { %v1524_v46 = vpop.permute.xlu0 %1523 }
 0xf68   :  { %v1529_v29 = vsel %vm28_vm0, %v1521_v19, %v1524_v46 }
 0xf69   :  { %v1530_v58 = vsel %vm30_vm1, %v1529_v29, %v1527_v53 }
 0xf6a   :  { %1532 = vrot.lane.b32.xlu0 %v1530_v58, %s4627_s30 }
 0xf6e   :  { %1541 = vrot.lane.b32.xlu0 %v2678_v31, %s2800_s23  ;;  %v4645_v31 = vld [vmem:[#allocation8_spill] sm:$0xff] }
 0xfdc   :  { %v1533_v55 = vpop.permute.xlu0 %1532 }
 0xfdd   :  { %1535 = vst.msk [vmem:[#allocation2 + $0x4] sm:$0xf] %vm4628_vm3, %v1533_v55  ;;  %vm4641_vm3 = vcmask 552336   ;;  %v2686_v55 = vld [vmem:[%s4479_s1 + $0xc] sm:$0xf] }
 0xfe0   :  { %v1542_v26 = vpop.permute.xlu0 %1541 }
 0xfe1   :  { %v1547_v63 = vsel %vm28_vm0, %v1539_v21, %v1542_v26 }
 0xfe2   :  { %v1548_v23 = vsel %vm30_vm1, %v1547_v63, %v1545_v35 }
 0xfe3   :  { %1550 = vrot.lane.b32.xlu0 %v1548_v23, %s4629_s11 }
 0xfe7   :  { %1559 = vrot.lane.b32.xlu0 %v2679_v24, %s4607_s9  ;;  %v2685_v24 = vld [vmem:[%s4479_s1 + $0x8] sm:$0xf]  ;;  %s4650_s9 = smov 92  }
0x1055   :  { %v1551_v11 = vpop.permute.xlu0 %1550 }
0x1056   :  { %1553 = vst.msk [vmem:[#allocation2 + $0x4] sm:$0xf] %vm4630_vm4, %v1551_v11  ;;  %vm4643_vm4 = vcmask 404736  }
0x1059   :  { %v1560_v51 = vpop.permute.xlu0 %1559 }
0x105a   :  { %v1565_v14 = vsel %vm28_vm0, %v1557_v54, %v1560_v51  ;;  %v2687_v54 = vld [vmem:[%s4479_s1 + $0x10] sm:$0xf] }
0x105b   :  { %v1566_v41 = vsel %vm30_vm1, %v1565_v14, %v1563_v2 }
0x105c   :  { %1568 = vrot.lane.b32.xlu0 %v1566_v41, %s4631_s25  ;;  %v2688_v41 = vld [vmem:[%s4479_s1 + $0x14] sm:$0xf] }
0x1060   :  { %1577 = vrot.lane.b32.xlu0 %v2680_v39, %s4611_s6 }
0x10ce   :  { %v1569_v37 = vpop.permute.xlu0 %1568 }
0x10cf   :  { %1571 = vst.msk [vmem:[#allocation2 + $0x4] sm:$0xf] %vm4632_vm5, %v1569_v37 }
0x10d2   :  { %v1578_v25 = vpop.permute.xlu0 %1577 }
0x10d3   :  { %v1583_v32 = vsel %vm28_vm0, %v1575_v18, %v1578_v25 }
0x10d4   :  { %v1584_v42 = vsel %vm30_vm1, %v1583_v32, %v1581_v1  ;;  %v2689_v32 = vld [vmem:[%s4479_s1 + $0x18] sm:$0xf] }
0x10d5   :  { %1586 = vrot.lane.b32.xlu0 %v1584_v42, %s4633_s29 }
0x10d9   :  { %1595 = vrot.lane.b32.xlu0 %v2681_v15, %s4615_s16 }
0x1147   :  { %v1587_v7 = vpop.permute.xlu0 %1586 }
0x1148   :  { %1589 = vst.msk [vmem:[#allocation2 + $0x4] sm:$0xf] %vm4634_vm6, %v1587_v7 }
0x114b   :  { %v1596_v30 = vpop.permute.xlu0 %1595 }
0x114c   :  { %v1601_v10 = vsel %vm28_vm0, %v1593_v44, %v1596_v30 }
0x114d   :  { %v1602_v60 = vsel %vm30_vm1, %v1601_v10, %v1599_v4  ;;  %v2690_v10 = vld [vmem:[%s4479_s1 + $0x1c] sm:$0xf] }
0x114e   :  { %1604 = vrot.lane.b32.xlu0 %v1602_v60, %s4635_s24 }
0x1152   :  { %1615 = vrot.lane.b32.xlu0 %v2682_v6, %s4619_s12  ;;  %s4652_s12 = smov 90  }
0x11c0   :  { %v1605_v40 = vpop.permute.xlu0 %1604 }
0x11c1   :  { %v1606_v43 = vrot.slane %v1605_v40, 4 }
0x11c3   :  { %v1607_v28 = vsel %vm4636_vm13, %v1606_v43, %v1605_v40 }
0x11c4   :  { %1609 = vst.msk [vmem:[#allocation2 + $0x4] sm:$0xff] %vm3061_vm15, %v1607_v28  ;;  %v1616_v9 = vpop.permute.xlu0 %1615  ;;  %vm4640_vm15 = vcmask 257136  }
0x11c5   :  { %v1621_v62 = vsel %vm28_vm0, %v1613_v38, %v1616_v9 }
0x11c6   :  { %v1622_v13 = vsel %vm30_vm1, %v1621_v62, %v1619_v57  ;;  %v2691_v57 = vld [vmem:[%s4479_s1 + $0x20] sm:$0xf] }
0x11c7   :  { %1628 = vrot.lane.b32.xlu1 %v1622_v13, %s4638_s21  ;;  %1624 = vrot.lane.b32.xlu0 %v1622_v13, %s4639_s27  ;;  %s4651_s21 = smov 91  }
0x11cb   :  { %1637 = vrot.lane.b32.xlu1 %v2683_v27, %s4621_s8  ;;  %1634 = vrot.lane.b32.xlu0 %v2683_v27, %s4617_s10 }
0x11cf   :  { %1640 = vrot.lane.b32.xlu0 %v2683_v27, %s4618_s5 }
0x11d3   :  { %1653 = vperm.xlu0 %2770, %v1650_v45   ;;  %v2692_v45 = vld [vmem:[%s4479_s1 + $0x24] sm:$0xf] }
0x11d7   :  { %1688 = vperm.xlu0 %2770, %v2684_v20  }
0x1239   :  { %v1629_v61 = vpop.permute.xlu1 %1628  ;;  %v1625_v8 = vpop.permute.xlu0 %1624 }
0x123a   :  { %1627 = vst.msk [vmem:[#allocation2 + $0x8] sm:$0xf] %vm4640_vm15, %v1625_v8 }
0x123b   :  { %1631 = vst.msk [vmem:[#allocation2 + $0x8] sm:$0xf] %vm4641_vm3, %v1629_v61  ;;  %v2693_v61 = vld [vmem:[%s4479_s1 + $0x28] sm:$0xf] }
0x123d   :  { %v1635_v59 = vpop.permute.xlu0 %1634  ;;  %v1638_v12 = vpop.permute.xlu1 %1637 }
0x123e   :  { %v1643_v48 = vsel %vm28_vm0, %v1635_v59, %v1638_v12  ;;  %vm4653_vm0 = vcmask 744448  }
0x123f   :  { %vm4655_vm5 = vmmov %vm4653_vm0 }
0x1240   :  { %vm4656_vm6 = vmmov %vm4653_vm0 }
0x1241   :  { %v1641_v16 = vpop.permute.xlu0 %1640  ;;  %vm4657_vm13 = vmmov %vm4653_vm0 }
0x1242   :  { %v1644_v47 = vsel %vm30_vm1, %v1643_v48, %v1641_v16  ;;  %vm4654_vm1 = vmmov %vm4653_vm0 }
0x1243   :  { %1646 = vrot.lane.b32.xlu1 %v1644_v47, %s4642_s0  ;;  %vm4658_vm15 = vmmov %vm4653_vm0 }
0x1247   :  { %1660 = vperm.xlu1 %2769, %v1657_v50  }
0x1252   :  { %v3920_v34 = vpop.permute.xlu0 %1653 }
0x1256   :  { %v1689_v49 = vpop.permute.xlu0 %1688 }
0x12b5   :  { %v1647_v5 = vpop.permute.xlu1 %1646 }
0x12b6   :  { %1649 = vst.msk [vmem:[#allocation2 + $0x8] sm:$0xf] %vm4643_vm4, %v1647_v5 }
0x12bd   :  { %v1656_v22 = vld [vmem:[#allocation2] ss:$4 sm:$0x7] }
0x12be   :  { %v3923_v52 = vrot.slane %v1656_v22, %v4644_v3  ;;  %v3926_v17 = vrot.slane %v1656_v22, %v4645_v31  ;;  %v3929_v0 = vrot.slane %v1656_v22, %v4646_v33 }
0x12c0   :  { %v1692_v19 = vmul.f32 %v1689_v49, %v3926_v17  ;;  %v1691_v56 = vmul.f32 %v1689_v49, %v3923_v52  ;;  %v1693_v53 = vmul.f32 %v1689_v49, %v3929_v0 }
0x12c2   :  { %1699 = vrot.lane.b32.xlu0 %v1692_v19, %s2795_s14  ;;  %1697 = vrot.lane.b32.xlu1 %v1691_v56, %s2795_s14 }
0x12c6   :  { %1714 = vperm.xlu0 %2770, %v2685_v24   ;;  %1701 = vrot.lane.b32.xlu1 %v1693_v53, %s2795_s14  ;;  %v4020_v8 = vpop.permute.xlu1 %1660 }
0x1334   :  { %v3940_v46 = vpop.permute.xlu0 %1699  ;;  %v1698_v59 = vpop.permute.xlu1 %1697 }
0x1338   :  { %v4022_v12 = vpop.permute.xlu1 %1701 }
0x1345   :  { %v1715_v29 = vpop.permute.xlu0 %1714 }
0x1346   :  { %v1717_v58 = vmul.f32 %v1715_v29, %v3923_v52  ;;  %v1718_v21 = vmul.f32 %v1715_v29, %v3926_v17  ;;  %v1719_v39 = vmul.f32 %v1715_v29, %v3929_v0 }
0x1348   :  { %1725 = vrot.lane.b32.xlu0 %v1718_v21, %s2825_s13  ;;  %1723 = vrot.lane.b32.xlu1 %v1717_v58, %s2825_s13  ;;  %v1893_v21 = vld [vmem:[#allocation2 + $0x1] ss:$4 sm:$0x7] }
0x134c   :  { %1740 = vperm.xlu0 %2770, %v2686_v55   ;;  %1727 = vrot.lane.b32.xlu1 %v1719_v39, %s2825_s13  ;;  %v4039_v39 = vrot.slane %v1893_v21, %v4644_v3 }
0x13ba   :  { %v3951_v35 = vpop.permute.xlu0 %1725  ;;  %v1724_v48 = vpop.permute.xlu1 %1723 }
0x13be   :  { %v4024_v16 = vpop.permute.xlu1 %1727 }
0x13cb   :  { %v1741_v26 = vpop.permute.xlu0 %1740 }
0x13cc   :  { %v1743_v63 = vmul.f32 %v1741_v26, %v3923_v52  ;;  %v1744_v23 = vmul.f32 %v1741_v26, %v3926_v17  ;;  %v1745_v11 = vmul.f32 %v1741_v26, %v3929_v0  ;;  %v4042_v26 = vrot.slane %v1893_v21, %v4645_v31 }
0x13ce   :  { %1751 = vrot.lane.b32.xlu0 %v1744_v23, %s4647_s28  ;;  %1749 = vrot.lane.b32.xlu1 %v1743_v63, %s4647_s28 }
0x13d2   :  { %1766 = vperm.xlu0 %2770, %v2687_v54   ;;  %1753 = vrot.lane.b32.xlu1 %v1745_v11, %s4647_s28  ;;  %v4047_v11 = vrot.slane %v1893_v21, %v4646_v33 }
0x1440   :  { %v3962_v15 = vpop.permute.xlu0 %1751  ;;  %v1750_v47 = vpop.permute.xlu1 %1749 }
0x1444   :  { %v4026_v50 = vpop.permute.xlu1 %1753 }
0x1451   :  { %v1767_v2 = vpop.permute.xlu0 %1766 }
0x1452   :  { %v1769_v51 = vmul.f32 %v1767_v2, %v3923_v52  ;;  %v1770_v14 = vmul.f32 %v1767_v2, %v3926_v17  ;;  %v1771_v18 = vmul.f32 %v1767_v2, %v3929_v0  ;;  %v2694_v2 = vld [vmem:[%s4479_s1 + $0x2c] sm:$0xf] }
0x1454   :  { %1777 = vrot.lane.b32.xlu0 %v1770_v14, %s4648_s7  ;;  %1775 = vrot.lane.b32.xlu1 %v1769_v51, %s4648_s7 }
0x1458   :  { %1792 = vperm.xlu0 %2770, %v2688_v41   ;;  %1779 = vrot.lane.b32.xlu1 %v1771_v18, %s4648_s7 }
0x14c6   :  { %v3973_v37 = vpop.permute.xlu0 %1777  ;;  %v1776_v5 = vpop.permute.xlu1 %1775 }
0x14ca   :  { %v4028_v22 = vpop.permute.xlu1 %1779 }
0x14d7   :  { %v1793_v6 = vpop.permute.xlu0 %1792 }
0x14d8   :  { %v1795_v1 = vmul.f32 %v1793_v6, %v3923_v52  ;;  %v1796_v25 = vmul.f32 %v1793_v6, %v3926_v17  ;;  %v1797_v42 = vmul.f32 %v1793_v6, %v3929_v0 }
0x14da   :  { %1803 = vrot.lane.b32.xlu0 %v1796_v25, %s4649_s17  ;;  %1801 = vrot.lane.b32.xlu1 %v1795_v1, %s4649_s17 }
0x14de   :  { %1818 = vperm.xlu0 %2770, %v2689_v32   ;;  %1805 = vrot.lane.b32.xlu1 %v1797_v42, %s4649_s17 }
0x154c   :  { %v3984_v44 = vpop.permute.xlu0 %1803  ;;  %v1802_v49 = vpop.permute.xlu1 %1801 }
0x1550   :  { %v4030_v19 = vpop.permute.xlu1 %1805 }
0x1551   :  { %v1808_v21 = vsel %vm505_vm10, %v3984_v44, %v4030_v19 }
0x155d   :  { %v1819_v7 = vpop.permute.xlu0 %1818 }
0x155e   :  { %v1821_v4 = vmul.f32 %v1819_v7, %v3923_v52  ;;  %v1822_v30 = vmul.f32 %v1819_v7, %v3926_v17  ;;  %v1823_v60 = vmul.f32 %v1819_v7, %v3929_v0  ;;  %v2695_v7 = vld [vmem:[%s4479_s1 + $0x30] sm:$0xf] }
0x1560   :  { %1829 = vrot.lane.b32.xlu0 %v1822_v30, %s4650_s9  ;;  %1827 = vrot.lane.b32.xlu1 %v1821_v4, %s4650_s9  ;;  %v1679_v30 = vmul.f32 %v3923_v52, %v4020_v8 }
0x1564   :  { %1844 = vperm.xlu0 %2770, %v2690_v10   ;;  %1831 = vrot.lane.b32.xlu1 %v1823_v60, %s4650_s9  ;;  %v1703_v10 = vsel %vm394_vm14, %v1698_v59, %v3940_v46  ;;  %v1680_v60 = vmul.f32 %v3926_v17, %v4020_v8 }
0x15d2   :  { %v3995_v38 = vpop.permute.xlu0 %1829  ;;  %v1828_v56 = vpop.permute.xlu1 %1827 }
0x15d6   :  { %v4032_v24 = vpop.permute.xlu1 %1831 }
0x15e3   :  { %v1845_v40 = vpop.permute.xlu0 %1844 }
0x15e4   :  { %v1847_v43 = vmul.f32 %v1845_v40, %v3923_v52  ;;  %v1848_v28 = vmul.f32 %v1845_v40, %v3926_v17  ;;  %v1849_v36 = vmul.f32 %v1845_v40, %v3929_v0  ;;  %v1682_v40 = vadd.f32 %v1679_v30, %v3920_v34 }
0x15e6   :  { %1855 = vrot.lane.b32.xlu0 %v1848_v28, %s4651_s21  ;;  %1853 = vrot.lane.b32.xlu1 %v1847_v43, %s4651_s21  ;;  %v1729_v43 = vsel %vm152_vm12, %v1724_v48, %v3951_v35  ;;  %v1708_v28 = vadd.f32 %v1703_v10, %v1682_v40  ;;  %v1782_v48 = vsel %vm477_vm11, %v3973_v37, %v4028_v22 }
0x15ea   :  { %1870 = vperm.xlu0 %2770, %v2691_v57   ;;  %1857 = vrot.lane.b32.xlu1 %v1849_v36, %s4651_s21  ;;  %v1704_v57 = vsel %vm394_vm14, %v3940_v46, %v4022_v12  ;;  %v1755_v36 = vsel %vm449_vm8, %v1750_v47, %v3962_v15  ;;  %v1807_v46 = vsel %vm505_vm10, %v1802_v49, %v3984_v44 }
0x1658   :  { %v4006_v9 = vpop.permute.xlu0 %1855  ;;  %v1854_v53 = vpop.permute.xlu1 %1853 }
0x165c   :  { %v4034_v29 = vpop.permute.xlu1 %1857 }
0x165d   :  { %v1860_v44 = vsel %vm4654_vm1, %v4006_v9, %v4034_v29 }
0x1669   :  { %v1871_v62 = vpop.permute.xlu0 %1870 }
0x166a   :  { %v1873_v13 = vmul.f32 %v1871_v62, %v3923_v52  ;;  %v1874_v27 = vmul.f32 %v1871_v62, %v3926_v17  ;;  %v1875_v20 = vmul.f32 %v1871_v62, %v3929_v0  ;;  %v1683_v52 = vadd.f32 %v1680_v60, %v3920_v34 }
0x166b   :  { %v1734_v62 = vadd.f32 %v1729_v43, %v1708_v28  ;;  %v1730_v17 = vsel %vm152_vm12, %v3951_v35, %v4024_v16  ;;  %v1833_v35 = vsel %vm533_vm7, %v1828_v56, %v3995_v38 }
0x166c   :  { %1881 = vrot.lane.b32.xlu0 %v1874_v27, %s4652_s12  ;;  %1879 = vrot.lane.b32.xlu1 %v1873_v13, %s4652_s12  ;;  %v1781_v13 = vsel %vm477_vm11, %v1776_v5, %v3973_v37  ;;  %v1709_v27 = vadd.f32 %v1704_v57, %v1683_v52 }
0x1670   :  { %1897 = vperm.xlu0 %2770, %v2692_v45   ;;  %1883 = vrot.lane.b32.xlu1 %v1875_v20, %s4652_s12  ;;  %v1760_v45 = vadd.f32 %v1755_v36, %v1734_v62  ;;  %v1756_v20 = vsel %vm449_vm8, %v3962_v15, %v4026_v50  ;;  %v1859_v15 = vsel %vm4653_vm0, %v1854_v53, %v4006_v9 }
0x1672   :  { %v1786_v59 = vadd.f32 %v1781_v13, %v1760_v45 }
0x1674   :  { %1925 = vperm.xlu1 %2769, %v2693_v61   ;;  %v1735_v61 = vadd.f32 %v1730_v17, %v1709_v27  ;;  %v1812_v5 = vadd.f32 %v1807_v46, %v1786_v59 }
0x1676   :  { %v1761_v47 = vadd.f32 %v1756_v20, %v1735_v61  ;;  %v1838_v49 = vadd.f32 %v1833_v35, %v1812_v5 }
0x16de   :  { %v1880_v58 = vpop.permute.xlu1 %1879  ;;  %v1882_v14 = vpop.permute.xlu0 %1881 }
0x16df   :  { %v1885_v37 = vsel %vm589_vm2, %v1880_v58, %v1882_v14 }
0x16e2   :  { %v4036_v55 = vpop.permute.xlu1 %1883 }
0x16ef   :  { %v4056_v41 = vpop.permute.xlu0 %1897 }
0x16f0   :  { %v1916_v56 = vmul.f32 %v4039_v39, %v4056_v41 }
0x16f3   :  { %v1926_v63 = vpop.permute.xlu1 %1925 }
0x16f4   :  { %v1928_v23 = vmul.f32 %v1926_v63, %v4039_v39  ;;  %v1929_v54 = vmul.f32 %v1926_v63, %v4042_v26  ;;  %v1930_v51 = vmul.f32 %v1926_v63, %v4047_v11  ;;  %v1787_v63 = vadd.f32 %v1782_v48, %v1761_v47  ;;  %v2697_v47 = vld [vmem:[%s4479_s1 + $0x38] sm:$0xf] }
0x16f6   :  { %1936 = vrot.lane.b32.xlu1 %v1929_v54, %s2795_s14  ;;  %1934 = vrot.lane.b32.xlu0 %v1928_v23, %s2795_s14  ;;  %v1834_v23 = vsel %vm533_vm7, %v3995_v38, %v4032_v24  ;;  %v1813_v54 = vadd.f32 %v1808_v21, %v1787_v63  ;;  %v1917_v38 = vmul.f32 %v4042_v26, %v4056_v41 }
0x16fa   :  { %1951 = vperm.xlu1 %2769, %v2694_v2   ;;  %1938 = vrot.lane.b32.xlu0 %v1930_v51, %s2795_s14  ;;  %v1864_v2 = vadd.f32 %v1859_v15, %v1838_v49  ;;  %v1839_v51 = vadd.f32 %v1834_v23, %v1813_v54 }
0x1768   :  { %v1937_v18 = vpop.permute.xlu1 %1936  ;;  %v1935_v6 = vpop.permute.xlu0 %1934 }
0x1769   :  { %v1940_v1 = vsel %vm394_vm14, %v1935_v6, %v1937_v18  ;;  %v1890_v6 = vadd.f32 %v1885_v37, %v1864_v2 }
0x176b   :  { %v1919_v58 = vadd.f32 %v1916_v56, %v1890_v6 }
0x176c   :  { %v4112_v53 = vpop.permute.xlu0 %1938 }
0x176d   :  { %v1941_v10 = vsel %vm394_vm14, %v1937_v18, %v4112_v53  ;;  %v2696_v18 = vld [vmem:[%s4479_s1 + $0x34] sm:$0xf] }
0x1779   :  { %v1952_v25 = vpop.permute.xlu1 %1951 }
0x177a   :  { %v1954_v32 = vmul.f32 %v1952_v25, %v4039_v39  ;;  %v1955_v42 = vmul.f32 %v1952_v25, %v4042_v26  ;;  %v1956_v4 = vmul.f32 %v1952_v25, %v4047_v11  ;;  %v1886_v25 = vsel %vm589_vm2, %v1882_v14, %v4036_v55 }
0x177c   :  { %1962 = vrot.lane.b32.xlu1 %v1955_v42, %s2825_s13  ;;  %1960 = vrot.lane.b32.xlu0 %v1954_v32, %s2825_s13  ;;  %v1865_v32 = vadd.f32 %v1860_v44, %v1839_v51  ;;  %v2698_v51 = vld [vmem:[%s4479_s1 + $0x3c] sm:$0xf] }
0x177e   :  { %v1891_v42 = vadd.f32 %v1886_v25, %v1865_v32 }
0x1780   :  { %1977 = vperm.xlu1 %2769, %v2695_v7   ;;  %1964 = vrot.lane.b32.xlu0 %v1956_v4, %s2825_s13  ;;  %v1945_v7 = vadd.f32 %v1940_v1, %v1919_v58  ;;  %v1920_v60 = vadd.f32 %v1917_v38, %v1891_v42 }
0x1782   :  { %v1946_v43 = vadd.f32 %v1941_v10, %v1920_v60  ;;  %v2699_v60 = vld [vmem:[%s4479_s1 + $0x40] sm:$0xf] }
0x17ee   :  { %v1963_v4 = vpop.permute.xlu1 %1962  ;;  %v1961_v30 = vpop.permute.xlu0 %1960 }
0x17ef   :  { %v1966_v9 = vsel %vm152_vm12, %v1961_v30, %v1963_v4 }
0x17f0   :  { %v1971_v40 = vadd.f32 %v1966_v9, %v1945_v7 }
0x17f2   :  { %v4121_v28 = vpop.permute.xlu0 %1964 }
0x17f3   :  { %v1967_v14 = vsel %vm152_vm12, %v1963_v4, %v4121_v28 }
0x17f4   :  { %v1972_v57 = vadd.f32 %v1967_v14, %v1946_v43 }
0x17ff   :  { %v1978_v36 = vpop.permute.xlu1 %1977 }
0x1800   :  { %v1980_v52 = vmul.f32 %v1978_v36, %v4039_v39  ;;  %v1981_v1 = vmul.f32 %v1978_v36, %v4042_v26  ;;  %v1982_v62 = vmul.f32 %v1978_v36, %v4047_v11 }
0x1802   :  { %1988 = vrot.lane.b32.xlu1 %v1981_v1, %s4647_s28  ;;  %1986 = vrot.lane.b32.xlu0 %v1980_v52, %s4647_s28 }
0x1806   :  { %2003 = vperm.xlu1 %2769, %v2696_v18   ;;  %1990 = vrot.lane.b32.xlu0 %v1982_v62, %s4647_s28 }
0x1874   :  { %v1989_v17 = vpop.permute.xlu1 %1988  ;;  %v1987_v13 = vpop.permute.xlu0 %1986 }
0x1875   :  { %v1992_v27 = vsel %vm449_vm8, %v1987_v13, %v1989_v17 }
0x1876   :  { %v1997_v45 = vadd.f32 %v1992_v27, %v1971_v40  ;;  %v2700_v27 = vld [vmem:[%s4479_s1 + $0x44] sm:$0xf] }
0x1878   :  { %v4135_v20 = vpop.permute.xlu0 %1990 }
0x1879   :  { %v1993_v46 = vsel %vm449_vm8, %v1989_v17, %v4135_v20 }
0x187a   :  { %v1998_v61 = vadd.f32 %v1993_v46, %v1972_v57 }
0x1885   :  { %v2004_v59 = vpop.permute.xlu1 %2003 }
0x1886   :  { %v2006_v48 = vmul.f32 %v2004_v59, %v4039_v39  ;;  %v2007_v35 = vmul.f32 %v2004_v59, %v4042_v26  ;;  %v2008_v5 = vmul.f32 %v2004_v59, %v4047_v11 }
0x1888   :  { %2014 = vrot.lane.b32.xlu1 %v2007_v35, %s4648_s7  ;;  %2012 = vrot.lane.b32.xlu0 %v2006_v48, %s4648_s7 }
0x188c   :  { %2029 = vperm.xlu1 %2769, %v2697_v47   ;;  %2016 = vrot.lane.b32.xlu0 %v2008_v5, %s4648_s7 }
0x18fa   :  { %v2015_v21 = vpop.permute.xlu1 %2014  ;;  %v2013_v15 = vpop.permute.xlu0 %2012 }
0x18fb   :  { %v2018_v63 = vsel %vm477_vm11, %v2013_v15, %v2015_v21 }
0x18fc   :  { %v2023_v49 = vadd.f32 %v2018_v63, %v1997_v45 }
0x18fe   :  { %v4149_v23 = vpop.permute.xlu0 %2016 }
0x18ff   :  { %v2019_v37 = vsel %vm477_vm11, %v2015_v21, %v4149_v23 }
0x1900   :  { %v2024_v54 = vadd.f32 %v2019_v37, %v1998_v61 }
0x190b   :  { %v2030_v2 = vpop.permute.xlu1 %2029 }
0x190c   :  { %v2032_v56 = vmul.f32 %v2030_v2, %v4039_v39  ;;  %v2033_v44 = vmul.f32 %v2030_v2, %v4042_v26  ;;  %v2034_v6 = vmul.f32 %v2030_v2, %v4047_v11  ;;  %v2704_v2 = vld [vmem:[%s4479_s1 + $0x54] sm:$0xf] }
0x190e   :  { %2040 = vrot.lane.b32.xlu1 %v2033_v44, %s4649_s17  ;;  %2038 = vrot.lane.b32.xlu0 %v2032_v56, %s4649_s17  ;;  %v2707_v56 = vld [vmem:[%s4479_s1 + $0x60] sm:$0xf]  ;;  %v2706_v44 = vld [vmem:[%s4479_s1 + $0x5c] sm:$0xf] }
0x1912   :  { %2055 = vperm.xlu1 %2769, %v2698_v51   ;;  %2042 = vrot.lane.b32.xlu0 %v2034_v6, %s4649_s17  ;;  %v2709_v51 = vld [vmem:[%s4479_s1 + $0x68] sm:$0xf]  ;;  %v2708_v6 = vld [vmem:[%s4479_s1 + $0x64] sm:$0xf] }
0x1980   :  { %v2041_v25 = vpop.permute.xlu1 %2040  ;;  %v2039_v32 = vpop.permute.xlu0 %2038 }
0x1981   :  { %v2044_v38 = vsel %vm505_vm10, %v2039_v32, %v2041_v25  ;;  %v2711_v32 = vld [vmem:[%s4479_s1 + $0x70] sm:$0xf] }
0x1982   :  { %v2049_v58 = vadd.f32 %v2044_v38, %v2023_v49  ;;  %v2701_v49 = vld [vmem:[%s4479_s1 + $0x48] sm:$0xf]  ;;  %v2714_v38 = vld [vmem:[%s4479_s1 + $0x7c] sm:$0xf] }
0x1984   :  { %v4163_v42 = vpop.permute.xlu0 %2042 }
0x1985   :  { %v2045_v7 = vsel %vm505_vm10, %v2041_v25, %v4163_v42  ;;  %v2712_v25 = vld [vmem:[%s4479_s1 + $0x74] sm:$0xf] }
0x1986   :  { %v2050_v4 = vadd.f32 %v2045_v7, %v2024_v54  ;;  %v2703_v54 = vld [vmem:[%s4479_s1 + $0x50] sm:$0xf]  ;;  %v2716_v7 = vld [vmem:[%s4479_s1 + $0x84] sm:$0xf] }
0x1991   :  { %v2056_v30 = vpop.permute.xlu1 %2055 }
0x1992   :  { %v2058_v10 = vmul.f32 %v2056_v30, %v4039_v39  ;;  %v2059_v9 = vmul.f32 %v2056_v30, %v4042_v26  ;;  %v2060_v40 = vmul.f32 %v2056_v30, %v4047_v11  ;;  %v2718_v30 = vld [vmem:[%s4479_s1 + $0x8c] sm:$0xf] }
0x1994   :  { %2066 = vrot.lane.b32.xlu1 %v2059_v9, %s4650_s9  ;;  %2064 = vrot.lane.b32.xlu0 %v2058_v10, %s4650_s9  ;;  %v2717_v10 = vld [vmem:[%s4479_s1 + $0x88] sm:$0xf]  ;;  %v1681_v9 = vmul.f32 %v3929_v0, %v4020_v8 }
0x1998   :  { %2081 = vperm.xlu1 %2769, %v2699_v60   ;;  %2068 = vrot.lane.b32.xlu0 %v2060_v40, %s4650_s9  ;;  %v1684_v60 = vadd.f32 %v1681_v9, %v3920_v34 }
0x199a   :  { %v1710_v40 = vadd.f32 %v4022_v12, %v1684_v60 }
0x1a06   :  { %v2067_v43 = vpop.permute.xlu1 %2066  ;;  %v2065_v14 = vpop.permute.xlu0 %2064 }
0x1a07   :  { %v2070_v57 = vsel %vm533_vm7, %v2065_v14, %v2067_v43 }
0x1a08   :  { %v2075_v36 = vadd.f32 %v2070_v57, %v2049_v58  ;;  %v2713_v58 = vld [vmem:[%s4479_s1 + $0x78] sm:$0xf] }
0x1a0a   :  { %v4177_v52 = vpop.permute.xlu0 %2068 }
0x1a0b   :  { %v2071_v1 = vsel %vm533_vm7, %v2067_v43, %v4177_v52  ;;  %v1736_v43 = vadd.f32 %v4024_v16, %v1710_v40 }
0x1a0c   :  { %v2076_v18 = vadd.f32 %v2071_v1, %v2050_v4  ;;  %v2715_v4 = vld [vmem:[%s4479_s1 + $0x80] sm:$0xf] }
0x1a0d   :  { %v1762_v14 = vadd.f32 %v4026_v50, %v1736_v43 }
0x1a0f   :  { %v1788_v57 = vadd.f32 %v4028_v22, %v1762_v14 }
0x1a17   :  { %v2082_v62 = vpop.permute.xlu1 %2081 }
0x1a18   :  { %v2084_v17 = vmul.f32 %v2082_v62, %v4039_v39  ;;  %v2085_v13 = vmul.f32 %v2082_v62, %v4042_v26  ;;  %v2086_v45 = vmul.f32 %v2082_v62, %v4047_v11  ;;  %v1918_v62 = vmul.f32 %v4047_v11, %v4056_v41  ;;  %v2130_v41 = vld [vmem:[#allocation2 + $0x2] ss:$4 sm:$0x7] }
0x1a1a   :  { %2092 = vrot.lane.b32.xlu1 %v2085_v13, %s4651_s21  ;;  %2090 = vrot.lane.b32.xlu0 %v2084_v17, %s4651_s21 }
0x1a1e   :  { %2107 = vperm.xlu1 %2769, %v2700_v27   ;;  %2094 = vrot.lane.b32.xlu0 %v2086_v45, %s4651_s21 }
0x1a8c   :  { %v2093_v46 = vpop.permute.xlu1 %2092  ;;  %v2091_v61 = vpop.permute.xlu0 %2090 }
0x1a8d   :  { %v2096_v59 = vsel %vm4655_vm5, %v2091_v61, %v2093_v46 }
0x1a8e   :  { %v2101_v48 = vadd.f32 %v2096_v59, %v2075_v36  ;;  %v1814_v36 = vadd.f32 %v4030_v19, %v1788_v57 }
0x1a90   :  { %v4191_v35 = vpop.permute.xlu0 %2094  ;;  %v1840_v1 = vadd.f32 %v4032_v24, %v1814_v36 }
0x1a91   :  { %v2097_v47 = vsel %vm4656_vm6, %v2093_v46, %v4191_v35  ;;  %v4275_v46 = vrot.slane %v2130_v41, %v4644_v3 }
0x1a92   :  { %v2102_v5 = vadd.f32 %v2097_v47, %v2076_v18  ;;  %v1866_v18 = vadd.f32 %v4034_v29, %v1840_v1  ;;  %v2367_v1 = vld [vmem:[#allocation2 + $0x3] ss:$4 sm:$0x7] }
0x1a94   :  { %v1892_v0 = vadd.f32 %v4036_v55, %v1866_v18 }
0x1a96   :  { %v1921_v16 = vadd.f32 %v1918_v62, %v1892_v0 }
0x1a98   :  { %v1947_v50 = vadd.f32 %v4112_v53, %v1921_v16  ;;  %v4278_v53 = vrot.slane %v2130_v41, %v4645_v31  ;;  %v4347_v16 = vrot.slane %v2367_v1, %v4645_v31 }
0x1a9a   :  { %v1973_v24 = vadd.f32 %v4121_v28, %v1947_v50  ;;  %v4281_v28 = vrot.slane %v2130_v41, %v4646_v33 }
0x1a9c   :  { %v1999_v29 = vadd.f32 %v4135_v20, %v1973_v24 }
0x1a9d   :  { %v2108_v21 = vpop.permute.xlu1 %2107 }
0x1a9e   :  { %v2110_v15 = vmul.f32 %v2108_v21, %v4039_v39  ;;  %v2111_v63 = vmul.f32 %v2108_v21, %v4042_v26  ;;  %v2112_v37 = vmul.f32 %v2108_v21, %v4047_v11  ;;  %v2702_v39 = vld [vmem:[%s4479_s1 + $0x4c] sm:$0xf]  ;;  %v2705_v26 = vld [vmem:[%s4479_s1 + $0x58] sm:$0xf]  ;;  %v2025_v11 = vadd.f32 %v4149_v23, %v1999_v29 }
0x1aa0   :  { %2118 = vrot.lane.b32.xlu1 %v2111_v63, %s4652_s12  ;;  %2116 = vrot.lane.b32.xlu0 %v2110_v15, %s4652_s12  ;;  %v2051_v55 = vadd.f32 %v4163_v42, %v2025_v11 }
0x1aa2   :  { %v2077_v27 = vadd.f32 %v4177_v52, %v2051_v55 }
0x1aa4   :  { %2134 = vperm.xlu1 %2769, %v2701_v49   ;;  %2120 = vrot.lane.b32.xlu0 %v2112_v37, %s4652_s12  ;;  %v2103_v45 = vadd.f32 %v4191_v35, %v2077_v27 }
0x1aa8   :  { %2188 = vperm.xlu1 %2769, %v2703_v54   ;;  %2162 = vperm.xlu0 %2770, %v2702_v39  }
0x1aac   :  { %2240 = vperm.xlu1 %2769, %v2705_v26   ;;  %2214 = vperm.xlu0 %2770, %v2704_v2  }
0x1ab0   :  { %2292 = vperm.xlu1 %2769, %v2707_v56   ;;  %2266 = vperm.xlu0 %2770, %v2706_v44  }
0x1ab4   :  { %2344 = vperm.xlu1 %2769, %v2709_v51   ;;  %2318 = vperm.xlu0 %2770, %v2708_v6  }
0x1ab8   :  { %2425 = vperm.xlu1 %2769, %v2712_v25   ;;  %2399 = vperm.xlu0 %2770, %v2711_v32  }
0x1abc   :  { %2477 = vperm.xlu1 %2769, %v2714_v38   ;;  %2451 = vperm.xlu0 %2770, %v2713_v58  }
0x1ac0   :  { %2529 = vperm.xlu1 %2769, %v2716_v7   ;;  %2503 = vperm.xlu0 %2770, %v2715_v4   ;;  %v2710_v4 = vld [vmem:[%s4479_s1 + $0x6c] sm:$0xf]  ;;  %s2842_s1 = smov [#allocation3]  }
0x1ac4   :  { %2581 = vperm.xlu1 %2769, %v2718_v30   ;;  %2555 = vperm.xlu0 %2770, %v2717_v10  }
0x1b12   :  { %v2119_v34 = vpop.permute.xlu1 %2118  ;;  %v2117_v8 = vpop.permute.xlu0 %2116 }
0x1b13   :  { %v2122_v12 = vsel %vm589_vm2, %v2117_v8, %v2119_v34 }
0x1b14   :  { %v2127_v17 = vadd.f32 %v2122_v12, %v2101_v48 }
0x1b16   :  { %v2121_v22 = vpop.permute.xlu0 %2120 }
0x1b17   :  { %v2123_v19 = vsel %vm589_vm2, %v2119_v34, %v2121_v22  ;;  %v2129_v20 = vadd.f32 %v2121_v22, %v2103_v45  ;;  %v4341_v34 = vrot.slane %v2367_v1, %v4644_v3 }
0x1b18   :  { %v2128_v13 = vadd.f32 %v2123_v19, %v2102_v5 }
0x1b23   :  { %v2135_v61 = vpop.permute.xlu1 %2134 }
0x1b24   :  { %v2153_v23 = vmul.f32 %v4275_v46, %v2135_v61  ;;  %v2154_v42 = vmul.f32 %v4278_v53, %v2135_v61  ;;  %v2155_v59 = vmul.f32 %v4281_v28, %v2135_v61 }
0x1b26   :  { %v4286_v52 = vadd.f32 %v2153_v23, %v2127_v17  ;;  %v4288_v48 = vadd.f32 %v2154_v42, %v2128_v13  ;;  %v4290_v35 = vadd.f32 %v2155_v59, %v2129_v20  ;;  %v4351_v17 = vrot.slane %v2367_v1, %v4646_v33 }
0x1b27   :  { %v2163_v47 = vpop.permute.xlu0 %2162  ;;  %v2189_v15 = vpop.permute.xlu1 %2188 }
0x1b28   :  { %v2165_v5 = vmul.f32 %v2163_v47, %v4275_v46  ;;  %v2166_v21 = vmul.f32 %v2163_v47, %v4278_v53  ;;  %v2167_v63 = vmul.f32 %v2163_v47, %v4281_v28  ;;  %v2191_v49 = vmul.f32 %v2189_v15, %v4275_v46 }
0x1b29   :  { %v2192_v37 = vmul.f32 %v2189_v15, %v4278_v53  ;;  %v2193_v54 = vmul.f32 %v2189_v15, %v4281_v28 }
0x1b2a   :  { %2171 = vrot.lane.b32.xlu0 %v2165_v5, %s2795_s14  ;;  %2173 = vrot.lane.b32.xlu1 %v2166_v21, %s2795_s14 }
0x1b2b   :  { %v2215_v39 = vpop.permute.xlu0 %2214  ;;  %v2241_v56 = vpop.permute.xlu1 %2240 }
0x1b2c   :  { %v2217_v26 = vmul.f32 %v2215_v39, %v4275_v46  ;;  %v2218_v2 = vmul.f32 %v2215_v39, %v4278_v53  ;;  %v2219_v44 = vmul.f32 %v2215_v39, %v4281_v28  ;;  %v2243_v51 = vmul.f32 %v2241_v56, %v4275_v46 }
0x1b2d   :  { %v2244_v6 = vmul.f32 %v2241_v56, %v4278_v53  ;;  %v2245_v25 = vmul.f32 %v2241_v56, %v4281_v28 }
0x1b2e   :  { %2175 = vrot.lane.b32.xlu0 %v2167_v63, %s2795_s14  ;;  %2197 = vrot.lane.b32.xlu1 %v2191_v49, %s2825_s13 }
0x1b2f   :  { %v2267_v32 = vpop.permute.xlu0 %2266  ;;  %v2293_v30 = vpop.permute.xlu1 %2292 }
0x1b30   :  { %v2269_v38 = vmul.f32 %v2267_v32, %v4275_v46  ;;  %v2270_v58 = vmul.f32 %v2267_v32, %v4278_v53  ;;  %v2271_v7 = vmul.f32 %v2267_v32, %v4281_v28  ;;  %v2295_v10 = vmul.f32 %v2293_v30, %v4275_v46 }
0x1b31   :  { %v2296_v9 = vmul.f32 %v2293_v30, %v4278_v53  ;;  %v2297_v40 = vmul.f32 %v2293_v30, %v4281_v28 }
0x1b32   :  { %2199 = vrot.lane.b32.xlu0 %v2192_v37, %s2825_s13  ;;  %2201 = vrot.lane.b32.xlu1 %v2193_v54, %s2825_s13 }
0x1b33   :  { %v2319_v60 = vpop.permute.xlu0 %2318  ;;  %v2345_v57 = vpop.permute.xlu1 %2344 }
0x1b34   :  { %v2321_v43 = vmul.f32 %v2319_v60, %v4275_v46  ;;  %v2322_v14 = vmul.f32 %v2319_v60, %v4278_v53  ;;  %v2323_v36 = vmul.f32 %v2319_v60, %v4281_v28  ;;  %v2347_v18 = vmul.f32 %v2345_v57, %v4275_v46 }
0x1b35   :  { %v2348_v62 = vmul.f32 %v2345_v57, %v4278_v53  ;;  %v2349_v8 = vmul.f32 %v2345_v57, %v4281_v28 }
0x1b36   :  { %2223 = vrot.lane.b32.xlu0 %v2217_v26, %s4647_s28  ;;  %2225 = vrot.lane.b32.xlu1 %v2218_v2, %s4647_s28 }
0x1b37   :  { %v2400_v0 = vpop.permute.xlu0 %2399  ;;  %v2426_v3 = vpop.permute.xlu1 %2425 }
0x1b38   :  { %v2402_v12 = vmul.f32 %v2400_v0, %v4341_v34  ;;  %v2403_v50 = vmul.f32 %v2400_v0, %v4347_v16  ;;  %v2404_v22 = vmul.f32 %v2400_v0, %v4351_v17  ;;  %v2428_v19 = vmul.f32 %v2426_v3, %v4341_v34 }
0x1b39   :  { %v2429_v31 = vmul.f32 %v2426_v3, %v4347_v16  ;;  %v2430_v33 = vmul.f32 %v2426_v3, %v4351_v17 }
0x1b3a   :  { %2227 = vrot.lane.b32.xlu0 %v2219_v44, %s4647_s28  ;;  %2249 = vrot.lane.b32.xlu1 %v2243_v51, %s4648_s7 }
0x1b3b   :  { %v2452_v24 = vpop.permute.xlu0 %2451  ;;  %v2478_v11 = vpop.permute.xlu1 %2477 }
0x1b3c   :  { %v2454_v13 = vmul.f32 %v2452_v24, %v4341_v34  ;;  %v2455_v29 = vmul.f32 %v2452_v24, %v4347_v16  ;;  %v2456_v55 = vmul.f32 %v2452_v24, %v4351_v17  ;;  %v2480_v41 = vmul.f32 %v2478_v11, %v4341_v34 }
0x1b3d   :  { %v2481_v27 = vmul.f32 %v2478_v11, %v4347_v16  ;;  %v2482_v46 = vmul.f32 %v2478_v11, %v4351_v17 }
0x1b3e   :  { %2251 = vrot.lane.b32.xlu0 %v2244_v6, %s4648_s7  ;;  %2253 = vrot.lane.b32.xlu1 %v2245_v25, %s4648_s7 }
0x1b3f   :  { %v2504_v45 = vpop.permute.xlu0 %2503  ;;  %v2530_v61 = vpop.permute.xlu1 %2529 }
0x1b40   :  { %v2506_v53 = vmul.f32 %v2504_v45, %v4341_v34  ;;  %v2507_v28 = vmul.f32 %v2504_v45, %v4347_v16  ;;  %v2508_v20 = vmul.f32 %v2504_v45, %v4351_v17  ;;  %v2532_v23 = vmul.f32 %v2530_v61, %v4341_v34 }
0x1b41   :  { %v2533_v42 = vmul.f32 %v2530_v61, %v4347_v16  ;;  %v2534_v47 = vmul.f32 %v2530_v61, %v4351_v17 }
0x1b42   :  { %2275 = vrot.lane.b32.xlu0 %v2269_v38, %s4649_s17  ;;  %2277 = vrot.lane.b32.xlu1 %v2270_v58, %s4649_s17 }
0x1b43   :  { %v2556_v59 = vpop.permute.xlu0 %2555  ;;  %v2582_v15 = vpop.permute.xlu1 %2581 }
0x1b44   :  { %v2558_v5 = vmul.f32 %v2556_v59, %v4341_v34  ;;  %v2559_v21 = vmul.f32 %v2556_v59, %v4347_v16  ;;  %v2560_v63 = vmul.f32 %v2556_v59, %v4351_v17  ;;  %v2584_v49 = vmul.f32 %v2582_v15, %v4341_v34 }
0x1b45   :  { %v2585_v37 = vmul.f32 %v2582_v15, %v4347_v16  ;;  %v2586_v54 = vmul.f32 %v2582_v15, %v4351_v17 }
0x1b46   :  { %2279 = vrot.lane.b32.xlu0 %v2271_v7, %s4649_s17  ;;  %2371 = vperm.xlu1 %2769, %v2710_v4  }
0x1b4a   :  { %2301 = vrot.lane.b32.xlu0 %v2295_v10, %s4650_s9  ;;  %2303 = vrot.lane.b32.xlu1 %v2296_v9, %s4650_s9 }
0x1b4e   :  { %2305 = vrot.lane.b32.xlu0 %v2297_v40, %s4650_s9  ;;  %2327 = vrot.lane.b32.xlu1 %v2321_v43, %s4651_s21 }
0x1b52   :  { %2329 = vrot.lane.b32.xlu0 %v2322_v14, %s4651_s21  ;;  %2331 = vrot.lane.b32.xlu1 %v2323_v36, %s4651_s21 }
0x1b56   :  { %2353 = vrot.lane.b32.xlu0 %v2347_v18, %s4652_s12  ;;  %2355 = vrot.lane.b32.xlu1 %v2348_v62, %s4652_s12 }
0x1b5a   :  { %2357 = vrot.lane.b32.xlu0 %v2349_v8, %s4652_s12  ;;  %2408 = vrot.lane.b32.xlu1 %v2402_v12, %s2795_s14 }
0x1b5e   :  { %2410 = vrot.lane.b32.xlu0 %v2403_v50, %s2795_s14  ;;  %2412 = vrot.lane.b32.xlu1 %v2404_v22, %s2795_s14  ;;  %s2622_s14 = sshll.u32 %s2842_s1, 4  ;;  %s2623_s14 = int_to_ptr.vmem [resolvable:$true] %s2622_s14 }
0x1b5f   :  { %p2776_p1 = scmp.lt.s32.totalorder %s2623_s14, %s2623_s14 }
0x1b62   :  { %2434 = vrot.lane.b32.xlu0 %v2428_v19, %s2825_s13  ;;  %2436 = vrot.lane.b32.xlu1 %v2429_v31, %s2825_s13 }
0x1b66   :  { %2438 = vrot.lane.b32.xlu0 %v2430_v33, %s2825_s13  ;;  %2460 = vrot.lane.b32.xlu1 %v2454_v13, %s4647_s28  ;;  %s2771_s13 = scalar_lea.vmem %s2623_s14, 384 }
0x1b67   :  { %p2772_p0 = scmp.ne.s32.totalorder %s2623_s14, %s2771_s13  ;;  %p2777_p2 = scmp.lt.s32.totalorder %s2771_s13, %s2771_s13 }
0x1b69   :  { %p2778_p3 = por %p2777_p2, %p2776_p1 }
0x1b6a   :  { %2462 = vrot.lane.b32.xlu0 %v2455_v29, %s4647_s28  ;;  %2464 = vrot.lane.b32.xlu1 %v2456_v55, %s4647_s28 }
0x1b6b   :  { %p2779_p4 = pnand %p2778_p3, %p2772_p0 }
0x1b6e   :  { %2486 = vrot.lane.b32.xlu0 %v2480_v41, %s4648_s7  ;;  %2488 = vrot.lane.b32.xlu1 %v2481_v27, %s4648_s7 }
0x1b72   :  { %2490 = vrot.lane.b32.xlu0 %v2482_v46, %s4648_s7  ;;  %2512 = vrot.lane.b32.xlu1 %v2506_v53, %s4649_s17 }
0x1b76   :  { %2514 = vrot.lane.b32.xlu0 %v2507_v28, %s4649_s17  ;;  %2516 = vrot.lane.b32.xlu1 %v2508_v20, %s4649_s17 }
0x1b7a   :  { %2538 = vrot.lane.b32.xlu0 %v2532_v23, %s4650_s9  ;;  %2540 = vrot.lane.b32.xlu1 %v2533_v42, %s4650_s9 }
0x1b7e   :  { %2542 = vrot.lane.b32.xlu0 %v2534_v47, %s4650_s9  ;;  %2564 = vrot.lane.b32.xlu1 %v2558_v5, %s4651_s21 }
0x1b82   :  { %2566 = vrot.lane.b32.xlu0 %v2559_v21, %s4651_s21  ;;  %2568 = vrot.lane.b32.xlu1 %v2560_v63, %s4651_s21 }
0x1b86   :  { %2590 = vrot.lane.b32.xlu0 %v2584_v49, %s4652_s12  ;;  %2592 = vrot.lane.b32.xlu1 %v2585_v37, %s4652_s12 }
0x1b8a   :  { %2594 = vrot.lane.b32.xlu0 %v2586_v54, %s4652_s12 }
0x1b9c   :  { %v2172_v39 = vpop.permute.xlu0 %2171  ;;  %v2174_v26 = vpop.permute.xlu1 %2173 }
0x1b9d   :  { %v2177_v2 = vsel %vm394_vm14, %v2172_v39, %v2174_v26 }
0x1b9e   :  { %v2182_v56 = vadd.f32 %v2177_v2, %v4286_v52 }
0x1ba0   :  { %v2176_v44 = vpop.permute.xlu0 %2175  ;;  %v2198_v51 = vpop.permute.xlu1 %2197 }
0x1ba1   :  { %v2184_v22 = vadd.f32 %v2176_v44, %v4290_v35  ;;  %v2178_v55 = vsel %vm394_vm14, %v2174_v26, %v2176_v44 }
0x1ba2   :  { %v2183_v28 = vadd.f32 %v2178_v55, %v4288_v48 }
0x1ba4   :  { %v2200_v6 = vpop.permute.xlu0 %2199  ;;  %v2202_v32 = vpop.permute.xlu1 %2201 }
0x1ba5   :  { %v2210_v31 = vadd.f32 %v2202_v32, %v2184_v22  ;;  %v2203_v41 = vsel %vm152_vm12, %v2198_v51, %v2200_v6  ;;  %v2204_v46 = vsel %vm152_vm12, %v2200_v6, %v2202_v32 }
0x1ba6   :  { %v2208_v61 = vadd.f32 %v2203_v41, %v2182_v56  ;;  %v2209_v47 = vadd.f32 %v2204_v46, %v2183_v28 }
0x1ba8   :  { %v2224_v25 = vpop.permute.xlu0 %2223  ;;  %v2226_v58 = vpop.permute.xlu1 %2225 }
0x1ba9   :  { %v2229_v35 = vsel %vm449_vm8, %v2224_v25, %v2226_v58 }
0x1baa   :  { %v2234_v5 = vadd.f32 %v2229_v35, %v2208_v61 }
0x1bac   :  { %v2228_v38 = vpop.permute.xlu0 %2227  ;;  %v2250_v30 = vpop.permute.xlu1 %2249 }
0x1bad   :  { %v2236_v33 = vadd.f32 %v2228_v38, %v2210_v31  ;;  %v2230_v23 = vsel %vm449_vm8, %v2226_v58, %v2228_v38 }
0x1bae   :  { %v2235_v49 = vadd.f32 %v2230_v23, %v2209_v47 }
0x1bb0   :  { %v2252_v7 = vpop.permute.xlu0 %2251  ;;  %v2254_v9 = vpop.permute.xlu1 %2253 }
0x1bb1   :  { %v2262_v29 = vadd.f32 %v2254_v9, %v2236_v33  ;;  %v2255_v42 = vsel %vm477_vm11, %v2250_v30, %v2252_v7  ;;  %v2256_v15 = vsel %vm477_vm11, %v2252_v7, %v2254_v9 }
0x1bb2   :  { %v2260_v37 = vadd.f32 %v2255_v42, %v2234_v5  ;;  %v2261_v2 = vadd.f32 %v2256_v15, %v2235_v49 }
0x1bb4   :  { %v2276_v4 = vpop.permute.xlu0 %2275  ;;  %v2278_v43 = vpop.permute.xlu1 %2277 }
0x1bb5   :  { %v2281_v63 = vsel %vm505_vm10, %v2276_v4, %v2278_v43 }
0x1bb6   :  { %v2286_v56 = vadd.f32 %v2281_v63, %v2260_v37 }
0x1bb8   :  { %v2280_v10 = vpop.permute.xlu0 %2279 }
0x1bb9   :  { %v2288_v27 = vadd.f32 %v2280_v10, %v2262_v29  ;;  %v2282_v39 = vsel %vm505_vm10, %v2278_v43, %v2280_v10 }
0x1bba   :  { %v2287_v32 = vadd.f32 %v2282_v39, %v2261_v2 }
0x1bbc   :  { %v2302_v60 = vpop.permute.xlu0 %2301 }
0x1bc0   :  { %v2306_v40 = vpop.permute.xlu0 %2305 }
0x1bc1   :  { %v2314_v53 = vadd.f32 %v2306_v40, %v2288_v27 }
0x1bc4   :  { %v2330_v14 = vpop.permute.xlu0 %2329 }
0x1bc5   :  { %v4402_v57 = vpop.permute.xlu1 %2371 }
0x1bc6   :  { %v2392_v51 = vmul.f32 %v4351_v17, %v4402_v57 }
0x1bc8   :  { %v2354_v36 = vpop.permute.xlu0 %2353 }
0x1bc9   :  { %v2304_v52 = vpop.permute.xlu1 %2303 }
0x1bca   :  { %v2307_v48 = vsel %vm533_vm7, %v2302_v60, %v2304_v52  ;;  %v2308_v6 = vsel %vm533_vm7, %v2304_v52, %v2306_v40  ;;  %v2390_v40 = vmul.f32 %v4341_v34, %v4402_v57 }
0x1bcb   :  { %v2312_v38 = vadd.f32 %v2307_v48, %v2286_v56  ;;  %v2313_v10 = vadd.f32 %v2308_v6, %v2287_v32 }
0x1bcc   :  { %v2358_v1 = vpop.permute.xlu0 %2357 }
0x1bcd   :  { %v2328_v18 = vpop.permute.xlu1 %2327 }
0x1bce   :  { %v2333_v25 = vsel %vm4657_vm13, %v2328_v18, %v2330_v14 }
0x1bcf   :  { %v2338_v9 = vadd.f32 %v2333_v25, %v2312_v38 }
0x1bd0   :  { %v4404_v62 = vpop.permute.xlu0 %2410 }
0x1bd1   :  { %v2332_v0 = vpop.permute.xlu1 %2331 }
0x1bd2   :  { %v2340_v59 = vadd.f32 %v2332_v0, %v2314_v53  ;;  %v2334_v7 = vsel %vm4658_vm15, %v2330_v14, %v2332_v0  ;;  %v2391_v14 = vmul.f32 %v4347_v16, %v4402_v57 }
0x1bd3   :  { %v2339_v22 = vadd.f32 %v2334_v7, %v2313_v10 }
0x1bd4   :  { %v4406_v8 = vpop.permute.xlu0 %2434  ;;  %v2366_v26 = vadd.f32 %v2358_v1, %v2340_v59 }
0x1bd5   :  { %v2356_v12 = vpop.permute.xlu1 %2355 }
0x1bd6   :  { %v2359_v4 = vsel %vm589_vm2, %v2354_v36, %v2356_v12  ;;  %v2395_v30 = vadd.f32 %v2392_v51, %v2366_v26  ;;  %v2360_v60 = vsel %vm589_vm2, %v2356_v12, %v2358_v1 }
0x1bd7   :  { %v2364_v31 = vadd.f32 %v2359_v4, %v2338_v9  ;;  %v2365_v52 = vadd.f32 %v2360_v60, %v2339_v22 }
0x1bd8   :  { %v4408_v50 = vpop.permute.xlu0 %2438 }
0x1bd9   :  { %v2409_v3 = vpop.permute.xlu1 %2408  ;;  %v2393_v36 = vadd.f32 %v2390_v40, %v2364_v31  ;;  %v2394_v55 = vadd.f32 %v2391_v14, %v2365_v52 }
0x1bda   :  { %v2414_v29 = vsel %vm394_vm14, %v2409_v3, %v4404_v62 }
0x1bdb   :  { %v2419_v46 = vadd.f32 %v2414_v29, %v2393_v36 }
0x1bdc   :  { %v4411_v19 = vpop.permute.xlu0 %2462 }
0x1bdd   :  { %v2413_v24 = vpop.permute.xlu1 %2412 }
0x1bde   :  { %v2421_v43 = vadd.f32 %v2413_v24, %v2395_v30  ;;  %v2415_v1 = vsel %vm394_vm14, %v4404_v62, %v2413_v24 }
0x1bdf   :  { %v2420_v35 = vadd.f32 %v2415_v1, %v2394_v55 }
0x1be0   :  { %v4413_v13 = vpop.permute.xlu0 %2486  ;;  %v2447_v18 = vadd.f32 %v4408_v50, %v2421_v43 }
0x1be1   :  { %v2437_v11 = vpop.permute.xlu1 %2436 }
0x1be2   :  { %v2440_v34 = vsel %vm152_vm12, %v4406_v8, %v2437_v11  ;;  %v2441_v27 = vsel %vm152_vm12, %v2437_v11, %v4408_v50  ;;  %vm4659_vm12 = vmmov %vm4653_vm0 }
0x1be3   :  { %v2445_v24 = vadd.f32 %v2440_v34, %v2419_v46  ;;  %v2446_v53 = vadd.f32 %v2441_v27, %v2420_v35 }
0x1be4   :  { %v4417_v45 = vpop.permute.xlu0 %2490 }
0x1be5   :  { %v2461_v20 = vpop.permute.xlu1 %2460 }
0x1be6   :  { %v2466_v57 = vsel %vm449_vm8, %v2461_v20, %v4411_v19 }
0x1be7   :  { %v2471_v11 = vadd.f32 %v2466_v57, %v2445_v24 }
0x1be8   :  { %v2515_v21 = vpop.permute.xlu0 %2514 }
0x1be9   :  { %v2465_v54 = vpop.permute.xlu1 %2464 }
0x1bea   :  { %v2473_v12 = vadd.f32 %v2465_v54, %v2447_v18  ;;  %v2467_v3 = vsel %vm449_vm8, %v4411_v19, %v2465_v54 }
0x1beb   :  { %v2472_v61 = vadd.f32 %v2467_v3, %v2446_v53 }
0x1bec   :  { %v2539_v44 = vpop.permute.xlu0 %2538  ;;  %v2499_v62 = vadd.f32 %v4417_v45, %v2473_v12 }
0x1bed   :  { %v2489_v58 = vpop.permute.xlu1 %2488 }
0x1bee   :  { %v2492_v28 = vsel %vm477_vm11, %v4413_v13, %v2489_v58  ;;  %v2493_v8 = vsel %vm477_vm11, %v2489_v58, %v4417_v45  ;;  %vm4660_vm11 = vmmov %vm4653_vm0 }
0x1bef   :  { %v2497_v19 = vadd.f32 %v2492_v28, %v2471_v11  ;;  %v2498_v47 = vadd.f32 %v2493_v8, %v2472_v61 }
0x1bf0   :  { %v2543_v17 = vpop.permute.xlu0 %2542 }
0x1bf1   :  { %v2513_v33 = vpop.permute.xlu1 %2512 }
0x1bf2   :  { %v2518_v20 = vsel %vm505_vm10, %v2513_v33, %v2515_v21 }
0x1bf3   :  { %v2523_v13 = vadd.f32 %v2518_v20, %v2497_v19 }
0x1bf4   :  { %v2567_v41 = vpop.permute.xlu0 %2566 }
0x1bf5   :  { %v2517_v0 = vpop.permute.xlu1 %2516 }
0x1bf6   :  { %v2525_v50 = vadd.f32 %v2517_v0, %v2499_v62  ;;  %v2519_v59 = vsel %vm505_vm10, %v2515_v21, %v2517_v0 }
0x1bf7   :  { %v2524_v49 = vadd.f32 %v2519_v59, %v2498_v47 }
0x1bf8   :  { %v2591_v23 = vpop.permute.xlu0 %2590  ;;  %v2551_v63 = vadd.f32 %v2543_v17, %v2525_v50 }
0x1bf9   :  { %v2541_v16 = vpop.permute.xlu1 %2540 }
0x1bfa   :  { %v2544_v5 = vsel %vm533_vm7, %v2539_v44, %v2541_v16  ;;  %v2545_v15 = vsel %vm533_vm7, %v2541_v16, %v2543_v17 }
0x1bfb   :  { %v2549_v48 = vadd.f32 %v2544_v5, %v2523_v13  ;;  %v2550_v26 = vadd.f32 %v2545_v15, %v2524_v49 }
0x1bfc   :  { %v2595_v2 = vpop.permute.xlu0 %2594 }
0x1bfd   :  { %v2565_v42 = vpop.permute.xlu1 %2564 }
0x1bfe   :  { %v2570_v45 = vsel %vm4659_vm12, %v2565_v42, %v2567_v41 }
0x1bff   :  { %v2575_v21 = vadd.f32 %v2570_v45, %v2549_v48 }
0x1c01   :  { %v2569_v37 = vpop.permute.xlu1 %2568 }
0x1c02   :  { %v2571_v54 = vsel %vm4660_vm11, %v2567_v41, %v2569_v37  ;;  %v2577_v39 = vadd.f32 %v2569_v37, %v2551_v63 }
0x1c03   :  { %v2576_v51 = vadd.f32 %v2571_v54, %v2550_v26 }
0x1c04   :  { %v2603_v56 = vadd.f32 %v2595_v2, %v2577_v39 }
0x1c05   :  { %v2593_v6 = vpop.permute.xlu1 %2592 }
0x1c06   :  { %v2606_v25 = vmul.f32 0.2, %v2603_v56  ;;  %v2596_v44 = vsel %vm589_vm2, %v2591_v23, %v2593_v6  ;;  %v2597_v32 = vsel %vm589_vm2, %v2593_v6, %v2595_v2 }
0x1c07   :  { %v2601_v38 = vadd.f32 %v2596_v44, %v2575_v21  ;;  %v2602_v58 = vadd.f32 %v2597_v32, %v2576_v51 }
0x1c08   :  { %v2609_v7 = vmax.f32 %v2603_v56, %v2606_v25 }
0x1c09   :  { %v2604_v4 = vmul.f32 0.2, %v2601_v38  ;;  %v2605_v30 = vmul.f32 0.2, %v2602_v58 }
0x1c0a   :  { %2616 = vst.msk [vmem:[#allocation3 + $0x14] sm:$0xf] %vm1350_vm9, %v2609_v7 }
0x1c0b   :  { %v2607_v10 = vmax.f32 %v2601_v38, %v2604_v4  ;;  %v2608_v9 = vmax.f32 %v2602_v58, %v2605_v30 }
0x1c0d   :  { %v2612_v60 = vcombine.low %v2607_v10, %v2608_v9 }
0x1c0f   :  { %2615 = vst [vmem:[#allocation3 + $0xc] sm:$0xff] %v2612_v60 }
0x1c10   :  { %2782 = shalt.err (!%p2779_p4)
}
0x1c11   :  { %s2783_s17 = scalar_lea.hbm %s4481_s3, 384 }
0x1c12   :  { %p2784_p5 = scmp.ne.s32.totalorder %s4481_s3, %s2783_s17  ;;  %p2787_p6 = scmp.lt.u32.totalorder %s2783_s17, %s4481_s3 }
0x1c14   :  { %p2789_p7 = pnand %p2787_p6, %p2784_p5 }
0x1c16   :  { %2792 = shalt.err (!%p2789_p7)
}
0x1c17   :  { %s2843_s11 = smov 192   ;;  %s2844_s23 = smov 12  }
0x1c18   :  { %2628 = dma.vmem_to_hbm [thread:$0]  %s2623_s14, 384, %s4481_s3, [#allocation4], %s2843_s11, %s2843_s11, %s2844_s23  }
0x1c19   :  { %2793 = dma.done.wait [#allocation4], 384  }
0x1c1a   :  { %2794 = vsyncadd [#allocation4], 4294966912 }
0x1c1b   :  { %2632 = vsyncpa [#allocation4], 1 }

</bundles_post_ra>
